<compile_context>
chip_gen: v5e
topology: v5e:2x2
jax: 0.10.0
libtpu: 0.0.40
codegen_flags: <defaults>
</compile_context>

<pallas_src>
import jax
import jax.numpy as jnp
import numpy as np
from jax.experimental import pallas as pl
from jax.experimental.pallas import tpu as pltpu

# ----------------------------- hyperparameters -----------------------------
FEATURE_SIZE = 32    # feature_size (PyTorch default 128, shrunk for the demo)
HIDDEN_SIZE = 32     # hidden_size  (PyTorch default 512, shrunk for the demo)
NUM_LAYERS = 2       # num_layers   (PyTorch default 4, shrunk for the demo)
MAX_LENGTH = 8       # hp.max_length
BATCH = 2
INPUT_SIZE = 5       # stroke-5 format
START_TOKEN = np.array([0.0, 0.0, 1.0, 0.0, 0.0], dtype=np.float32)  # hp.start_token
SUBLANE = 8          # f32 sublane granularity


# --------------------------- in-kernel LSTM helpers ---------------------------
def _lstm_cell_seq(xp_list, w_hh, b, h0, c0, H):
    """Recurrence over pre-projected inputs xp_list[t]: (Bp, 4H).

    Gate column order is [i | f | o | g]: one sigmoid on lanes [0, 3H), one tanh
    on lanes [3H, 4H).  Exactly one (Bp,H)@(H,4H) MXU push per step.
    """
    h, c = h0, c0
    outs = []
    for xp in xp_list:
        g = xp + jnp.dot(h, w_hh, preferred_element_type=jnp.float32) + b
        sig = jax.nn.sigmoid(g[:, :3 * H])          # i|f|o in one contiguous slab
        g_g = jnp.tanh(g[:, 3 * H:])
        c = sig[:, H:2 * H] * c + sig[:, :H] * g_g
        h = sig[:, 2 * H:3 * H] * jnp.tanh(c)
        outs.append(h)
    return outs, h, c


def _lstm_layer(seq, w_ih, w_hh, b, h0, c0, H, Bp):
    """One LSTM layer: hoist all input projections into a single matmul, recur."""
    n = len(seq)
    xp_all = jnp.dot(jnp.concatenate(seq, axis=0), w_ih,
                     preferred_element_type=jnp.float32)        # (n*Bp, 4H)
    xp_list = [xp_all[t * Bp:(t + 1) * Bp] for t in range(n)]
    return _lstm_cell_seq(xp_list, w_hh, b, h0, c0, H)


# ------------------------------ fused Pallas kernel ------------------------------
def make_fused_kernel(num_layers, T, H, F, Bp):
    def kernel(*refs):
        it = iter(refs)
        x_ref = next(it)                     # (T, Bp, 5)   time-major tokens
        start_ref = next(it)                 # (1, 5)
        enc_layers = [(next(it), next(it), next(it)) for _ in range(num_layers)]
        ehw, ehb = next(it), next(it)        # (H, F), (1, F)
        dlw, dlb = next(it), next(it)        # (F, 2H), (1, 2H)
        d0_wz, d0_wt, d0_whh, d0_b = next(it), next(it), next(it), next(it)
        dec_rest = [(next(it), next(it), next(it)) for _ in range(num_layers - 1)]
        hw, hb = next(it), next(it)          # (H, 5), (1, 5)
        out_ref = next(it)                   # ((T+1)*Bp, 5)

        zeros = jnp.zeros((Bp, H), jnp.float32)
        xs = [x_ref[t] for t in range(T)]    # T x (Bp, 5)

        # ---- SeqEncoder: LSTM stack, final hidden of top layer -> Linear + tanh
        seq = xs
        h_last = zeros
        for (wih, whh, b) in enc_layers:
            seq, h_last, _ = _lstm_layer(seq, wih[...], whh[...], b[...],
                                         zeros, zeros, H, Bp)
        z = jnp.tanh(jnp.dot(h_last, ehw[...],
                             preferred_element_type=jnp.float32) + ehb[...])  # (Bp,F)

        # ---- Decoder init state (same (h0, c0) for every layer, as in PyTorch)
        hc = jnp.tanh(jnp.dot(z, dlw[...],
                              preferred_element_type=jnp.float32) + dlb[...])  # (Bp,2H)
        h0, c0 = hc[:, :H], hc[:, H:]

        # ---- Decoder layer 0 input projections, hoisted:
        #      [features | token] @ W_ih  ==  z @ W_z  +  tok @ W_t
        z_proj = jnp.dot(z, d0_wz[...], preferred_element_type=jnp.float32)  # (Bp,4H)
        start_tok = jnp.broadcast_to(start_ref[...], (Bp, start_ref.shape[1]))
        toks = [start_tok] + xs                                              # T+1 tokens
        tok_proj = jnp.dot(jnp.concatenate(toks, axis=0), d0_wt[...],
                           preferred_element_type=jnp.float32)               # ((T+1)*Bp,4H)
        xp0 = [z_proj + tok_proj[t * Bp:(t + 1) * Bp] for t in range(T + 1)]
        seq, _, _ = _lstm_cell_seq(xp0, d0_whh[...], d0_b[...], h0, c0, H)
        for (wih, whh, b) in dec_rest:
            seq, _, _ = _lstm_layer(seq, wih[...], whh[...], b[...], h0, c0, H, Bp)

        # ---- Fused estimator head: one (H,5) matmul; tanh cols 0:2, softmax 2:5
        flat = jnp.concatenate(seq, axis=0)                                   # ((T+1)*Bp, H)
        head = jnp.dot(flat, hw[...], preferred_element_type=jnp.float32) + hb[...]
        x_part = jnp.tanh(head[:, :2])
        logits = head[:, 2:5]
        m = jnp.max(logits, axis=-1, keepdims=True)
        e = jnp.exp(logits - m)
        # exact reciprocal keeps the 1e-4 reference tolerance
        c_part = e * pl.reciprocal(jnp.sum(e, axis=-1, keepdims=True), approx=False)
        out_ref[...] = jnp.concatenate([x_part, c_part], axis=-1)

    return kernel


# ------------------------------ parameter init ------------------------------
def init_lstm_stack(key, input_size, hidden, num_layers, scale=0.1):
    """Per layer: (W_ih (in,4H), W_hh (H,4H), bias (1,4H)); gate cols = [i,f,o,g]."""
    layers = []
    for l in range(num_layers):
        in_dim = input_size if l == 0 else hidden
        key, k1, k2, k3 = jax.random.split(key, 4)
        wih = jax.random.normal(k1, (in_dim, 4 * hidden), jnp.float32) * scale
        whh = jax.random.normal(k2, (hidden, 4 * hidden), jnp.float32) * scale
        b = jax.random.normal(k3, (1, 4 * hidden), jnp.float32) * scale
        layers.append((wih, whh, b))
    return key, layers


def init_linear(key, in_dim, out_dim, scale=0.1):
    key, k1, k2 = jax.random.split(key, 3)
    w = jax.random.normal(k1, (in_dim, out_dim), jnp.float32) * scale
    b = jax.random.normal(k2, (1, out_dim), jnp.float32) * scale
    return key, (w, b)


def init_params(seed=0):
    key = jax.random.PRNGKey(seed)
    p = {}
    key, p["enc_lstm"] = init_lstm_stack(key, INPUT_SIZE, HIDDEN_SIZE, NUM_LAYERS)
    key, p["enc_head"] = init_linear(key, HIDDEN_SIZE, FEATURE_SIZE)
    key, p["dec_lin"] = init_linear(key, FEATURE_SIZE, 2 * HIDDEN_SIZE)
    key, p["dec_lstm"] = init_lstm_stack(key, FEATURE_SIZE + INPUT_SIZE,
                                         HIDDEN_SIZE, NUM_LAYERS)
    # fused estimator head: cols 0:2 = XEstimator(tanh), cols 2:5 = CEstimator(softmax)
    key, p["head"] = init_linear(key, HIDDEN_SIZE, 5)
    return p


# ------------------------------ model forward -------------------------------
def sketchvae_forward(params, inputs):
    """inputs: (B, MAX_LENGTH, 5) stroke-5 sequence. Training-mode forward."""
    B, T, _ = inputs.shape
    H, F = HIDDEN_SIZE, FEATURE_SIZE
    Bp = ((B + SUBLANE - 1) // SUBLANE) * SUBLANE   # pad batch to sublane multiple

    # Tiny one-time layout prep (1-2 KB): time-major + batch pad, so the kernel
    # only ever indexes the leading dim.  No intermediate ever leaves VMEM.
    x_tb = jnp.transpose(inputs, (1, 0, 2))                       # (T, B, 5)
    x_tb = jnp.pad(x_tb, ((0, 0), (0, Bp - B), (0, 0)))           # (T, Bp, 5)
    start = jnp.asarray(START_TOKEN, jnp.float32).reshape(1, INPUT_SIZE)

    dec0_wih, dec0_whh, dec0_b = params["dec_lstm"][0]
    args = [x_tb, start]
    for (wih, whh, b) in params["enc_lstm"]:
        args += [wih, whh, b]
    args += [params["enc_head"][0], params["enc_head"][1],
             params["dec_lin"][0], params["dec_lin"][1],
             dec0_wih[:F], dec0_wih[F:], dec0_whh, dec0_b]        # split feat/token rows
    for (wih, whh, b) in params["dec_lstm"][1:]:
        args += [wih, whh, b]
    args += [params["head"][0], params["head"][1]]

    kernel = make_fused_kernel(NUM_LAYERS, T, H, F, Bp)
    out_flat = pl.pallas_call(
        kernel,
        out_shape=jax.ShapeDtypeStruct(((T + 1) * Bp, 5), jnp.float32),
        in_specs=[pl.BlockSpec(memory_space=pltpu.MemorySpace.VMEM)] * len(args),
        out_specs=pl.BlockSpec(memory_space=pltpu.MemorySpace.VMEM),
    )(*args)

    # kernel rows are time-major (t*Bp + b); drop padded batch rows, go batch-major
    out = out_flat.reshape(T + 1, Bp, 5)[:, :B, :]
    return jnp.transpose(out, (1, 0, 2))                          # (B, T+1, 5)


# --------------------------- pure-JAX reference ------------------------------
def _lstm_stack_ref(layers, x_tbc, h0, c0, H):
    x = x_tbc                                    # (T, B, in)
    hT = cT = None
    for (wih, whh, b) in layers:
        def step(carry, xt, wih=wih, whh=whh, b=b):
            h, c = carry
            g = xt @ wih + h @ whh + b
            i = jax.nn.sigmoid(g[:, :H])
            f = jax.nn.sigmoid(g[:, H:2 * H])
            o = jax.nn.sigmoid(g[:, 2 * H:3 * H])
            gg = jnp.tanh(g[:, 3 * H:])
            c = f * c + i * gg
            h = o * jnp.tanh(c)
            return (h, c), h
        (hT, cT), x = jax.lax.scan(step, (h0, c0), x)
    return x, hT, cT


def sketchvae_forward_ref(params, inputs):
    B, T, _ = inputs.shape
    H, F = HIDDEN_SIZE, FEATURE_SIZE
    zeros = jnp.zeros((B, H), jnp.float32)
    x_tb = jnp.transpose(inputs, (1, 0, 2))                       # (T, B, 5)
    _, enc_hT, _ = _lstm_stack_ref(params["enc_lstm"], x_tb, zeros, zeros, H)
    z = jnp.tanh(enc_hT @ params["enc_head"][0] + params["enc_head"][1])
    hc = jnp.tanh(z @ params["dec_lin"][0] + params["dec_lin"][1])
    h0, c0 = hc[:, :H], hc[:, H:]
    start = jnp.broadcast_to(jnp.asarray(START_TOKEN)[None, None, :],
                             (1, B, INPUT_SIZE))
    toks = jnp.concatenate([start, x_tb], axis=0)                 # (T+1, B, 5)
    feat = jnp.broadcast_to(z[None, :, :], (T + 1, B, F))
    dec_in = jnp.concatenate([feat, toks], axis=2)                # (T+1, B, F+5)
    dec_y, _, _ = _lstm_stack_ref(params["dec_lstm"], dec_in, h0, c0, H)
    flat = jnp.transpose(dec_y, (1, 0, 2)).reshape(-1, H)
    hw, hb = params["head"]
    x = jnp.tanh(flat @ hw[:, :2] + hb[:, :2])
    c = jax.nn.softmax(flat @ hw[:, 2:] + hb[:, 2:], axis=-1)
    return jnp.concatenate([x, c], axis=-1).reshape(B, T + 1, 5)


# ------------------------------------ main -----------------------------------
if __name__ == "__main__":
    params = init_params(seed=0)
    key = jax.random.PRNGKey(0)
    inputs = jax.random.normal(key, (BATCH, MAX_LENGTH, INPUT_SIZE), jnp.float32)

    out = jax.block_until_ready(sketchvae_forward(params, inputs))
    ref = jax.block_until_ready(sketchvae_forward_ref(params, inputs))

    assert out.shape == (BATCH, MAX_LENGTH + 1, 5), out.shape
    np.testing.assert_allclose(np.asarray(out), np.asarray(ref),
                               rtol=1e-4, atol=1e-4)
    print("KERNEL_OK")
</pallas_src>

<mosaic_0001>
module attributes {stable_mosaic.version = 11 : i64} {
  func.func @kernel(%arg0: memref<8x8x5xf32, #tpu.memory_space<vmem>>, %arg1: memref<1x5xf32, #tpu.memory_space<vmem>>, %arg2: memref<5x128xf32, #tpu.memory_space<vmem>>, %arg3: memref<32x128xf32, #tpu.memory_space<vmem>>, %arg4: memref<1x128xf32, #tpu.memory_space<vmem>>, %arg5: memref<32x128xf32, #tpu.memory_space<vmem>>, %arg6: memref<32x128xf32, #tpu.memory_space<vmem>>, %arg7: memref<1x128xf32, #tpu.memory_space<vmem>>, %arg8: memref<32x32xf32, #tpu.memory_space<vmem>>, %arg9: memref<1x32xf32, #tpu.memory_space<vmem>>, %arg10: memref<32x64xf32, #tpu.memory_space<vmem>>, %arg11: memref<1x64xf32, #tpu.memory_space<vmem>>, %arg12: memref<32x128xf32, #tpu.memory_space<vmem>>, %arg13: memref<5x128xf32, #tpu.memory_space<vmem>>, %arg14: memref<32x128xf32, #tpu.memory_space<vmem>>, %arg15: memref<1x128xf32, #tpu.memory_space<vmem>>, %arg16: memref<32x128xf32, #tpu.memory_space<vmem>>, %arg17: memref<32x128xf32, #tpu.memory_space<vmem>>, %arg18: memref<1x128xf32, #tpu.memory_space<vmem>>, %arg19: memref<32x5xf32, #tpu.memory_space<vmem>>, %arg20: memref<1x5xf32, #tpu.memory_space<vmem>>, %arg21: memref<72x5xf32, #tpu.memory_space<vmem>>) attributes {dimension_semantics = [], scalar_prefetch = 0 : i64, scratch_operands = 0 : i64, tpu.core_type = #tpu.core_type<tc>} {
    %cst = arith.constant 0.000000e+00 : f32
    %0 = vector.broadcast %cst : f32 to vector<8x32xf32>
    %c0 = arith.constant 0 : index
    %c0_0 = arith.constant 0 : index
    %c0_1 = arith.constant 0 : index
    %1 = vector.load %arg0[%c0, %c0_0, %c0_1] : memref<8x8x5xf32, #tpu.memory_space<vmem>>, vector<1x8x5xf32>
    %2 = vector.shape_cast %1 : vector<1x8x5xf32> to vector<8x5xf32>
    %c1 = arith.constant 1 : index
    %c0_2 = arith.constant 0 : index
    %c0_3 = arith.constant 0 : index
    %3 = vector.load %arg0[%c1, %c0_2, %c0_3] : memref<8x8x5xf32, #tpu.memory_space<vmem>>, vector<1x8x5xf32>
    %4 = vector.shape_cast %3 : vector<1x8x5xf32> to vector<8x5xf32>
    %c2 = arith.constant 2 : index
    %c0_4 = arith.constant 0 : index
    %c0_5 = arith.constant 0 : index
    %5 = vector.load %arg0[%c2, %c0_4, %c0_5] : memref<8x8x5xf32, #tpu.memory_space<vmem>>, vector<1x8x5xf32>
    %6 = vector.shape_cast %5 : vector<1x8x5xf32> to vector<8x5xf32>
    %c3 = arith.constant 3 : index
    %c0_6 = arith.constant 0 : index
    %c0_7 = arith.constant 0 : index
    %7 = vector.load %arg0[%c3, %c0_6, %c0_7] : memref<8x8x5xf32, #tpu.memory_space<vmem>>, vector<1x8x5xf32>
    %8 = vector.shape_cast %7 : vector<1x8x5xf32> to vector<8x5xf32>
    %c4 = arith.constant 4 : index
    %c0_8 = arith.constant 0 : index
    %c0_9 = arith.constant 0 : index
    %9 = vector.load %arg0[%c4, %c0_8, %c0_9] : memref<8x8x5xf32, #tpu.memory_space<vmem>>, vector<1x8x5xf32>
    %10 = vector.shape_cast %9 : vector<1x8x5xf32> to vector<8x5xf32>
    %c5 = arith.constant 5 : index
    %c0_10 = arith.constant 0 : index
    %c0_11 = arith.constant 0 : index
    %11 = vector.load %arg0[%c5, %c0_10, %c0_11] : memref<8x8x5xf32, #tpu.memory_space<vmem>>, vector<1x8x5xf32>
    %12 = vector.shape_cast %11 : vector<1x8x5xf32> to vector<8x5xf32>
    %c6 = arith.constant 6 : index
    %c0_12 = arith.constant 0 : index
    %c0_13 = arith.constant 0 : index
    %13 = vector.load %arg0[%c6, %c0_12, %c0_13] : memref<8x8x5xf32, #tpu.memory_space<vmem>>, vector<1x8x5xf32>
    %14 = vector.shape_cast %13 : vector<1x8x5xf32> to vector<8x5xf32>
    %c7 = arith.constant 7 : index
    %c0_14 = arith.constant 0 : index
    %c0_15 = arith.constant 0 : index
    %15 = vector.load %arg0[%c7, %c0_14, %c0_15] : memref<8x8x5xf32, #tpu.memory_space<vmem>>, vector<1x8x5xf32>
    %16 = vector.shape_cast %15 : vector<1x8x5xf32> to vector<8x5xf32>
    %c0_16 = arith.constant 0 : index
    %c0_17 = arith.constant 0 : index
    %17 = vector.load %arg2[%c0_16, %c0_17] : memref<5x128xf32, #tpu.memory_space<vmem>>, vector<5x128xf32>
    %c0_18 = arith.constant 0 : index
    %c0_19 = arith.constant 0 : index
    %18 = vector.load %arg3[%c0_18, %c0_19] : memref<32x128xf32, #tpu.memory_space<vmem>>, vector<32x128xf32>
    %c0_20 = arith.constant 0 : index
    %c0_21 = arith.constant 0 : index
    %19 = vector.load %arg4[%c0_20, %c0_21] : memref<1x128xf32, #tpu.memory_space<vmem>>, vector<1x128xf32>
    %20 = tpu.concatenate %2, %4, %6, %8, %10, %12, %14, %16 in 0 : vector<8x5xf32>, vector<8x5xf32>, vector<8x5xf32>, vector<8x5xf32>, vector<8x5xf32>, vector<8x5xf32>, vector<8x5xf32>, vector<8x5xf32> -> vector<64x5xf32>
    %cst_22 = arith.constant dense<0.000000e+00> : vector<64x128xf32>
    %21 = tpu.matmul %20, %17, %cst_22 {dimension_numbers = #tpu.dot_dimension_numbers<[1], [0], [0], [1], [0, 0, 1, 1], [], []>} : vector<64x5xf32>, vector<5x128xf32>, vector<64x128xf32> -> vector<64x128xf32>
    %22 = vector.extract_strided_slice %21 {offsets = [0, 0], sizes = [8, 128], strides = [1, 1]} : vector<64x128xf32> to vector<8x128xf32>
    %23 = vector.extract_strided_slice %21 {offsets = [8, 0], sizes = [8, 128], strides = [1, 1]} : vector<64x128xf32> to vector<8x128xf32>
    %24 = vector.extract_strided_slice %21 {offsets = [16, 0], sizes = [8, 128], strides = [1, 1]} : vector<64x128xf32> to vector<8x128xf32>
    %25 = vector.extract_strided_slice %21 {offsets = [24, 0], sizes = [8, 128], strides = [1, 1]} : vector<64x128xf32> to vector<8x128xf32>
    %26 = vector.extract_strided_slice %21 {offsets = [32, 0], sizes = [8, 128], strides = [1, 1]} : vector<64x128xf32> to vector<8x128xf32>
    %27 = vector.extract_strided_slice %21 {offsets = [40, 0], sizes = [8, 128], strides = [1, 1]} : vector<64x128xf32> to vector<8x128xf32>
    %28 = vector.extract_strided_slice %21 {offsets = [48, 0], sizes = [8, 128], strides = [1, 1]} : vector<64x128xf32> to vector<8x128xf32>
    %29 = vector.extract_strided_slice %21 {offsets = [56, 0], sizes = [8, 128], strides = [1, 1]} : vector<64x128xf32> to vector<8x128xf32>
    %cst_23 = arith.constant dense<0.000000e+00> : vector<8x128xf32>
    %30 = tpu.matmul %0, %18, %cst_23 {dimension_numbers = #tpu.dot_dimension_numbers<[1], [0], [0], [1], [0, 0, 1, 1], [], []>} : vector<8x32xf32>, vector<32x128xf32>, vector<8x128xf32> -> vector<8x128xf32>
    %31 = arith.addf %22, %30 : vector<8x128xf32>
    %32 = vector.broadcast %19 : vector<1x128xf32> to vector<8x128xf32>
    %33 = arith.addf %31, %32 : vector<8x128xf32>
    %34 = vector.extract_strided_slice %33 {offsets = [0, 0], sizes = [8, 96], strides = [1, 1]} : vector<8x128xf32> to vector<8x96xf32>
    %35 = arith.negf %34 : vector<8x96xf32>
    %36 = math.exp %35 : vector<8x96xf32>
    %cst_24 = arith.constant 1.000000e+00 : f32
    %37 = vector.broadcast %cst_24 : f32 to vector<8x96xf32>
    %38 = arith.addf %37, %36 : vector<8x96xf32>
    %39 = arith.divf %37, %38 : vector<8x96xf32>
    %40 = vector.extract_strided_slice %33 {offsets = [0, 96], sizes = [8, 32], strides = [1, 1]} : vector<8x128xf32> to vector<8x32xf32>
    %41 = math.tanh %40 : vector<8x32xf32>
    %42 = vector.extract_strided_slice %39 {offsets = [0, 32], sizes = [8, 32], strides = [1, 1]} : vector<8x96xf32> to vector<8x32xf32>
    %43 = arith.mulf %42, %0 : vector<8x32xf32>
    %44 = vector.extract_strided_slice %39 {offsets = [0, 0], sizes = [8, 32], strides = [1, 1]} : vector<8x96xf32> to vector<8x32xf32>
    %45 = arith.mulf %44, %41 : vector<8x32xf32>
    %46 = arith.addf %43, %45 : vector<8x32xf32>
    %47 = vector.extract_strided_slice %39 {offsets = [0, 64], sizes = [8, 32], strides = [1, 1]} : vector<8x96xf32> to vector<8x32xf32>
    %48 = math.tanh %46 : vector<8x32xf32>
    %49 = arith.mulf %47, %48 : vector<8x32xf32>
    %cst_25 = arith.constant dense<0.000000e+00> : vector<8x128xf32>
    %50 = tpu.matmul %49, %18, %cst_25 {dimension_numbers = #tpu.dot_dimension_numbers<[1], [0], [0], [1], [0, 0, 1, 1], [], []>} : vector<8x32xf32>, vector<32x128xf32>, vector<8x128xf32> -> vector<8x128xf32>
    %51 = arith.addf %23, %50 : vector<8x128xf32>
    %52 = vector.broadcast %19 : vector<1x128xf32> to vector<8x128xf32>
    %53 = arith.addf %51, %52 : vector<8x128xf32>
    %54 = vector.extract_strided_slice %53 {offsets = [0, 0], sizes = [8, 96], strides = [1, 1]} : vector<8x128xf32> to vector<8x96xf32>
    %55 = arith.negf %54 : vector<8x96xf32>
    %56 = math.exp %55 : vector<8x96xf32>
    %cst_26 = arith.constant 1.000000e+00 : f32
    %57 = vector.broadcast %cst_26 : f32 to vector<8x96xf32>
    %58 = arith.addf %57, %56 : vector<8x96xf32>
    %59 = arith.divf %57, %58 : vector<8x96xf32>
    %60 = vector.extract_strided_slice %53 {offsets = [0, 96], sizes = [8, 32], strides = [1, 1]} : vector<8x128xf32> to vector<8x32xf32>
    %61 = math.tanh %60 : vector<8x32xf32>
    %62 = vector.extract_strided_slice %59 {offsets = [0, 32], sizes = [8, 32], strides = [1, 1]} : vector<8x96xf32> to vector<8x32xf32>
    %63 = arith.mulf %62, %46 : vector<8x32xf32>
    %64 = vector.extract_strided_slice %59 {offsets = [0, 0], sizes = [8, 32], strides = [1, 1]} : vector<8x96xf32> to vector<8x32xf32>
    %65 = arith.mulf %64, %61 : vector<8x32xf32>
    %66 = arith.addf %63, %65 : vector<8x32xf32>
    %67 = vector.extract_strided_slice %59 {offsets = [0, 64], sizes = [8, 32], strides = [1, 1]} : vector<8x96xf32> to vector<8x32xf32>
    %68 = math.tanh %66 : vector<8x32xf32>
    %69 = arith.mulf %67, %68 : vector<8x32xf32>
    %cst_27 = arith.constant dense<0.000000e+00> : vector<8x128xf32>
    %70 = tpu.matmul %69, %18, %cst_27 {dimension_numbers = #tpu.dot_dimension_numbers<[1], [0], [0], [1], [0, 0, 1, 1], [], []>} : vector<8x32xf32>, vector<32x128xf32>, vector<8x128xf32> -> vector<8x128xf32>
    %71 = arith.addf %24, %70 : vector<8x128xf32>
    %72 = vector.broadcast %19 : vector<1x128xf32> to vector<8x128xf32>
    %73 = arith.addf %71, %72 : vector<8x128xf32>
    %74 = vector.extract_strided_slice %73 {offsets = [0, 0], sizes = [8, 96], strides = [1, 1]} : vector<8x128xf32> to vector<8x96xf32>
    %75 = arith.negf %74 : vector<8x96xf32>
    %76 = math.exp %75 : vector<8x96xf32>
    %cst_28 = arith.constant 1.000000e+00 : f32
    %77 = vector.broadcast %cst_28 : f32 to vector<8x96xf32>
    %78 = arith.addf %77, %76 : vector<8x96xf32>
    %79 = arith.divf %77, %78 : vector<8x96xf32>
    %80 = vector.extract_strided_slice %73 {offsets = [0, 96], sizes = [8, 32], strides = [1, 1]} : vector<8x128xf32> to vector<8x32xf32>
    %81 = math.tanh %80 : vector<8x32xf32>
    %82 = vector.extract_strided_slice %79 {offsets = [0, 32], sizes = [8, 32], strides = [1, 1]} : vector<8x96xf32> to vector<8x32xf32>
    %83 = arith.mulf %82, %66 : vector<8x32xf32>
    %84 = vector.extract_strided_slice %79 {offsets = [0, 0], sizes = [8, 32], strides = [1, 1]} : vector<8x96xf32> to vector<8x32xf32>
    %85 = arith.mulf %84, %81 : vector<8x32xf32>
    %86 = arith.addf %83, %85 : vector<8x32xf32>
    %87 = vector.extract_strided_slice %79 {offsets = [0, 64], sizes = [8, 32], strides = [1, 1]} : vector<8x96xf32> to vector<8x32xf32>
    %88 = math.tanh %86 : vector<8x32xf32>
    %89 = arith.mulf %87, %88 : vector<8x32xf32>
    %cst_29 = arith.constant dense<0.000000e+00> : vector<8x128xf32>
    %90 = tpu.matmul %89, %18, %cst_29 {dimension_numbers = #tpu.dot_dimension_numbers<[1], [0], [0], [1], [0, 0, 1, 1], [], []>} : vector<8x32xf32>, vector<32x128xf32>, vector<8x128xf32> -> vector<8x128xf32>
    %91 = arith.addf %25, %90 : vector<8x128xf32>
    %92 = vector.broadcast %19 : vector<1x128xf32> to vector<8x128xf32>
    %93 = arith.addf %91, %92 : vector<8x128xf32>
    %94 = vector.extract_strided_slice %93 {offsets = [0, 0], sizes = [8, 96], strides = [1, 1]} : vector<8x128xf32> to vector<8x96xf32>
    %95 = arith.negf %94 : vector<8x96xf32>
    %96 = math.exp %95 : vector<8x96xf32>
    %cst_30 = arith.constant 1.000000e+00 : f32
    %97 = vector.broadcast %cst_30 : f32 to vector<8x96xf32>
    %98 = arith.addf %97, %96 : vector<8x96xf32>
    %99 = arith.divf %97, %98 : vector<8x96xf32>
    %100 = vector.extract_strided_slice %93 {offsets = [0, 96], sizes = [8, 32], strides = [1, 1]} : vector<8x128xf32> to vector<8x32xf32>
    %101 = math.tanh %100 : vector<8x32xf32>
    %102 = vector.extract_strided_slice %99 {offsets = [0, 32], sizes = [8, 32], strides = [1, 1]} : vector<8x96xf32> to vector<8x32xf32>
    %103 = arith.mulf %102, %86 : vector<8x32xf32>
    %104 = vector.extract_strided_slice %99 {offsets = [0, 0], sizes = [8, 32], strides = [1, 1]} : vector<8x96xf32> to vector<8x32xf32>
    %105 = arith.mulf %104, %101 : vector<8x32xf32>
    %106 = arith.addf %103, %105 : vector<8x32xf32>
    %107 = vector.extract_strided_slice %99 {offsets = [0, 64], sizes = [8, 32], strides = [1, 1]} : vector<8x96xf32> to vector<8x32xf32>
    %108 = math.tanh %106 : vector<8x32xf32>
    %109 = arith.mulf %107, %108 : vector<8x32xf32>
    %cst_31 = arith.constant dense<0.000000e+00> : vector<8x128xf32>
    %110 = tpu.matmul %109, %18, %cst_31 {dimension_numbers = #tpu.dot_dimension_numbers<[1], [0], [0], [1], [0, 0, 1, 1], [], []>} : vector<8x32xf32>, vector<32x128xf32>, vector<8x128xf32> -> vector<8x128xf32>
    %111 = arith.addf %26, %110 : vector<8x128xf32>
    %112 = vector.broadcast %19 : vector<1x128xf32> to vector<8x128xf32>
    %113 = arith.addf %111, %112 : vector<8x128xf32>
    %114 = vector.extract_strided_slice %113 {offsets = [0, 0], sizes = [8, 96], strides = [1, 1]} : vector<8x128xf32> to vector<8x96xf32>
    %115 = arith.negf %114 : vector<8x96xf32>
    %116 = math.exp %115 : vector<8x96xf32>
    %cst_32 = arith.constant 1.000000e+00 : f32
    %117 = vector.broadcast %cst_32 : f32 to vector<8x96xf32>
    %118 = arith.addf %117, %116 : vector<8x96xf32>
    %119 = arith.divf %117, %118 : vector<8x96xf32>
    %120 = vector.extract_strided_slice %113 {offsets = [0, 96], sizes = [8, 32], strides = [1, 1]} : vector<8x128xf32> to vector<8x32xf32>
    %121 = math.tanh %120 : vector<8x32xf32>
    %122 = vector.extract_strided_slice %119 {offsets = [0, 32], sizes = [8, 32], strides = [1, 1]} : vector<8x96xf32> to vector<8x32xf32>
    %123 = arith.mulf %122, %106 : vector<8x32xf32>
    %124 = vector.extract_strided_slice %119 {offsets = [0, 0], sizes = [8, 32], strides = [1, 1]} : vector<8x96xf32> to vector<8x32xf32>
    %125 = arith.mulf %124, %121 : vector<8x32xf32>
    %126 = arith.addf %123, %125 : vector<8x32xf32>
    %127 = vector.extract_strided_slice %119 {offsets = [0, 64], sizes = [8, 32], strides = [1, 1]} : vector<8x96xf32> to vector<8x32xf32>
    %128 = math.tanh %126 : vector<8x32xf32>
    %129 = arith.mulf %127, %128 : vector<8x32xf32>
    %cst_33 = arith.constant dense<0.000000e+00> : vector<8x128xf32>
    %130 = tpu.matmul %129, %18, %cst_33 {dimension_numbers = #tpu.dot_dimension_numbers<[1], [0], [0], [1], [0, 0, 1, 1], [], []>} : vector<8x32xf32>, vector<32x128xf32>, vector<8x128xf32> -> vector<8x128xf32>
    %131 = arith.addf %27, %130 : vector<8x128xf32>
    %132 = vector.broadcast %19 : vector<1x128xf32> to vector<8x128xf32>
    %133 = arith.addf %131, %132 : vector<8x128xf32>
    %134 = vector.extract_strided_slice %133 {offsets = [0, 0], sizes = [8, 96], strides = [1, 1]} : vector<8x128xf32> to vector<8x96xf32>
    %135 = arith.negf %134 : vector<8x96xf32>
    %136 = math.exp %135 : vector<8x96xf32>
    %cst_34 = arith.constant 1.000000e+00 : f32
    %137 = vector.broadcast %cst_34 : f32 to vector<8x96xf32>
    %138 = arith.addf %137, %136 : vector<8x96xf32>
    %139 = arith.divf %137, %138 : vector<8x96xf32>
    %140 = vector.extract_strided_slice %133 {offsets = [0, 96], sizes = [8, 32], strides = [1, 1]} : vector<8x128xf32> to vector<8x32xf32>
    %141 = math.tanh %140 : vector<8x32xf32>
    %142 = vector.extract_strided_slice %139 {offsets = [0, 32], sizes = [8, 32], strides = [1, 1]} : vector<8x96xf32> to vector<8x32xf32>
    %143 = arith.mulf %142, %126 : vector<8x32xf32>
    %144 = vector.extract_strided_slice %139 {offsets = [0, 0], sizes = [8, 32], strides = [1, 1]} : vector<8x96xf32> to vector<8x32xf32>
    %145 = arith.mulf %144, %141 : vector<8x32xf32>
    %146 = arith.addf %143, %145 : vector<8x32xf32>
    %147 = vector.extract_strided_slice %139 {offsets = [0, 64], sizes = [8, 32], strides = [1, 1]} : vector<8x96xf32> to vector<8x32xf32>
    %148 = math.tanh %146 : vector<8x32xf32>
    %149 = arith.mulf %147, %148 : vector<8x32xf32>
    %cst_35 = arith.constant dense<0.000000e+00> : vector<8x128xf32>
    %150 = tpu.matmul %149, %18, %cst_35 {dimension_numbers = #tpu.dot_dimension_numbers<[1], [0], [0], [1], [0, 0, 1, 1], [], []>} : vector<8x32xf32>, vector<32x128xf32>, vector<8x128xf32> -> vector<8x128xf32>
    %151 = arith.addf %28, %150 : vector<8x128xf32>
    %152 = vector.broadcast %19 : vector<1x128xf32> to vector<8x128xf32>
    %153 = arith.addf %151, %152 : vector<8x128xf32>
    %154 = vector.extract_strided_slice %153 {offsets = [0, 0], sizes = [8, 96], strides = [1, 1]} : vector<8x128xf32> to vector<8x96xf32>
    %155 = arith.negf %154 : vector<8x96xf32>
    %156 = math.exp %155 : vector<8x96xf32>
    %cst_36 = arith.constant 1.000000e+00 : f32
    %157 = vector.broadcast %cst_36 : f32 to vector<8x96xf32>
    %158 = arith.addf %157, %156 : vector<8x96xf32>
    %159 = arith.divf %157, %158 : vector<8x96xf32>
    %160 = vector.extract_strided_slice %153 {offsets = [0, 96], sizes = [8, 32], strides = [1, 1]} : vector<8x128xf32> to vector<8x32xf32>
    %161 = math.tanh %160 : vector<8x32xf32>
    %162 = vector.extract_strided_slice %159 {offsets = [0, 32], sizes = [8, 32], strides = [1, 1]} : vector<8x96xf32> to vector<8x32xf32>
    %163 = arith.mulf %162, %146 : vector<8x32xf32>
    %164 = vector.extract_strided_slice %159 {offsets = [0, 0], sizes = [8, 32], strides = [1, 1]} : vector<8x96xf32> to vector<8x32xf32>
    %165 = arith.mulf %164, %161 : vector<8x32xf32>
    %166 = arith.addf %163, %165 : vector<8x32xf32>
    %167 = vector.extract_strided_slice %159 {offsets = [0, 64], sizes = [8, 32], strides = [1, 1]} : vector<8x96xf32> to vector<8x32xf32>
    %168 = math.tanh %166 : vector<8x32xf32>
    %169 = arith.mulf %167, %168 : vector<8x32xf32>
    %cst_37 = arith.constant dense<0.000000e+00> : vector<8x128xf32>
    %170 = tpu.matmul %169, %18, %cst_37 {dimension_numbers = #tpu.dot_dimension_numbers<[1], [0], [0], [1], [0, 0, 1, 1], [], []>} : vector<8x32xf32>, vector<32x128xf32>, vector<8x128xf32> -> vector<8x128xf32>
    %171 = arith.addf %29, %170 : vector<8x128xf32>
    %172 = vector.broadcast %19 : vector<1x128xf32> to vector<8x128xf32>
    %173 = arith.addf %171, %172 : vector<8x128xf32>
    %174 = vector.extract_strided_slice %173 {offsets = [0, 0], sizes = [8, 96], strides = [1, 1]} : vector<8x128xf32> to vector<8x96xf32>
    %175 = arith.negf %174 : vector<8x96xf32>
    %176 = math.exp %175 : vector<8x96xf32>
    %cst_38 = arith.constant 1.000000e+00 : f32
    %177 = vector.broadcast %cst_38 : f32 to vector<8x96xf32>
    %178 = arith.addf %177, %176 : vector<8x96xf32>
    %179 = arith.divf %177, %178 : vector<8x96xf32>
    %180 = vector.extract_strided_slice %173 {offsets = [0, 96], sizes = [8, 32], strides = [1, 1]} : vector<8x128xf32> to vector<8x32xf32>
    %181 = math.tanh %180 : vector<8x32xf32>
    %182 = vector.extract_strided_slice %179 {offsets = [0, 32], sizes = [8, 32], strides = [1, 1]} : vector<8x96xf32> to vector<8x32xf32>
    %183 = arith.mulf %182, %166 : vector<8x32xf32>
    %184 = vector.extract_strided_slice %179 {offsets = [0, 0], sizes = [8, 32], strides = [1, 1]} : vector<8x96xf32> to vector<8x32xf32>
    %185 = arith.mulf %184, %181 : vector<8x32xf32>
    %186 = arith.addf %183, %185 : vector<8x32xf32>
    %187 = vector.extract_strided_slice %179 {offsets = [0, 64], sizes = [8, 32], strides = [1, 1]} : vector<8x96xf32> to vector<8x32xf32>
    %188 = math.tanh %186 : vector<8x32xf32>
    %189 = arith.mulf %187, %188 : vector<8x32xf32>
    %c0_39 = arith.constant 0 : index
    %c0_40 = arith.constant 0 : index
    %190 = vector.load %arg5[%c0_39, %c0_40] : memref<32x128xf32, #tpu.memory_space<vmem>>, vector<32x128xf32>
    %c0_41 = arith.constant 0 : index
    %c0_42 = arith.constant 0 : index
    %191 = vector.load %arg6[%c0_41, %c0_42] : memref<32x128xf32, #tpu.memory_space<vmem>>, vector<32x128xf32>
    %c0_43 = arith.constant 0 : index
    %c0_44 = arith.constant 0 : index
    %192 = vector.load %arg7[%c0_43, %c0_44] : memref<1x128xf32, #tpu.memory_space<vmem>>, vector<1x128xf32>
    %193 = tpu.concatenate %49, %69, %89, %109, %129, %149, %169, %189 in 0 : vector<8x32xf32>, vector<8x32xf32>, vector<8x32xf32>, vector<8x32xf32>, vector<8x32xf32>, vector<8x32xf32>, vector<8x32xf32>, vector<8x32xf32> -> vector<64x32xf32>
    %cst_45 = arith.constant dense<0.000000e+00> : vector<64x128xf32>
    %194 = tpu.matmul %193, %190, %cst_45 {dimension_numbers = #tpu.dot_dimension_numbers<[1], [0], [0], [1], [0, 0, 1, 1], [], []>} : vector<64x32xf32>, vector<32x128xf32>, vector<64x128xf32> -> vector<64x128xf32>
    %195 = vector.extract_strided_slice %194 {offsets = [0, 0], sizes = [8, 128], strides = [1, 1]} : vector<64x128xf32> to vector<8x128xf32>
    %196 = vector.extract_strided_slice %194 {offsets = [8, 0], sizes = [8, 128], strides = [1, 1]} : vector<64x128xf32> to vector<8x128xf32>
    %197 = vector.extract_strided_slice %194 {offsets = [16, 0], sizes = [8, 128], strides = [1, 1]} : vector<64x128xf32> to vector<8x128xf32>
    %198 = vector.extract_strided_slice %194 {offsets = [24, 0], sizes = [8, 128], strides = [1, 1]} : vector<64x128xf32> to vector<8x128xf32>
    %199 = vector.extract_strided_slice %194 {offsets = [32, 0], sizes = [8, 128], strides = [1, 1]} : vector<64x128xf32> to vector<8x128xf32>
    %200 = vector.extract_strided_slice %194 {offsets = [40, 0], sizes = [8, 128], strides = [1, 1]} : vector<64x128xf32> to vector<8x128xf32>
    %201 = vector.extract_strided_slice %194 {offsets = [48, 0], sizes = [8, 128], strides = [1, 1]} : vector<64x128xf32> to vector<8x128xf32>
    %202 = vector.extract_strided_slice %194 {offsets = [56, 0], sizes = [8, 128], strides = [1, 1]} : vector<64x128xf32> to vector<8x128xf32>
    %cst_46 = arith.constant dense<0.000000e+00> : vector<8x128xf32>
    %203 = tpu.matmul %0, %191, %cst_46 {dimension_numbers = #tpu.dot_dimension_numbers<[1], [0], [0], [1], [0, 0, 1, 1], [], []>} : vector<8x32xf32>, vector<32x128xf32>, vector<8x128xf32> -> vector<8x128xf32>
    %204 = arith.addf %195, %203 : vector<8x128xf32>
    %205 = vector.broadcast %192 : vector<1x128xf32> to vector<8x128xf32>
    %206 = arith.addf %204, %205 : vector<8x128xf32>
    %207 = vector.extract_strided_slice %206 {offsets = [0, 0], sizes = [8, 96], strides = [1, 1]} : vector<8x128xf32> to vector<8x96xf32>
    %208 = arith.negf %207 : vector<8x96xf32>
    %209 = math.exp %208 : vector<8x96xf32>
    %cst_47 = arith.constant 1.000000e+00 : f32
    %210 = vector.broadcast %cst_47 : f32 to vector<8x96xf32>
    %211 = arith.addf %210, %209 : vector<8x96xf32>
    %212 = arith.divf %210, %211 : vector<8x96xf32>
    %213 = vector.extract_strided_slice %206 {offsets = [0, 96], sizes = [8, 32], strides = [1, 1]} : vector<8x128xf32> to vector<8x32xf32>
    %214 = math.tanh %213 : vector<8x32xf32>
    %215 = vector.extract_strided_slice %212 {offsets = [0, 32], sizes = [8, 32], strides = [1, 1]} : vector<8x96xf32> to vector<8x32xf32>
    %216 = arith.mulf %215, %0 : vector<8x32xf32>
    %217 = vector.extract_strided_slice %212 {offsets = [0, 0], sizes = [8, 32], strides = [1, 1]} : vector<8x96xf32> to vector<8x32xf32>
    %218 = arith.mulf %217, %214 : vector<8x32xf32>
    %219 = arith.addf %216, %218 : vector<8x32xf32>
    %220 = vector.extract_strided_slice %212 {offsets = [0, 64], sizes = [8, 32], strides = [1, 1]} : vector<8x96xf32> to vector<8x32xf32>
    %221 = math.tanh %219 : vector<8x32xf32>
    %222 = arith.mulf %220, %221 : vector<8x32xf32>
    %cst_48 = arith.constant dense<0.000000e+00> : vector<8x128xf32>
    %223 = tpu.matmul %222, %191, %cst_48 {dimension_numbers = #tpu.dot_dimension_numbers<[1], [0], [0], [1], [0, 0, 1, 1], [], []>} : vector<8x32xf32>, vector<32x128xf32>, vector<8x128xf32> -> vector<8x128xf32>
    %224 = arith.addf %196, %223 : vector<8x128xf32>
    %225 = vector.broadcast %192 : vector<1x128xf32> to vector<8x128xf32>
    %226 = arith.addf %224, %225 : vector<8x128xf32>
    %227 = vector.extract_strided_slice %226 {offsets = [0, 0], sizes = [8, 96], strides = [1, 1]} : vector<8x128xf32> to vector<8x96xf32>
    %228 = arith.negf %227 : vector<8x96xf32>
    %229 = math.exp %228 : vector<8x96xf32>
    %cst_49 = arith.constant 1.000000e+00 : f32
    %230 = vector.broadcast %cst_49 : f32 to vector<8x96xf32>
    %231 = arith.addf %230, %229 : vector<8x96xf32>
    %232 = arith.divf %230, %231 : vector<8x96xf32>
    %233 = vector.extract_strided_slice %226 {offsets = [0, 96], sizes = [8, 32], strides = [1, 1]} : vector<8x128xf32> to vector<8x32xf32>
    %234 = math.tanh %233 : vector<8x32xf32>
    %235 = vector.extract_strided_slice %232 {offsets = [0, 32], sizes = [8, 32], strides = [1, 1]} : vector<8x96xf32> to vector<8x32xf32>
    %236 = arith.mulf %235, %219 : vector<8x32xf32>
    %237 = vector.extract_strided_slice %232 {offsets = [0, 0], sizes = [8, 32], strides = [1, 1]} : vector<8x96xf32> to vector<8x32xf32>
    %238 = arith.mulf %237, %234 : vector<8x32xf32>
    %239 = arith.addf %236, %238 : vector<8x32xf32>
    %240 = vector.extract_strided_slice %232 {offsets = [0, 64], sizes = [8, 32], strides = [1, 1]} : vector<8x96xf32> to vector<8x32xf32>
    %241 = math.tanh %239 : vector<8x32xf32>
    %242 = arith.mulf %240, %241 : vector<8x32xf32>
    %cst_50 = arith.constant dense<0.000000e+00> : vector<8x128xf32>
    %243 = tpu.matmul %242, %191, %cst_50 {dimension_numbers = #tpu.dot_dimension_numbers<[1], [0], [0], [1], [0, 0, 1, 1], [], []>} : vector<8x32xf32>, vector<32x128xf32>, vector<8x128xf32> -> vector<8x128xf32>
    %244 = arith.addf %197, %243 : vector<8x128xf32>
    %245 = vector.broadcast %192 : vector<1x128xf32> to vector<8x128xf32>
    %246 = arith.addf %244, %245 : vector<8x128xf32>
    %247 = vector.extract_strided_slice %246 {offsets = [0, 0], sizes = [8, 96], strides = [1, 1]} : vector<8x128xf32> to vector<8x96xf32>
    %248 = arith.negf %247 : vector<8x96xf32>
    %249 = math.exp %248 : vector<8x96xf32>
    %cst_51 = arith.constant 1.000000e+00 : f32
    %250 = vector.broadcast %cst_51 : f32 to vector<8x96xf32>
    %251 = arith.addf %250, %249 : vector<8x96xf32>
    %252 = arith.divf %250, %251 : vector<8x96xf32>
    %253 = vector.extract_strided_slice %246 {offsets = [0, 96], sizes = [8, 32], strides = [1, 1]} : vector<8x128xf32> to vector<8x32xf32>
    %254 = math.tanh %253 : vector<8x32xf32>
    %255 = vector.extract_strided_slice %252 {offsets = [0, 32], sizes = [8, 32], strides = [1, 1]} : vector<8x96xf32> to vector<8x32xf32>
    %256 = arith.mulf %255, %239 : vector<8x32xf32>
    %257 = vector.extract_strided_slice %252 {offsets = [0, 0], sizes = [8, 32], strides = [1, 1]} : vector<8x96xf32> to vector<8x32xf32>
    %258 = arith.mulf %257, %254 : vector<8x32xf32>
    %259 = arith.addf %256, %258 : vector<8x32xf32>
    %260 = vector.extract_strided_slice %252 {offsets = [0, 64], sizes = [8, 32], strides = [1, 1]} : vector<8x96xf32> to vector<8x32xf32>
    %261 = math.tanh %259 : vector<8x32xf32>
    %262 = arith.mulf %260, %261 : vector<8x32xf32>
    %cst_52 = arith.constant dense<0.000000e+00> : vector<8x128xf32>
    %263 = tpu.matmul %262, %191, %cst_52 {dimension_numbers = #tpu.dot_dimension_numbers<[1], [0], [0], [1], [0, 0, 1, 1], [], []>} : vector<8x32xf32>, vector<32x128xf32>, vector<8x128xf32> -> vector<8x128xf32>
    %264 = arith.addf %198, %263 : vector<8x128xf32>
    %265 = vector.broadcast %192 : vector<1x128xf32> to vector<8x128xf32>
    %266 = arith.addf %264, %265 : vector<8x128xf32>
    %267 = vector.extract_strided_slice %266 {offsets = [0, 0], sizes = [8, 96], strides = [1, 1]} : vector<8x128xf32> to vector<8x96xf32>
    %268 = arith.negf %267 : vector<8x96xf32>
    %269 = math.exp %268 : vector<8x96xf32>
    %cst_53 = arith.constant 1.000000e+00 : f32
    %270 = vector.broadcast %cst_53 : f32 to vector<8x96xf32>
    %271 = arith.addf %270, %269 : vector<8x96xf32>
    %272 = arith.divf %270, %271 : vector<8x96xf32>
    %273 = vector.extract_strided_slice %266 {offsets = [0, 96], sizes = [8, 32], strides = [1, 1]} : vector<8x128xf32> to vector<8x32xf32>
    %274 = math.tanh %273 : vector<8x32xf32>
    %275 = vector.extract_strided_slice %272 {offsets = [0, 32], sizes = [8, 32], strides = [1, 1]} : vector<8x96xf32> to vector<8x32xf32>
    %276 = arith.mulf %275, %259 : vector<8x32xf32>
    %277 = vector.extract_strided_slice %272 {offsets = [0, 0], sizes = [8, 32], strides = [1, 1]} : vector<8x96xf32> to vector<8x32xf32>
    %278 = arith.mulf %277, %274 : vector<8x32xf32>
    %279 = arith.addf %276, %278 : vector<8x32xf32>
    %280 = vector.extract_strided_slice %272 {offsets = [0, 64], sizes = [8, 32], strides = [1, 1]} : vector<8x96xf32> to vector<8x32xf32>
    %281 = math.tanh %279 : vector<8x32xf32>
    %282 = arith.mulf %280, %281 : vector<8x32xf32>
    %cst_54 = arith.constant dense<0.000000e+00> : vector<8x128xf32>
    %283 = tpu.matmul %282, %191, %cst_54 {dimension_numbers = #tpu.dot_dimension_numbers<[1], [0], [0], [1], [0, 0, 1, 1], [], []>} : vector<8x32xf32>, vector<32x128xf32>, vector<8x128xf32> -> vector<8x128xf32>
    %284 = arith.addf %199, %283 : vector<8x128xf32>
    %285 = vector.broadcast %192 : vector<1x128xf32> to vector<8x128xf32>
    %286 = arith.addf %284, %285 : vector<8x128xf32>
    %287 = vector.extract_strided_slice %286 {offsets = [0, 0], sizes = [8, 96], strides = [1, 1]} : vector<8x128xf32> to vector<8x96xf32>
    %288 = arith.negf %287 : vector<8x96xf32>
    %289 = math.exp %288 : vector<8x96xf32>
    %cst_55 = arith.constant 1.000000e+00 : f32
    %290 = vector.broadcast %cst_55 : f32 to vector<8x96xf32>
    %291 = arith.addf %290, %289 : vector<8x96xf32>
    %292 = arith.divf %290, %291 : vector<8x96xf32>
    %293 = vector.extract_strided_slice %286 {offsets = [0, 96], sizes = [8, 32], strides = [1, 1]} : vector<8x128xf32> to vector<8x32xf32>
    %294 = math.tanh %293 : vector<8x32xf32>
    %295 = vector.extract_strided_slice %292 {offsets = [0, 32], sizes = [8, 32], strides = [1, 1]} : vector<8x96xf32> to vector<8x32xf32>
    %296 = arith.mulf %295, %279 : vector<8x32xf32>
    %297 = vector.extract_strided_slice %292 {offsets = [0, 0], sizes = [8, 32], strides = [1, 1]} : vector<8x96xf32> to vector<8x32xf32>
    %298 = arith.mulf %297, %294 : vector<8x32xf32>
    %299 = arith.addf %296, %298 : vector<8x32xf32>
    %300 = vector.extract_strided_slice %292 {offsets = [0, 64], sizes = [8, 32], strides = [1, 1]} : vector<8x96xf32> to vector<8x32xf32>
    %301 = math.tanh %299 : vector<8x32xf32>
    %302 = arith.mulf %300, %301 : vector<8x32xf32>
    %cst_56 = arith.constant dense<0.000000e+00> : vector<8x128xf32>
    %303 = tpu.matmul %302, %191, %cst_56 {dimension_numbers = #tpu.dot_dimension_numbers<[1], [0], [0], [1], [0, 0, 1, 1], [], []>} : vector<8x32xf32>, vector<32x128xf32>, vector<8x128xf32> -> vector<8x128xf32>
    %304 = arith.addf %200, %303 : vector<8x128xf32>
    %305 = vector.broadcast %192 : vector<1x128xf32> to vector<8x128xf32>
    %306 = arith.addf %304, %305 : vector<8x128xf32>
    %307 = vector.extract_strided_slice %306 {offsets = [0, 0], sizes = [8, 96], strides = [1, 1]} : vector<8x128xf32> to vector<8x96xf32>
    %308 = arith.negf %307 : vector<8x96xf32>
    %309 = math.exp %308 : vector<8x96xf32>
    %cst_57 = arith.constant 1.000000e+00 : f32
    %310 = vector.broadcast %cst_57 : f32 to vector<8x96xf32>
    %311 = arith.addf %310, %309 : vector<8x96xf32>
    %312 = arith.divf %310, %311 : vector<8x96xf32>
    %313 = vector.extract_strided_slice %306 {offsets = [0, 96], sizes = [8, 32], strides = [1, 1]} : vector<8x128xf32> to vector<8x32xf32>
    %314 = math.tanh %313 : vector<8x32xf32>
    %315 = vector.extract_strided_slice %312 {offsets = [0, 32], sizes = [8, 32], strides = [1, 1]} : vector<8x96xf32> to vector<8x32xf32>
    %316 = arith.mulf %315, %299 : vector<8x32xf32>
    %317 = vector.extract_strided_slice %312 {offsets = [0, 0], sizes = [8, 32], strides = [1, 1]} : vector<8x96xf32> to vector<8x32xf32>
    %318 = arith.mulf %317, %314 : vector<8x32xf32>
    %319 = arith.addf %316, %318 : vector<8x32xf32>
    %320 = vector.extract_strided_slice %312 {offsets = [0, 64], sizes = [8, 32], strides = [1, 1]} : vector<8x96xf32> to vector<8x32xf32>
    %321 = math.tanh %319 : vector<8x32xf32>
    %322 = arith.mulf %320, %321 : vector<8x32xf32>
    %cst_58 = arith.constant dense<0.000000e+00> : vector<8x128xf32>
    %323 = tpu.matmul %322, %191, %cst_58 {dimension_numbers = #tpu.dot_dimension_numbers<[1], [0], [0], [1], [0, 0, 1, 1], [], []>} : vector<8x32xf32>, vector<32x128xf32>, vector<8x128xf32> -> vector<8x128xf32>
    %324 = arith.addf %201, %323 : vector<8x128xf32>
    %325 = vector.broadcast %192 : vector<1x128xf32> to vector<8x128xf32>
    %326 = arith.addf %324, %325 : vector<8x128xf32>
    %327 = vector.extract_strided_slice %326 {offsets = [0, 0], sizes = [8, 96], strides = [1, 1]} : vector<8x128xf32> to vector<8x96xf32>
    %328 = arith.negf %327 : vector<8x96xf32>
    %329 = math.exp %328 : vector<8x96xf32>
    %cst_59 = arith.constant 1.000000e+00 : f32
    %330 = vector.broadcast %cst_59 : f32 to vector<8x96xf32>
    %331 = arith.addf %330, %329 : vector<8x96xf32>
    %332 = arith.divf %330, %331 : vector<8x96xf32>
    %333 = vector.extract_strided_slice %326 {offsets = [0, 96], sizes = [8, 32], strides = [1, 1]} : vector<8x128xf32> to vector<8x32xf32>
    %334 = math.tanh %333 : vector<8x32xf32>
    %335 = vector.extract_strided_slice %332 {offsets = [0, 32], sizes = [8, 32], strides = [1, 1]} : vector<8x96xf32> to vector<8x32xf32>
    %336 = arith.mulf %335, %319 : vector<8x32xf32>
    %337 = vector.extract_strided_slice %332 {offsets = [0, 0], sizes = [8, 32], strides = [1, 1]} : vector<8x96xf32> to vector<8x32xf32>
    %338 = arith.mulf %337, %334 : vector<8x32xf32>
    %339 = arith.addf %336, %338 : vector<8x32xf32>
    %340 = vector.extract_strided_slice %332 {offsets = [0, 64], sizes = [8, 32], strides = [1, 1]} : vector<8x96xf32> to vector<8x32xf32>
    %341 = math.tanh %339 : vector<8x32xf32>
    %342 = arith.mulf %340, %341 : vector<8x32xf32>
    %cst_60 = arith.constant dense<0.000000e+00> : vector<8x128xf32>
    %343 = tpu.matmul %342, %191, %cst_60 {dimension_numbers = #tpu.dot_dimension_numbers<[1], [0], [0], [1], [0, 0, 1, 1], [], []>} : vector<8x32xf32>, vector<32x128xf32>, vector<8x128xf32> -> vector<8x128xf32>
    %344 = arith.addf %202, %343 : vector<8x128xf32>
    %345 = vector.broadcast %192 : vector<1x128xf32> to vector<8x128xf32>
    %346 = arith.addf %344, %345 : vector<8x128xf32>
    %347 = vector.extract_strided_slice %346 {offsets = [0, 0], sizes = [8, 96], strides = [1, 1]} : vector<8x128xf32> to vector<8x96xf32>
    %348 = arith.negf %347 : vector<8x96xf32>
    %349 = math.exp %348 : vector<8x96xf32>
    %cst_61 = arith.constant 1.000000e+00 : f32
    %350 = vector.broadcast %cst_61 : f32 to vector<8x96xf32>
    %351 = arith.addf %350, %349 : vector<8x96xf32>
    %352 = arith.divf %350, %351 : vector<8x96xf32>
    %353 = vector.extract_strided_slice %346 {offsets = [0, 96], sizes = [8, 32], strides = [1, 1]} : vector<8x128xf32> to vector<8x32xf32>
    %354 = math.tanh %353 : vector<8x32xf32>
    %355 = vector.extract_strided_slice %352 {offsets = [0, 32], sizes = [8, 32], strides = [1, 1]} : vector<8x96xf32> to vector<8x32xf32>
    %356 = arith.mulf %355, %339 : vector<8x32xf32>
    %357 = vector.extract_strided_slice %352 {offsets = [0, 0], sizes = [8, 32], strides = [1, 1]} : vector<8x96xf32> to vector<8x32xf32>
    %358 = arith.mulf %357, %354 : vector<8x32xf32>
    %359 = arith.addf %356, %358 : vector<8x32xf32>
    %360 = vector.extract_strided_slice %352 {offsets = [0, 64], sizes = [8, 32], strides = [1, 1]} : vector<8x96xf32> to vector<8x32xf32>
    %361 = math.tanh %359 : vector<8x32xf32>
    %362 = arith.mulf %360, %361 : vector<8x32xf32>
    %c0_62 = arith.constant 0 : index
    %c0_63 = arith.constant 0 : index
    %363 = vector.load %arg8[%c0_62, %c0_63] : memref<32x32xf32, #tpu.memory_space<vmem>>, vector<32x32xf32>
    %cst_64 = arith.constant dense<0.000000e+00> : vector<8x32xf32>
    %364 = tpu.matmul %362, %363, %cst_64 {dimension_numbers = #tpu.dot_dimension_numbers<[1], [0], [0], [1], [0, 0, 1, 1], [], []>} : vector<8x32xf32>, vector<32x32xf32>, vector<8x32xf32> -> vector<8x32xf32>
    %c0_65 = arith.constant 0 : index
    %c0_66 = arith.constant 0 : index
    %365 = vector.load %arg9[%c0_65, %c0_66] : memref<1x32xf32, #tpu.memory_space<vmem>>, vector<1x32xf32>
    %366 = vector.broadcast %365 : vector<1x32xf32> to vector<8x32xf32>
    %367 = arith.addf %364, %366 : vector<8x32xf32>
    %368 = math.tanh %367 : vector<8x32xf32>
    %c0_67 = arith.constant 0 : index
    %c0_68 = arith.constant 0 : index
    %369 = vector.load %arg10[%c0_67, %c0_68] : memref<32x64xf32, #tpu.memory_space<vmem>>, vector<32x64xf32>
    %cst_69 = arith.constant dense<0.000000e+00> : vector<8x64xf32>
    %370 = tpu.matmul %368, %369, %cst_69 {dimension_numbers = #tpu.dot_dimension_numbers<[1], [0], [0], [1], [0, 0, 1, 1], [], []>} : vector<8x32xf32>, vector<32x64xf32>, vector<8x64xf32> -> vector<8x64xf32>
    %c0_70 = arith.constant 0 : index
    %c0_71 = arith.constant 0 : index
    %371 = vector.load %arg11[%c0_70, %c0_71] : memref<1x64xf32, #tpu.memory_space<vmem>>, vector<1x64xf32>
    %372 = vector.broadcast %371 : vector<1x64xf32> to vector<8x64xf32>
    %373 = arith.addf %370, %372 : vector<8x64xf32>
    %374 = math.tanh %373 : vector<8x64xf32>
    %375 = vector.extract_strided_slice %374 {offsets = [0, 0], sizes = [8, 32], strides = [1, 1]} : vector<8x64xf32> to vector<8x32xf32>
    %376 = vector.extract_strided_slice %374 {offsets = [0, 32], sizes = [8, 32], strides = [1, 1]} : vector<8x64xf32> to vector<8x32xf32>
    %c0_72 = arith.constant 0 : index
    %c0_73 = arith.constant 0 : index
    %377 = vector.load %arg12[%c0_72, %c0_73] : memref<32x128xf32, #tpu.memory_space<vmem>>, vector<32x128xf32>
    %cst_74 = arith.constant dense<0.000000e+00> : vector<8x128xf32>
    %378 = tpu.matmul %368, %377, %cst_74 {dimension_numbers = #tpu.dot_dimension_numbers<[1], [0], [0], [1], [0, 0, 1, 1], [], []>} : vector<8x32xf32>, vector<32x128xf32>, vector<8x128xf32> -> vector<8x128xf32>
    %c0_75 = arith.constant 0 : index
    %c0_76 = arith.constant 0 : index
    %379 = vector.load %arg1[%c0_75, %c0_76] : memref<1x5xf32, #tpu.memory_space<vmem>>, vector<1x5xf32>
    %380 = vector.shape_cast %379 : vector<1x5xf32> to vector<1x5xf32>
    %381 = vector.broadcast %380 : vector<1x5xf32> to vector<8x5xf32>
    %382 = tpu.concatenate %381, %2, %4, %6, %8, %10, %12, %14, %16 in 0 : vector<8x5xf32>, vector<8x5xf32>, vector<8x5xf32>, vector<8x5xf32>, vector<8x5xf32>, vector<8x5xf32>, vector<8x5xf32>, vector<8x5xf32>, vector<8x5xf32> -> vector<72x5xf32>
    %c0_77 = arith.constant 0 : index
    %c0_78 = arith.constant 0 : index
    %383 = vector.load %arg13[%c0_77, %c0_78] : memref<5x128xf32, #tpu.memory_space<vmem>>, vector<5x128xf32>
    %cst_79 = arith.constant dense<0.000000e+00> : vector<72x128xf32>
    %384 = tpu.matmul %382, %383, %cst_79 {dimension_numbers = #tpu.dot_dimension_numbers<[1], [0], [0], [1], [0, 0, 1, 1], [], []>} : vector<72x5xf32>, vector<5x128xf32>, vector<72x128xf32> -> vector<72x128xf32>
    %385 = vector.extract_strided_slice %384 {offsets = [0, 0], sizes = [8, 128], strides = [1, 1]} : vector<72x128xf32> to vector<8x128xf32>
    %386 = arith.addf %378, %385 : vector<8x128xf32>
    %387 = vector.extract_strided_slice %384 {offsets = [8, 0], sizes = [8, 128], strides = [1, 1]} : vector<72x128xf32> to vector<8x128xf32>
    %388 = arith.addf %378, %387 : vector<8x128xf32>
    %389 = vector.extract_strided_slice %384 {offsets = [16, 0], sizes = [8, 128], strides = [1, 1]} : vector<72x128xf32> to vector<8x128xf32>
    %390 = arith.addf %378, %389 : vector<8x128xf32>
    %391 = vector.extract_strided_slice %384 {offsets = [24, 0], sizes = [8, 128], strides = [1, 1]} : vector<72x128xf32> to vector<8x128xf32>
    %392 = arith.addf %378, %391 : vector<8x128xf32>
    %393 = vector.extract_strided_slice %384 {offsets = [32, 0], sizes = [8, 128], strides = [1, 1]} : vector<72x128xf32> to vector<8x128xf32>
    %394 = arith.addf %378, %393 : vector<8x128xf32>
    %395 = vector.extract_strided_slice %384 {offsets = [40, 0], sizes = [8, 128], strides = [1, 1]} : vector<72x128xf32> to vector<8x128xf32>
    %396 = arith.addf %378, %395 : vector<8x128xf32>
    %397 = vector.extract_strided_slice %384 {offsets = [48, 0], sizes = [8, 128], strides = [1, 1]} : vector<72x128xf32> to vector<8x128xf32>
    %398 = arith.addf %378, %397 : vector<8x128xf32>
    %399 = vector.extract_strided_slice %384 {offsets = [56, 0], sizes = [8, 128], strides = [1, 1]} : vector<72x128xf32> to vector<8x128xf32>
    %400 = arith.addf %378, %399 : vector<8x128xf32>
    %401 = vector.extract_strided_slice %384 {offsets = [64, 0], sizes = [8, 128], strides = [1, 1]} : vector<72x128xf32> to vector<8x128xf32>
    %402 = arith.addf %378, %401 : vector<8x128xf32>
    %c0_80 = arith.constant 0 : index
    %c0_81 = arith.constant 0 : index
    %403 = vector.load %arg14[%c0_80, %c0_81] : memref<32x128xf32, #tpu.memory_space<vmem>>, vector<32x128xf32>
    %c0_82 = arith.constant 0 : index
    %c0_83 = arith.constant 0 : index
    %404 = vector.load %arg15[%c0_82, %c0_83] : memref<1x128xf32, #tpu.memory_space<vmem>>, vector<1x128xf32>
    %cst_84 = arith.constant dense<0.000000e+00> : vector<8x128xf32>
    %405 = tpu.matmul %375, %403, %cst_84 {dimension_numbers = #tpu.dot_dimension_numbers<[1], [0], [0], [1], [0, 0, 1, 1], [], []>} : vector<8x32xf32>, vector<32x128xf32>, vector<8x128xf32> -> vector<8x128xf32>
    %406 = arith.addf %386, %405 : vector<8x128xf32>
    %407 = vector.broadcast %404 : vector<1x128xf32> to vector<8x128xf32>
    %408 = arith.addf %406, %407 : vector<8x128xf32>
    %409 = vector.extract_strided_slice %408 {offsets = [0, 0], sizes = [8, 96], strides = [1, 1]} : vector<8x128xf32> to vector<8x96xf32>
    %410 = arith.negf %409 : vector<8x96xf32>
    %411 = math.exp %410 : vector<8x96xf32>
    %cst_85 = arith.constant 1.000000e+00 : f32
    %412 = vector.broadcast %cst_85 : f32 to vector<8x96xf32>
    %413 = arith.addf %412, %411 : vector<8x96xf32>
    %414 = arith.divf %412, %413 : vector<8x96xf32>
    %415 = vector.extract_strided_slice %408 {offsets = [0, 96], sizes = [8, 32], strides = [1, 1]} : vector<8x128xf32> to vector<8x32xf32>
    %416 = math.tanh %415 : vector<8x32xf32>
    %417 = vector.extract_strided_slice %414 {offsets = [0, 32], sizes = [8, 32], strides = [1, 1]} : vector<8x96xf32> to vector<8x32xf32>
    %418 = arith.mulf %417, %376 : vector<8x32xf32>
    %419 = vector.extract_strided_slice %414 {offsets = [0, 0], sizes = [8, 32], strides = [1, 1]} : vector<8x96xf32> to vector<8x32xf32>
    %420 = arith.mulf %419, %416 : vector<8x32xf32>
    %421 = arith.addf %418, %420 : vector<8x32xf32>
    %422 = vector.extract_strided_slice %414 {offsets = [0, 64], sizes = [8, 32], strides = [1, 1]} : vector<8x96xf32> to vector<8x32xf32>
    %423 = math.tanh %421 : vector<8x32xf32>
    %424 = arith.mulf %422, %423 : vector<8x32xf32>
    %cst_86 = arith.constant dense<0.000000e+00> : vector<8x128xf32>
    %425 = tpu.matmul %424, %403, %cst_86 {dimension_numbers = #tpu.dot_dimension_numbers<[1], [0], [0], [1], [0, 0, 1, 1], [], []>} : vector<8x32xf32>, vector<32x128xf32>, vector<8x128xf32> -> vector<8x128xf32>
    %426 = arith.addf %388, %425 : vector<8x128xf32>
    %427 = vector.broadcast %404 : vector<1x128xf32> to vector<8x128xf32>
    %428 = arith.addf %426, %427 : vector<8x128xf32>
    %429 = vector.extract_strided_slice %428 {offsets = [0, 0], sizes = [8, 96], strides = [1, 1]} : vector<8x128xf32> to vector<8x96xf32>
    %430 = arith.negf %429 : vector<8x96xf32>
    %431 = math.exp %430 : vector<8x96xf32>
    %cst_87 = arith.constant 1.000000e+00 : f32
    %432 = vector.broadcast %cst_87 : f32 to vector<8x96xf32>
    %433 = arith.addf %432, %431 : vector<8x96xf32>
    %434 = arith.divf %432, %433 : vector<8x96xf32>
    %435 = vector.extract_strided_slice %428 {offsets = [0, 96], sizes = [8, 32], strides = [1, 1]} : vector<8x128xf32> to vector<8x32xf32>
    %436 = math.tanh %435 : vector<8x32xf32>
    %437 = vector.extract_strided_slice %434 {offsets = [0, 32], sizes = [8, 32], strides = [1, 1]} : vector<8x96xf32> to vector<8x32xf32>
    %438 = arith.mulf %437, %421 : vector<8x32xf32>
    %439 = vector.extract_strided_slice %434 {offsets = [0, 0], sizes = [8, 32], strides = [1, 1]} : vector<8x96xf32> to vector<8x32xf32>
    %440 = arith.mulf %439, %436 : vector<8x32xf32>
    %441 = arith.addf %438, %440 : vector<8x32xf32>
    %442 = vector.extract_strided_slice %434 {offsets = [0, 64], sizes = [8, 32], strides = [1, 1]} : vector<8x96xf32> to vector<8x32xf32>
    %443 = math.tanh %441 : vector<8x32xf32>
    %444 = arith.mulf %442, %443 : vector<8x32xf32>
    %cst_88 = arith.constant dense<0.000000e+00> : vector<8x128xf32>
    %445 = tpu.matmul %444, %403, %cst_88 {dimension_numbers = #tpu.dot_dimension_numbers<[1], [0], [0], [1], [0, 0, 1, 1], [], []>} : vector<8x32xf32>, vector<32x128xf32>, vector<8x128xf32> -> vector<8x128xf32>
    %446 = arith.addf %390, %445 : vector<8x128xf32>
    %447 = vector.broadcast %404 : vector<1x128xf32> to vector<8x128xf32>
    %448 = arith.addf %446, %447 : vector<8x128xf32>
    %449 = vector.extract_strided_slice %448 {offsets = [0, 0], sizes = [8, 96], strides = [1, 1]} : vector<8x128xf32> to vector<8x96xf32>
    %450 = arith.negf %449 : vector<8x96xf32>
    %451 = math.exp %450 : vector<8x96xf32>
    %cst_89 = arith.constant 1.000000e+00 : f32
    %452 = vector.broadcast %cst_89 : f32 to vector<8x96xf32>
    %453 = arith.addf %452, %451 : vector<8x96xf32>
    %454 = arith.divf %452, %453 : vector<8x96xf32>
    %455 = vector.extract_strided_slice %448 {offsets = [0, 96], sizes = [8, 32], strides = [1, 1]} : vector<8x128xf32> to vector<8x32xf32>
    %456 = math.tanh %455 : vector<8x32xf32>
    %457 = vector.extract_strided_slice %454 {offsets = [0, 32], sizes = [8, 32], strides = [1, 1]} : vector<8x96xf32> to vector<8x32xf32>
    %458 = arith.mulf %457, %441 : vector<8x32xf32>
    %459 = vector.extract_strided_slice %454 {offsets = [0, 0], sizes = [8, 32], strides = [1, 1]} : vector<8x96xf32> to vector<8x32xf32>
    %460 = arith.mulf %459, %456 : vector<8x32xf32>
    %461 = arith.addf %458, %460 : vector<8x32xf32>
    %462 = vector.extract_strided_slice %454 {offsets = [0, 64], sizes = [8, 32], strides = [1, 1]} : vector<8x96xf32> to vector<8x32xf32>
    %463 = math.tanh %461 : vector<8x32xf32>
    %464 = arith.mulf %462, %463 : vector<8x32xf32>
    %cst_90 = arith.constant dense<0.000000e+00> : vector<8x128xf32>
    %465 = tpu.matmul %464, %403, %cst_90 {dimension_numbers = #tpu.dot_dimension_numbers<[1], [0], [0], [1], [0, 0, 1, 1], [], []>} : vector<8x32xf32>, vector<32x128xf32>, vector<8x128xf32> -> vector<8x128xf32>
    %466 = arith.addf %392, %465 : vector<8x128xf32>
    %467 = vector.broadcast %404 : vector<1x128xf32> to vector<8x128xf32>
    %468 = arith.addf %466, %467 : vector<8x128xf32>
    %469 = vector.extract_strided_slice %468 {offsets = [0, 0], sizes = [8, 96], strides = [1, 1]} : vector<8x128xf32> to vector<8x96xf32>
    %470 = arith.negf %469 : vector<8x96xf32>
    %471 = math.exp %470 : vector<8x96xf32>
    %cst_91 = arith.constant 1.000000e+00 : f32
    %472 = vector.broadcast %cst_91 : f32 to vector<8x96xf32>
    %473 = arith.addf %472, %471 : vector<8x96xf32>
    %474 = arith.divf %472, %473 : vector<8x96xf32>
    %475 = vector.extract_strided_slice %468 {offsets = [0, 96], sizes = [8, 32], strides = [1, 1]} : vector<8x128xf32> to vector<8x32xf32>
    %476 = math.tanh %475 : vector<8x32xf32>
    %477 = vector.extract_strided_slice %474 {offsets = [0, 32], sizes = [8, 32], strides = [1, 1]} : vector<8x96xf32> to vector<8x32xf32>
    %478 = arith.mulf %477, %461 : vector<8x32xf32>
    %479 = vector.extract_strided_slice %474 {offsets = [0, 0], sizes = [8, 32], strides = [1, 1]} : vector<8x96xf32> to vector<8x32xf32>
    %480 = arith.mulf %479, %476 : vector<8x32xf32>
    %481 = arith.addf %478, %480 : vector<8x32xf32>
    %482 = vector.extract_strided_slice %474 {offsets = [0, 64], sizes = [8, 32], strides = [1, 1]} : vector<8x96xf32> to vector<8x32xf32>
    %483 = math.tanh %481 : vector<8x32xf32>
    %484 = arith.mulf %482, %483 : vector<8x32xf32>
    %cst_92 = arith.constant dense<0.000000e+00> : vector<8x128xf32>
    %485 = tpu.matmul %484, %403, %cst_92 {dimension_numbers = #tpu.dot_dimension_numbers<[1], [0], [0], [1], [0, 0, 1, 1], [], []>} : vector<8x32xf32>, vector<32x128xf32>, vector<8x128xf32> -> vector<8x128xf32>
    %486 = arith.addf %394, %485 : vector<8x128xf32>
    %487 = vector.broadcast %404 : vector<1x128xf32> to vector<8x128xf32>
    %488 = arith.addf %486, %487 : vector<8x128xf32>
    %489 = vector.extract_strided_slice %488 {offsets = [0, 0], sizes = [8, 96], strides = [1, 1]} : vector<8x128xf32> to vector<8x96xf32>
    %490 = arith.negf %489 : vector<8x96xf32>
    %491 = math.exp %490 : vector<8x96xf32>
    %cst_93 = arith.constant 1.000000e+00 : f32
    %492 = vector.broadcast %cst_93 : f32 to vector<8x96xf32>
    %493 = arith.addf %492, %491 : vector<8x96xf32>
    %494 = arith.divf %492, %493 : vector<8x96xf32>
    %495 = vector.extract_strided_slice %488 {offsets = [0, 96], sizes = [8, 32], strides = [1, 1]} : vector<8x128xf32> to vector<8x32xf32>
    %496 = math.tanh %495 : vector<8x32xf32>
    %497 = vector.extract_strided_slice %494 {offsets = [0, 32], sizes = [8, 32], strides = [1, 1]} : vector<8x96xf32> to vector<8x32xf32>
    %498 = arith.mulf %497, %481 : vector<8x32xf32>
    %499 = vector.extract_strided_slice %494 {offsets = [0, 0], sizes = [8, 32], strides = [1, 1]} : vector<8x96xf32> to vector<8x32xf32>
    %500 = arith.mulf %499, %496 : vector<8x32xf32>
    %501 = arith.addf %498, %500 : vector<8x32xf32>
    %502 = vector.extract_strided_slice %494 {offsets = [0, 64], sizes = [8, 32], strides = [1, 1]} : vector<8x96xf32> to vector<8x32xf32>
    %503 = math.tanh %501 : vector<8x32xf32>
    %504 = arith.mulf %502, %503 : vector<8x32xf32>
    %cst_94 = arith.constant dense<0.000000e+00> : vector<8x128xf32>
    %505 = tpu.matmul %504, %403, %cst_94 {dimension_numbers = #tpu.dot_dimension_numbers<[1], [0], [0], [1], [0, 0, 1, 1], [], []>} : vector<8x32xf32>, vector<32x128xf32>, vector<8x128xf32> -> vector<8x128xf32>
    %506 = arith.addf %396, %505 : vector<8x128xf32>
    %507 = vector.broadcast %404 : vector<1x128xf32> to vector<8x128xf32>
    %508 = arith.addf %506, %507 : vector<8x128xf32>
    %509 = vector.extract_strided_slice %508 {offsets = [0, 0], sizes = [8, 96], strides = [1, 1]} : vector<8x128xf32> to vector<8x96xf32>
    %510 = arith.negf %509 : vector<8x96xf32>
    %511 = math.exp %510 : vector<8x96xf32>
    %cst_95 = arith.constant 1.000000e+00 : f32
    %512 = vector.broadcast %cst_95 : f32 to vector<8x96xf32>
    %513 = arith.addf %512, %511 : vector<8x96xf32>
    %514 = arith.divf %512, %513 : vector<8x96xf32>
    %515 = vector.extract_strided_slice %508 {offsets = [0, 96], sizes = [8, 32], strides = [1, 1]} : vector<8x128xf32> to vector<8x32xf32>
    %516 = math.tanh %515 : vector<8x32xf32>
    %517 = vector.extract_strided_slice %514 {offsets = [0, 32], sizes = [8, 32], strides = [1, 1]} : vector<8x96xf32> to vector<8x32xf32>
    %518 = arith.mulf %517, %501 : vector<8x32xf32>
    %519 = vector.extract_strided_slice %514 {offsets = [0, 0], sizes = [8, 32], strides = [1, 1]} : vector<8x96xf32> to vector<8x32xf32>
    %520 = arith.mulf %519, %516 : vector<8x32xf32>
    %521 = arith.addf %518, %520 : vector<8x32xf32>
    %522 = vector.extract_strided_slice %514 {offsets = [0, 64], sizes = [8, 32], strides = [1, 1]} : vector<8x96xf32> to vector<8x32xf32>
    %523 = math.tanh %521 : vector<8x32xf32>
    %524 = arith.mulf %522, %523 : vector<8x32xf32>
    %cst_96 = arith.constant dense<0.000000e+00> : vector<8x128xf32>
    %525 = tpu.matmul %524, %403, %cst_96 {dimension_numbers = #tpu.dot_dimension_numbers<[1], [0], [0], [1], [0, 0, 1, 1], [], []>} : vector<8x32xf32>, vector<32x128xf32>, vector<8x128xf32> -> vector<8x128xf32>
    %526 = arith.addf %398, %525 : vector<8x128xf32>
    %527 = vector.broadcast %404 : vector<1x128xf32> to vector<8x128xf32>
    %528 = arith.addf %526, %527 : vector<8x128xf32>
    %529 = vector.extract_strided_slice %528 {offsets = [0, 0], sizes = [8, 96], strides = [1, 1]} : vector<8x128xf32> to vector<8x96xf32>
    %530 = arith.negf %529 : vector<8x96xf32>
    %531 = math.exp %530 : vector<8x96xf32>
    %cst_97 = arith.constant 1.000000e+00 : f32
    %532 = vector.broadcast %cst_97 : f32 to vector<8x96xf32>
    %533 = arith.addf %532, %531 : vector<8x96xf32>
    %534 = arith.divf %532, %533 : vector<8x96xf32>
    %535 = vector.extract_strided_slice %528 {offsets = [0, 96], sizes = [8, 32], strides = [1, 1]} : vector<8x128xf32> to vector<8x32xf32>
    %536 = math.tanh %535 : vector<8x32xf32>
    %537 = vector.extract_strided_slice %534 {offsets = [0, 32], sizes = [8, 32], strides = [1, 1]} : vector<8x96xf32> to vector<8x32xf32>
    %538 = arith.mulf %537, %521 : vector<8x32xf32>
    %539 = vector.extract_strided_slice %534 {offsets = [0, 0], sizes = [8, 32], strides = [1, 1]} : vector<8x96xf32> to vector<8x32xf32>
    %540 = arith.mulf %539, %536 : vector<8x32xf32>
    %541 = arith.addf %538, %540 : vector<8x32xf32>
    %542 = vector.extract_strided_slice %534 {offsets = [0, 64], sizes = [8, 32], strides = [1, 1]} : vector<8x96xf32> to vector<8x32xf32>
    %543 = math.tanh %541 : vector<8x32xf32>
    %544 = arith.mulf %542, %543 : vector<8x32xf32>
    %cst_98 = arith.constant dense<0.000000e+00> : vector<8x128xf32>
    %545 = tpu.matmul %544, %403, %cst_98 {dimension_numbers = #tpu.dot_dimension_numbers<[1], [0], [0], [1], [0, 0, 1, 1], [], []>} : vector<8x32xf32>, vector<32x128xf32>, vector<8x128xf32> -> vector<8x128xf32>
    %546 = arith.addf %400, %545 : vector<8x128xf32>
    %547 = vector.broadcast %404 : vector<1x128xf32> to vector<8x128xf32>
    %548 = arith.addf %546, %547 : vector<8x128xf32>
    %549 = vector.extract_strided_slice %548 {offsets = [0, 0], sizes = [8, 96], strides = [1, 1]} : vector<8x128xf32> to vector<8x96xf32>
    %550 = arith.negf %549 : vector<8x96xf32>
    %551 = math.exp %550 : vector<8x96xf32>
    %cst_99 = arith.constant 1.000000e+00 : f32
    %552 = vector.broadcast %cst_99 : f32 to vector<8x96xf32>
    %553 = arith.addf %552, %551 : vector<8x96xf32>
    %554 = arith.divf %552, %553 : vector<8x96xf32>
    %555 = vector.extract_strided_slice %548 {offsets = [0, 96], sizes = [8, 32], strides = [1, 1]} : vector<8x128xf32> to vector<8x32xf32>
    %556 = math.tanh %555 : vector<8x32xf32>
    %557 = vector.extract_strided_slice %554 {offsets = [0, 32], sizes = [8, 32], strides = [1, 1]} : vector<8x96xf32> to vector<8x32xf32>
    %558 = arith.mulf %557, %541 : vector<8x32xf32>
    %559 = vector.extract_strided_slice %554 {offsets = [0, 0], sizes = [8, 32], strides = [1, 1]} : vector<8x96xf32> to vector<8x32xf32>
    %560 = arith.mulf %559, %556 : vector<8x32xf32>
    %561 = arith.addf %558, %560 : vector<8x32xf32>
    %562 = vector.extract_strided_slice %554 {offsets = [0, 64], sizes = [8, 32], strides = [1, 1]} : vector<8x96xf32> to vector<8x32xf32>
    %563 = math.tanh %561 : vector<8x32xf32>
    %564 = arith.mulf %562, %563 : vector<8x32xf32>
    %cst_100 = arith.constant dense<0.000000e+00> : vector<8x128xf32>
    %565 = tpu.matmul %564, %403, %cst_100 {dimension_numbers = #tpu.dot_dimension_numbers<[1], [0], [0], [1], [0, 0, 1, 1], [], []>} : vector<8x32xf32>, vector<32x128xf32>, vector<8x128xf32> -> vector<8x128xf32>
    %566 = arith.addf %402, %565 : vector<8x128xf32>
    %567 = vector.broadcast %404 : vector<1x128xf32> to vector<8x128xf32>
    %568 = arith.addf %566, %567 : vector<8x128xf32>
    %569 = vector.extract_strided_slice %568 {offsets = [0, 0], sizes = [8, 96], strides = [1, 1]} : vector<8x128xf32> to vector<8x96xf32>
    %570 = arith.negf %569 : vector<8x96xf32>
    %571 = math.exp %570 : vector<8x96xf32>
    %cst_101 = arith.constant 1.000000e+00 : f32
    %572 = vector.broadcast %cst_101 : f32 to vector<8x96xf32>
    %573 = arith.addf %572, %571 : vector<8x96xf32>
    %574 = arith.divf %572, %573 : vector<8x96xf32>
    %575 = vector.extract_strided_slice %568 {offsets = [0, 96], sizes = [8, 32], strides = [1, 1]} : vector<8x128xf32> to vector<8x32xf32>
    %576 = math.tanh %575 : vector<8x32xf32>
    %577 = vector.extract_strided_slice %574 {offsets = [0, 32], sizes = [8, 32], strides = [1, 1]} : vector<8x96xf32> to vector<8x32xf32>
    %578 = arith.mulf %577, %561 : vector<8x32xf32>
    %579 = vector.extract_strided_slice %574 {offsets = [0, 0], sizes = [8, 32], strides = [1, 1]} : vector<8x96xf32> to vector<8x32xf32>
    %580 = arith.mulf %579, %576 : vector<8x32xf32>
    %581 = arith.addf %578, %580 : vector<8x32xf32>
    %582 = vector.extract_strided_slice %574 {offsets = [0, 64], sizes = [8, 32], strides = [1, 1]} : vector<8x96xf32> to vector<8x32xf32>
    %583 = math.tanh %581 : vector<8x32xf32>
    %584 = arith.mulf %582, %583 : vector<8x32xf32>
    %c0_102 = arith.constant 0 : index
    %c0_103 = arith.constant 0 : index
    %585 = vector.load %arg16[%c0_102, %c0_103] : memref<32x128xf32, #tpu.memory_space<vmem>>, vector<32x128xf32>
    %c0_104 = arith.constant 0 : index
    %c0_105 = arith.constant 0 : index
    %586 = vector.load %arg17[%c0_104, %c0_105] : memref<32x128xf32, #tpu.memory_space<vmem>>, vector<32x128xf32>
    %c0_106 = arith.constant 0 : index
    %c0_107 = arith.constant 0 : index
    %587 = vector.load %arg18[%c0_106, %c0_107] : memref<1x128xf32, #tpu.memory_space<vmem>>, vector<1x128xf32>
    %588 = tpu.concatenate %424, %444, %464, %484, %504, %524, %544, %564, %584 in 0 : vector<8x32xf32>, vector<8x32xf32>, vector<8x32xf32>, vector<8x32xf32>, vector<8x32xf32>, vector<8x32xf32>, vector<8x32xf32>, vector<8x32xf32>, vector<8x32xf32> -> vector<72x32xf32>
    %cst_108 = arith.constant dense<0.000000e+00> : vector<72x128xf32>
    %589 = tpu.matmul %588, %585, %cst_108 {dimension_numbers = #tpu.dot_dimension_numbers<[1], [0], [0], [1], [0, 0, 1, 1], [], []>} : vector<72x32xf32>, vector<32x128xf32>, vector<72x128xf32> -> vector<72x128xf32>
    %590 = vector.extract_strided_slice %589 {offsets = [0, 0], sizes = [8, 128], strides = [1, 1]} : vector<72x128xf32> to vector<8x128xf32>
    %591 = vector.extract_strided_slice %589 {offsets = [8, 0], sizes = [8, 128], strides = [1, 1]} : vector<72x128xf32> to vector<8x128xf32>
    %592 = vector.extract_strided_slice %589 {offsets = [16, 0], sizes = [8, 128], strides = [1, 1]} : vector<72x128xf32> to vector<8x128xf32>
    %593 = vector.extract_strided_slice %589 {offsets = [24, 0], sizes = [8, 128], strides = [1, 1]} : vector<72x128xf32> to vector<8x128xf32>
    %594 = vector.extract_strided_slice %589 {offsets = [32, 0], sizes = [8, 128], strides = [1, 1]} : vector<72x128xf32> to vector<8x128xf32>
    %595 = vector.extract_strided_slice %589 {offsets = [40, 0], sizes = [8, 128], strides = [1, 1]} : vector<72x128xf32> to vector<8x128xf32>
    %596 = vector.extract_strided_slice %589 {offsets = [48, 0], sizes = [8, 128], strides = [1, 1]} : vector<72x128xf32> to vector<8x128xf32>
    %597 = vector.extract_strided_slice %589 {offsets = [56, 0], sizes = [8, 128], strides = [1, 1]} : vector<72x128xf32> to vector<8x128xf32>
    %598 = vector.extract_strided_slice %589 {offsets = [64, 0], sizes = [8, 128], strides = [1, 1]} : vector<72x128xf32> to vector<8x128xf32>
    %cst_109 = arith.constant dense<0.000000e+00> : vector<8x128xf32>
    %599 = tpu.matmul %375, %586, %cst_109 {dimension_numbers = #tpu.dot_dimension_numbers<[1], [0], [0], [1], [0, 0, 1, 1], [], []>} : vector<8x32xf32>, vector<32x128xf32>, vector<8x128xf32> -> vector<8x128xf32>
    %600 = arith.addf %590, %599 : vector<8x128xf32>
    %601 = vector.broadcast %587 : vector<1x128xf32> to vector<8x128xf32>
    %602 = arith.addf %600, %601 : vector<8x128xf32>
    %603 = vector.extract_strided_slice %602 {offsets = [0, 0], sizes = [8, 96], strides = [1, 1]} : vector<8x128xf32> to vector<8x96xf32>
    %604 = arith.negf %603 : vector<8x96xf32>
    %605 = math.exp %604 : vector<8x96xf32>
    %cst_110 = arith.constant 1.000000e+00 : f32
    %606 = vector.broadcast %cst_110 : f32 to vector<8x96xf32>
    %607 = arith.addf %606, %605 : vector<8x96xf32>
    %608 = arith.divf %606, %607 : vector<8x96xf32>
    %609 = vector.extract_strided_slice %602 {offsets = [0, 96], sizes = [8, 32], strides = [1, 1]} : vector<8x128xf32> to vector<8x32xf32>
    %610 = math.tanh %609 : vector<8x32xf32>
    %611 = vector.extract_strided_slice %608 {offsets = [0, 32], sizes = [8, 32], strides = [1, 1]} : vector<8x96xf32> to vector<8x32xf32>
    %612 = arith.mulf %611, %376 : vector<8x32xf32>
    %613 = vector.extract_strided_slice %608 {offsets = [0, 0], sizes = [8, 32], strides = [1, 1]} : vector<8x96xf32> to vector<8x32xf32>
    %614 = arith.mulf %613, %610 : vector<8x32xf32>
    %615 = arith.addf %612, %614 : vector<8x32xf32>
    %616 = vector.extract_strided_slice %608 {offsets = [0, 64], sizes = [8, 32], strides = [1, 1]} : vector<8x96xf32> to vector<8x32xf32>
    %617 = math.tanh %615 : vector<8x32xf32>
    %618 = arith.mulf %616, %617 : vector<8x32xf32>
    %cst_111 = arith.constant dense<0.000000e+00> : vector<8x128xf32>
    %619 = tpu.matmul %618, %586, %cst_111 {dimension_numbers = #tpu.dot_dimension_numbers<[1], [0], [0], [1], [0, 0, 1, 1], [], []>} : vector<8x32xf32>, vector<32x128xf32>, vector<8x128xf32> -> vector<8x128xf32>
    %620 = arith.addf %591, %619 : vector<8x128xf32>
    %621 = vector.broadcast %587 : vector<1x128xf32> to vector<8x128xf32>
    %622 = arith.addf %620, %621 : vector<8x128xf32>
    %623 = vector.extract_strided_slice %622 {offsets = [0, 0], sizes = [8, 96], strides = [1, 1]} : vector<8x128xf32> to vector<8x96xf32>
    %624 = arith.negf %623 : vector<8x96xf32>
    %625 = math.exp %624 : vector<8x96xf32>
    %cst_112 = arith.constant 1.000000e+00 : f32
    %626 = vector.broadcast %cst_112 : f32 to vector<8x96xf32>
    %627 = arith.addf %626, %625 : vector<8x96xf32>
    %628 = arith.divf %626, %627 : vector<8x96xf32>
    %629 = vector.extract_strided_slice %622 {offsets = [0, 96], sizes = [8, 32], strides = [1, 1]} : vector<8x128xf32> to vector<8x32xf32>
    %630 = math.tanh %629 : vector<8x32xf32>
    %631 = vector.extract_strided_slice %628 {offsets = [0, 32], sizes = [8, 32], strides = [1, 1]} : vector<8x96xf32> to vector<8x32xf32>
    %632 = arith.mulf %631, %615 : vector<8x32xf32>
    %633 = vector.extract_strided_slice %628 {offsets = [0, 0], sizes = [8, 32], strides = [1, 1]} : vector<8x96xf32> to vector<8x32xf32>
    %634 = arith.mulf %633, %630 : vector<8x32xf32>
    %635 = arith.addf %632, %634 : vector<8x32xf32>
    %636 = vector.extract_strided_slice %628 {offsets = [0, 64], sizes = [8, 32], strides = [1, 1]} : vector<8x96xf32> to vector<8x32xf32>
    %637 = math.tanh %635 : vector<8x32xf32>
    %638 = arith.mulf %636, %637 : vector<8x32xf32>
    %cst_113 = arith.constant dense<0.000000e+00> : vector<8x128xf32>
    %639 = tpu.matmul %638, %586, %cst_113 {dimension_numbers = #tpu.dot_dimension_numbers<[1], [0], [0], [1], [0, 0, 1, 1], [], []>} : vector<8x32xf32>, vector<32x128xf32>, vector<8x128xf32> -> vector<8x128xf32>
    %640 = arith.addf %592, %639 : vector<8x128xf32>
    %641 = vector.broadcast %587 : vector<1x128xf32> to vector<8x128xf32>
    %642 = arith.addf %640, %641 : vector<8x128xf32>
    %643 = vector.extract_strided_slice %642 {offsets = [0, 0], sizes = [8, 96], strides = [1, 1]} : vector<8x128xf32> to vector<8x96xf32>
    %644 = arith.negf %643 : vector<8x96xf32>
    %645 = math.exp %644 : vector<8x96xf32>
    %cst_114 = arith.constant 1.000000e+00 : f32
    %646 = vector.broadcast %cst_114 : f32 to vector<8x96xf32>
    %647 = arith.addf %646, %645 : vector<8x96xf32>
    %648 = arith.divf %646, %647 : vector<8x96xf32>
    %649 = vector.extract_strided_slice %642 {offsets = [0, 96], sizes = [8, 32], strides = [1, 1]} : vector<8x128xf32> to vector<8x32xf32>
    %650 = math.tanh %649 : vector<8x32xf32>
    %651 = vector.extract_strided_slice %648 {offsets = [0, 32], sizes = [8, 32], strides = [1, 1]} : vector<8x96xf32> to vector<8x32xf32>
    %652 = arith.mulf %651, %635 : vector<8x32xf32>
    %653 = vector.extract_strided_slice %648 {offsets = [0, 0], sizes = [8, 32], strides = [1, 1]} : vector<8x96xf32> to vector<8x32xf32>
    %654 = arith.mulf %653, %650 : vector<8x32xf32>
    %655 = arith.addf %652, %654 : vector<8x32xf32>
    %656 = vector.extract_strided_slice %648 {offsets = [0, 64], sizes = [8, 32], strides = [1, 1]} : vector<8x96xf32> to vector<8x32xf32>
    %657 = math.tanh %655 : vector<8x32xf32>
    %658 = arith.mulf %656, %657 : vector<8x32xf32>
    %cst_115 = arith.constant dense<0.000000e+00> : vector<8x128xf32>
    %659 = tpu.matmul %658, %586, %cst_115 {dimension_numbers = #tpu.dot_dimension_numbers<[1], [0], [0], [1], [0, 0, 1, 1], [], []>} : vector<8x32xf32>, vector<32x128xf32>, vector<8x128xf32> -> vector<8x128xf32>
    %660 = arith.addf %593, %659 : vector<8x128xf32>
    %661 = vector.broadcast %587 : vector<1x128xf32> to vector<8x128xf32>
    %662 = arith.addf %660, %661 : vector<8x128xf32>
    %663 = vector.extract_strided_slice %662 {offsets = [0, 0], sizes = [8, 96], strides = [1, 1]} : vector<8x128xf32> to vector<8x96xf32>
    %664 = arith.negf %663 : vector<8x96xf32>
    %665 = math.exp %664 : vector<8x96xf32>
    %cst_116 = arith.constant 1.000000e+00 : f32
    %666 = vector.broadcast %cst_116 : f32 to vector<8x96xf32>
    %667 = arith.addf %666, %665 : vector<8x96xf32>
    %668 = arith.divf %666, %667 : vector<8x96xf32>
    %669 = vector.extract_strided_slice %662 {offsets = [0, 96], sizes = [8, 32], strides = [1, 1]} : vector<8x128xf32> to vector<8x32xf32>
    %670 = math.tanh %669 : vector<8x32xf32>
    %671 = vector.extract_strided_slice %668 {offsets = [0, 32], sizes = [8, 32], strides = [1, 1]} : vector<8x96xf32> to vector<8x32xf32>
    %672 = arith.mulf %671, %655 : vector<8x32xf32>
    %673 = vector.extract_strided_slice %668 {offsets = [0, 0], sizes = [8, 32], strides = [1, 1]} : vector<8x96xf32> to vector<8x32xf32>
    %674 = arith.mulf %673, %670 : vector<8x32xf32>
    %675 = arith.addf %672, %674 : vector<8x32xf32>
    %676 = vector.extract_strided_slice %668 {offsets = [0, 64], sizes = [8, 32], strides = [1, 1]} : vector<8x96xf32> to vector<8x32xf32>
    %677 = math.tanh %675 : vector<8x32xf32>
    %678 = arith.mulf %676, %677 : vector<8x32xf32>
    %cst_117 = arith.constant dense<0.000000e+00> : vector<8x128xf32>
    %679 = tpu.matmul %678, %586, %cst_117 {dimension_numbers = #tpu.dot_dimension_numbers<[1], [0], [0], [1], [0, 0, 1, 1], [], []>} : vector<8x32xf32>, vector<32x128xf32>, vector<8x128xf32> -> vector<8x128xf32>
    %680 = arith.addf %594, %679 : vector<8x128xf32>
    %681 = vector.broadcast %587 : vector<1x128xf32> to vector<8x128xf32>
    %682 = arith.addf %680, %681 : vector<8x128xf32>
    %683 = vector.extract_strided_slice %682 {offsets = [0, 0], sizes = [8, 96], strides = [1, 1]} : vector<8x128xf32> to vector<8x96xf32>
    %684 = arith.negf %683 : vector<8x96xf32>
    %685 = math.exp %684 : vector<8x96xf32>
    %cst_118 = arith.constant 1.000000e+00 : f32
    %686 = vector.broadcast %cst_118 : f32 to vector<8x96xf32>
    %687 = arith.addf %686, %685 : vector<8x96xf32>
    %688 = arith.divf %686, %687 : vector<8x96xf32>
    %689 = vector.extract_strided_slice %682 {offsets = [0, 96], sizes = [8, 32], strides = [1, 1]} : vector<8x128xf32> to vector<8x32xf32>
    %690 = math.tanh %689 : vector<8x32xf32>
    %691 = vector.extract_strided_slice %688 {offsets = [0, 32], sizes = [8, 32], strides = [1, 1]} : vector<8x96xf32> to vector<8x32xf32>
    %692 = arith.mulf %691, %675 : vector<8x32xf32>
    %693 = vector.extract_strided_slice %688 {offsets = [0, 0], sizes = [8, 32], strides = [1, 1]} : vector<8x96xf32> to vector<8x32xf32>
    %694 = arith.mulf %693, %690 : vector<8x32xf32>
    %695 = arith.addf %692, %694 : vector<8x32xf32>
    %696 = vector.extract_strided_slice %688 {offsets = [0, 64], sizes = [8, 32], strides = [1, 1]} : vector<8x96xf32> to vector<8x32xf32>
    %697 = math.tanh %695 : vector<8x32xf32>
    %698 = arith.mulf %696, %697 : vector<8x32xf32>
    %cst_119 = arith.constant dense<0.000000e+00> : vector<8x128xf32>
    %699 = tpu.matmul %698, %586, %cst_119 {dimension_numbers = #tpu.dot_dimension_numbers<[1], [0], [0], [1], [0, 0, 1, 1], [], []>} : vector<8x32xf32>, vector<32x128xf32>, vector<8x128xf32> -> vector<8x128xf32>
    %700 = arith.addf %595, %699 : vector<8x128xf32>
    %701 = vector.broadcast %587 : vector<1x128xf32> to vector<8x128xf32>
    %702 = arith.addf %700, %701 : vector<8x128xf32>
    %703 = vector.extract_strided_slice %702 {offsets = [0, 0], sizes = [8, 96], strides = [1, 1]} : vector<8x128xf32> to vector<8x96xf32>
    %704 = arith.negf %703 : vector<8x96xf32>
    %705 = math.exp %704 : vector<8x96xf32>
    %cst_120 = arith.constant 1.000000e+00 : f32
    %706 = vector.broadcast %cst_120 : f32 to vector<8x96xf32>
    %707 = arith.addf %706, %705 : vector<8x96xf32>
    %708 = arith.divf %706, %707 : vector<8x96xf32>
    %709 = vector.extract_strided_slice %702 {offsets = [0, 96], sizes = [8, 32], strides = [1, 1]} : vector<8x128xf32> to vector<8x32xf32>
    %710 = math.tanh %709 : vector<8x32xf32>
    %711 = vector.extract_strided_slice %708 {offsets = [0, 32], sizes = [8, 32], strides = [1, 1]} : vector<8x96xf32> to vector<8x32xf32>
    %712 = arith.mulf %711, %695 : vector<8x32xf32>
    %713 = vector.extract_strided_slice %708 {offsets = [0, 0], sizes = [8, 32], strides = [1, 1]} : vector<8x96xf32> to vector<8x32xf32>
    %714 = arith.mulf %713, %710 : vector<8x32xf32>
    %715 = arith.addf %712, %714 : vector<8x32xf32>
    %716 = vector.extract_strided_slice %708 {offsets = [0, 64], sizes = [8, 32], strides = [1, 1]} : vector<8x96xf32> to vector<8x32xf32>
    %717 = math.tanh %715 : vector<8x32xf32>
    %718 = arith.mulf %716, %717 : vector<8x32xf32>
    %cst_121 = arith.constant dense<0.000000e+00> : vector<8x128xf32>
    %719 = tpu.matmul %718, %586, %cst_121 {dimension_numbers = #tpu.dot_dimension_numbers<[1], [0], [0], [1], [0, 0, 1, 1], [], []>} : vector<8x32xf32>, vector<32x128xf32>, vector<8x128xf32> -> vector<8x128xf32>
    %720 = arith.addf %596, %719 : vector<8x128xf32>
    %721 = vector.broadcast %587 : vector<1x128xf32> to vector<8x128xf32>
    %722 = arith.addf %720, %721 : vector<8x128xf32>
    %723 = vector.extract_strided_slice %722 {offsets = [0, 0], sizes = [8, 96], strides = [1, 1]} : vector<8x128xf32> to vector<8x96xf32>
    %724 = arith.negf %723 : vector<8x96xf32>
    %725 = math.exp %724 : vector<8x96xf32>
    %cst_122 = arith.constant 1.000000e+00 : f32
    %726 = vector.broadcast %cst_122 : f32 to vector<8x96xf32>
    %727 = arith.addf %726, %725 : vector<8x96xf32>
    %728 = arith.divf %726, %727 : vector<8x96xf32>
    %729 = vector.extract_strided_slice %722 {offsets = [0, 96], sizes = [8, 32], strides = [1, 1]} : vector<8x128xf32> to vector<8x32xf32>
    %730 = math.tanh %729 : vector<8x32xf32>
    %731 = vector.extract_strided_slice %728 {offsets = [0, 32], sizes = [8, 32], strides = [1, 1]} : vector<8x96xf32> to vector<8x32xf32>
    %732 = arith.mulf %731, %715 : vector<8x32xf32>
    %733 = vector.extract_strided_slice %728 {offsets = [0, 0], sizes = [8, 32], strides = [1, 1]} : vector<8x96xf32> to vector<8x32xf32>
    %734 = arith.mulf %733, %730 : vector<8x32xf32>
    %735 = arith.addf %732, %734 : vector<8x32xf32>
    %736 = vector.extract_strided_slice %728 {offsets = [0, 64], sizes = [8, 32], strides = [1, 1]} : vector<8x96xf32> to vector<8x32xf32>
    %737 = math.tanh %735 : vector<8x32xf32>
    %738 = arith.mulf %736, %737 : vector<8x32xf32>
    %cst_123 = arith.constant dense<0.000000e+00> : vector<8x128xf32>
    %739 = tpu.matmul %738, %586, %cst_123 {dimension_numbers = #tpu.dot_dimension_numbers<[1], [0], [0], [1], [0, 0, 1, 1], [], []>} : vector<8x32xf32>, vector<32x128xf32>, vector<8x128xf32> -> vector<8x128xf32>
    %740 = arith.addf %597, %739 : vector<8x128xf32>
    %741 = vector.broadcast %587 : vector<1x128xf32> to vector<8x128xf32>
    %742 = arith.addf %740, %741 : vector<8x128xf32>
    %743 = vector.extract_strided_slice %742 {offsets = [0, 0], sizes = [8, 96], strides = [1, 1]} : vector<8x128xf32> to vector<8x96xf32>
    %744 = arith.negf %743 : vector<8x96xf32>
    %745 = math.exp %744 : vector<8x96xf32>
    %cst_124 = arith.constant 1.000000e+00 : f32
    %746 = vector.broadcast %cst_124 : f32 to vector<8x96xf32>
    %747 = arith.addf %746, %745 : vector<8x96xf32>
    %748 = arith.divf %746, %747 : vector<8x96xf32>
    %749 = vector.extract_strided_slice %742 {offsets = [0, 96], sizes = [8, 32], strides = [1, 1]} : vector<8x128xf32> to vector<8x32xf32>
    %750 = math.tanh %749 : vector<8x32xf32>
    %751 = vector.extract_strided_slice %748 {offsets = [0, 32], sizes = [8, 32], strides = [1, 1]} : vector<8x96xf32> to vector<8x32xf32>
    %752 = arith.mulf %751, %735 : vector<8x32xf32>
    %753 = vector.extract_strided_slice %748 {offsets = [0, 0], sizes = [8, 32], strides = [1, 1]} : vector<8x96xf32> to vector<8x32xf32>
    %754 = arith.mulf %753, %750 : vector<8x32xf32>
    %755 = arith.addf %752, %754 : vector<8x32xf32>
    %756 = vector.extract_strided_slice %748 {offsets = [0, 64], sizes = [8, 32], strides = [1, 1]} : vector<8x96xf32> to vector<8x32xf32>
    %757 = math.tanh %755 : vector<8x32xf32>
    %758 = arith.mulf %756, %757 : vector<8x32xf32>
    %cst_125 = arith.constant dense<0.000000e+00> : vector<8x128xf32>
    %759 = tpu.matmul %758, %586, %cst_125 {dimension_numbers = #tpu.dot_dimension_numbers<[1], [0], [0], [1], [0, 0, 1, 1], [], []>} : vector<8x32xf32>, vector<32x128xf32>, vector<8x128xf32> -> vector<8x128xf32>
    %760 = arith.addf %598, %759 : vector<8x128xf32>
    %761 = vector.broadcast %587 : vector<1x128xf32> to vector<8x128xf32>
    %762 = arith.addf %760, %761 : vector<8x128xf32>
    %763 = vector.extract_strided_slice %762 {offsets = [0, 0], sizes = [8, 96], strides = [1, 1]} : vector<8x128xf32> to vector<8x96xf32>
    %764 = arith.negf %763 : vector<8x96xf32>
    %765 = math.exp %764 : vector<8x96xf32>
    %cst_126 = arith.constant 1.000000e+00 : f32
    %766 = vector.broadcast %cst_126 : f32 to vector<8x96xf32>
    %767 = arith.addf %766, %765 : vector<8x96xf32>
    %768 = arith.divf %766, %767 : vector<8x96xf32>
    %769 = vector.extract_strided_slice %762 {offsets = [0, 96], sizes = [8, 32], strides = [1, 1]} : vector<8x128xf32> to vector<8x32xf32>
    %770 = math.tanh %769 : vector<8x32xf32>
    %771 = vector.extract_strided_slice %768 {offsets = [0, 32], sizes = [8, 32], strides = [1, 1]} : vector<8x96xf32> to vector<8x32xf32>
    %772 = arith.mulf %771, %755 : vector<8x32xf32>
    %773 = vector.extract_strided_slice %768 {offsets = [0, 0], sizes = [8, 32], strides = [1, 1]} : vector<8x96xf32> to vector<8x32xf32>
    %774 = arith.mulf %773, %770 : vector<8x32xf32>
    %775 = arith.addf %772, %774 : vector<8x32xf32>
    %776 = vector.extract_strided_slice %768 {offsets = [0, 64], sizes = [8, 32], strides = [1, 1]} : vector<8x96xf32> to vector<8x32xf32>
    %777 = math.tanh %775 : vector<8x32xf32>
    %778 = arith.mulf %776, %777 : vector<8x32xf32>
    %779 = tpu.concatenate %618, %638, %658, %678, %698, %718, %738, %758, %778 in 0 : vector<8x32xf32>, vector<8x32xf32>, vector<8x32xf32>, vector<8x32xf32>, vector<8x32xf32>, vector<8x32xf32>, vector<8x32xf32>, vector<8x32xf32>, vector<8x32xf32> -> vector<72x32xf32>
    %c0_127 = arith.constant 0 : index
    %c0_128 = arith.constant 0 : index
    %780 = vector.load %arg19[%c0_127, %c0_128] : memref<32x5xf32, #tpu.memory_space<vmem>>, vector<32x5xf32>
    %cst_129 = arith.constant dense<0.000000e+00> : vector<72x5xf32>
    %781 = tpu.matmul %779, %780, %cst_129 {dimension_numbers = #tpu.dot_dimension_numbers<[1], [0], [0], [1], [0, 0, 1, 1], [], []>} : vector<72x32xf32>, vector<32x5xf32>, vector<72x5xf32> -> vector<72x5xf32>
    %c0_130 = arith.constant 0 : index
    %c0_131 = arith.constant 0 : index
    %782 = vector.load %arg20[%c0_130, %c0_131] : memref<1x5xf32, #tpu.memory_space<vmem>>, vector<1x5xf32>
    %783 = vector.broadcast %782 : vector<1x5xf32> to vector<72x5xf32>
    %784 = arith.addf %781, %783 : vector<72x5xf32>
    %785 = vector.extract_strided_slice %784 {offsets = [0, 0], sizes = [72, 2], strides = [1, 1]} : vector<72x5xf32> to vector<72x2xf32>
    %786 = math.tanh %785 : vector<72x2xf32>
    %787 = vector.extract_strided_slice %784 {offsets = [0, 2], sizes = [72, 3], strides = [1, 1]} : vector<72x5xf32> to vector<72x3xf32>
    %cst_132 = arith.constant dense<0xFF800000> : vector<72xf32>
    %788 = vector.multi_reduction <maximumf>, %787, %cst_132 [1] : vector<72x3xf32> to vector<72xf32>
    %789 = vector.shape_cast %788 : vector<72xf32> to vector<72x1xf32>
    %790 = vector.broadcast %789 : vector<72x1xf32> to vector<72x3xf32>
    %791 = arith.subf %787, %790 : vector<72x3xf32>
    %792 = math.exp %791 : vector<72x3xf32>
    %cst_133 = arith.constant dense<0.000000e+00> : vector<72xf32>
    %793 = vector.multi_reduction <add>, %792, %cst_133 [1] : vector<72x3xf32> to vector<72xf32>
    %794 = vector.shape_cast %793 : vector<72xf32> to vector<72x1xf32>
    %795 = tpu.reciprocal %794 : vector<72x1xf32> -> vector<72x1xf32>
    %796 = vector.broadcast %795 : vector<72x1xf32> to vector<72x3xf32>
    %797 = arith.mulf %792, %796 : vector<72x3xf32>
    %798 = tpu.concatenate %786, %797 in 1 : vector<72x2xf32>, vector<72x3xf32> -> vector<72x5xf32>
    %c0_134 = arith.constant 0 : index
    %c0_135 = arith.constant 0 : index
    %799 = vector.load %arg21[%c0_134, %c0_135] : memref<72x5xf32, #tpu.memory_space<vmem>>, vector<72x5xf32>
    tpu.vector_store %arg21[%c0_134, %c0_135], %798 {strides = array<i32>} : memref<72x5xf32, #tpu.memory_space<vmem>>, vector<72x5xf32>,
    return
  }
}

</mosaic_0001>

<bundles_post_ra>
// kernel: tpu_custom_call.1
= control target key start
LH: loop header
LB: loop body
LE: loop exit
PB: predicated region body
PF: predicated region fallthrough
CT: control target
= control target key end

     0   :  { %s4929_s0 = inlined_call_operand.vmem [shape: f32[8,8,5], index: 0, kind: input, shape index: {}]   ;;  %s4930_s1 = inlined_call_operand.hbm [shape: f32[1,5], index: 1, kind: input, shape index: {}]   ;;  %s4931_s2 = inlined_call_operand.vmem [shape: f32[5,128], index: 2, kind: input, shape index: {}]   ;;  %s4932_s3 = inlined_call_operand.vmem [shape: f32[32,128], index: 3, kind: input, shape index: {}]   ;;  %s4933_s4 = inlined_call_operand.hbm [shape: f32[1,128], index: 4, kind: input, shape index: {}]   ;;  %s4934_s5 = inlined_call_operand.vmem [shape: f32[32,128], index: 5, kind: input, shape index: {}]   ;;  %s4935_s6 = inlined_call_operand.vmem [shape: f32[32,128], index: 6, kind: input, shape index: {}]   ;;  %s4936_s7 = inlined_call_operand.hbm [shape: f32[1,128], index: 7, kind: input, shape index: {}]   ;;  %s4937_s8 = inlined_call_operand.hbm [shape: f32[32,32], index: 8, kind: input, shape index: {}]   ;;  %s4938_s9 = inlined_call_operand.hbm [shape: f32[1,32], index: 9, kind: input, shape index: {}]   ;;  %s4939_s10 = inlined_call_operand.hbm [shape: f32[32,64], index: 10, kind: input, shape index: {}]   ;;  %s4940_s11 = inlined_call_operand.hbm [shape: f32[1,64], index: 11, kind: input, shape index: {}]   ;;  %s4941_s12 = inlined_call_operand.hbm [shape: f32[32,128], index: 12, kind: input, shape index: {}]   ;;  %s4942_s13 = inlined_call_operand.vmem [shape: f32[5,128], index: 13, kind: input, shape index: {}]   ;;  %s4943_s14 = inlined_call_operand.hbm [shape: f32[32,128], index: 14, kind: input, shape index: {}]   ;;  %s4944_s15 = inlined_call_operand.hbm [shape: f32[1,128], index: 15, kind: input, shape index: {}]   ;;  %s4945_s16 = inlined_call_operand.hbm [shape: f32[32,128], index: 16, kind: input, shape index: {}]   ;;  %s4946_s17 = inlined_call_operand.hbm [shape: f32[32,128], index: 17, kind: input, shape index: {}]   ;;  %s4947_s18 = inlined_call_operand.vmem [shape: f32[1,128], index: 18, kind: input, shape index: {}]   ;;  %s4948_s19 = inlined_call_operand.vmem [shape: f32[32,5], index: 19, kind: input, shape index: {}]   ;;  %s4949_s20 = inlined_call_operand.vmem [shape: f32[1,5], index: 20, kind: input, shape index: {}]   ;;  %s4950_s21 = inlined_call_operand.vmem [shape: f32[72,5], index: 21, kind: output, shape index: {}]  }
   0x1   :  { %4954 = sst [smem:[#allocation28_spill]] %s4929_s0 }
   0x2   :  { %4955 = sst [smem:[#allocation29_spill]] %s4930_s1 }
   0x3   :  { %4956 = sst [smem:[#allocation30_spill]] %s4931_s2 }
   0x4   :  { %4957 = sst [smem:[#allocation31_spill]] %s4932_s3 }
   0x5   :  { %4958 = sst [smem:[#allocation32_spill]] %s4933_s4 }
   0x6   :  { %4959 = sst [smem:[#allocation33_spill]] %s4934_s5 }
   0x7   :  { %26 = vsyncpa [#allocation3], 0 }
   0x8   :  { %27 = vsyncpa [#allocation5], 0 }
   0x9   :  { %28 = vsyncpa [#allocation8], 0 }
   0xa   :  { %29 = vsyncpa [#allocation11], 0 }
   0xb   :  { %30 = vsyncpa [#allocation14], 0 }
   0xc   :  { %31 = vsyncpa [#allocation17], 0  ;;  %s4960_s26 = sld [smem:[#allocation32_spill]] }
  0x12   :  { %s55_s27 = sshll.u32 %s4960_s26, 4  ;;  %s56_s27 = int_to_ptr.hbm [resolvable:$true] %s55_s27 }
  0x13   :  { %32 = vsyncpa [#allocation20], 0  ;;  %s3924_s3 = smov [#allocation4]   ;;  %s80_s4 = sshll.u32 %s4937_s8, 4  ;;  %s81_s4 = int_to_ptr.hbm [resolvable:$true] %s80_s4 }
  0x14   :  { %s57_s28 = sshll.u32 %s3924_s3, 4  ;;  %s3925_s30 = smov [#allocation7]   ;;  %s58_s28 = int_to_ptr.vmem [resolvable:$true] %s57_s28 }
  0x15   :  { %60 = dma.hbm_to_vmem [thread:$0]  %s56_s27, 16, %s58_s28, [#allocation5]  }
  0x16   :  { %s82_s5 = sshll.u32 %s3925_s30, 4  ;;  %s3926_s22 = smov 128   ;;  %s83_s5 = int_to_ptr.vmem [resolvable:$true] %s82_s5 }
  0x17   :  { %s3927_s23 = smov 8   ;;  %s104_s2 = sshll.u32 %s4939_s10, 4  ;;  %s105_s2 = int_to_ptr.hbm [resolvable:$true] %s104_s2 }
  0x18   :  { %88 = dma.hbm_to_vmem [thread:$0]  %s81_s4, 512, %s83_s5, [#allocation8], %s3926_s22, %s3926_s22, %s3927_s23  }
  0x19   :  { %s3928_s25 = smov [#allocation10]   ;;  %s128_s3 = sshll.u32 %s4941_s12, 4  ;;  %s129_s3 = int_to_ptr.hbm [resolvable:$true] %s128_s3 }
  0x1a   :  { %s106_s26 = sshll.u32 %s3928_s25, 4  ;;  %s3929_s28 = smov [#allocation13]   ;;  %s107_s26 = int_to_ptr.vmem [resolvable:$true] %s106_s26 }
  0x1b   :  { %112 = dma.hbm_to_vmem [thread:$0]  %s105_s2, 512, %s107_s26, [#allocation11], %s3926_s22, %s3926_s22, %s3927_s23  }
  0x1c   :  { %s130_s29 = sshll.u32 %s3929_s28, 4  ;;  %s157_s30 = sshll.u32 %s4944_s15, 4  ;;  %s131_s29 = int_to_ptr.vmem [resolvable:$true] %s130_s29  ;;  %s158_s30 = int_to_ptr.hbm [resolvable:$true] %s157_s30 }
  0x1d   :  { %136 = dma.hbm_to_vmem [thread:$0]  %s129_s3, 512, %s131_s29, [#allocation14], %s3926_s22, %s3926_s22, %s3927_s23  }
  0x1e   :  { %s4961_s12 = sld [smem:[#allocation29_spill]]  ;;  %s3930_s24 = smov [#allocation16]  }
  0x1f   :  { %s159_s25 = sshll.u32 %s3930_s24, 4  ;;  %s3931_s2 = smov [#allocation2]   ;;  %s160_s25 = int_to_ptr.vmem [resolvable:$true] %s159_s25 }
  0x20   :  { %162 = dma.hbm_to_vmem [thread:$0]  %s158_s30, 16, %s160_s25, [#allocation17]  }
  0x21   :  { %s42_s26 = sshll.u32 %s3931_s2, 4  ;;  %s70_s15 = sshll.u32 %s4936_s7, 4  ;;  %s43_s26 = int_to_ptr.vmem [resolvable:$true] %s42_s26  ;;  %s71_s15 = int_to_ptr.hbm [resolvable:$true] %s70_s15 }
  0x22   :  { %s94_s29 = sshll.u32 %s4938_s9, 4  ;;  %s3932_s0 = smov [#allocation6]   ;;  %s95_s29 = int_to_ptr.hbm [resolvable:$true] %s94_s29 }
  0x23   :  { %s72_s4 = sshll.u32 %s3932_s0, 4  ;;  %s3933_s10 = smov [#allocation9]   ;;  %s73_s4 = int_to_ptr.vmem [resolvable:$true] %s72_s4 }
  0x24   :  { %s40_s1 = sshll.u32 %s4961_s12, 4  ;;  %s96_s30 = sshll.u32 %s3933_s10, 4  ;;  %s41_s1 = int_to_ptr.hbm [resolvable:$true] %s40_s1  ;;  %s97_s30 = int_to_ptr.vmem [resolvable:$true] %s96_s30 }
  0x25   :  { %45 = dma.hbm_to_vmem [thread:$0]  %s41_s1, 16, %s43_s26, [#allocation3]  }
  0x26   :  { %75 = dma.hbm_to_vmem [thread:$0]  %s71_s15, 16, %s73_s4, [#allocation5]  }
  0x27   :  { %s118_s24 = sshll.u32 %s4940_s11, 4  ;;  %s143_s25 = sshll.u32 %s4943_s14, 4  ;;  %s119_s24 = int_to_ptr.hbm [resolvable:$true] %s118_s24  ;;  %s144_s25 = int_to_ptr.hbm [resolvable:$true] %s143_s25 }
  0x28   :  { %99 = dma.hbm_to_vmem [thread:$0]  %s95_s29, 16, %s97_s30, [#allocation8]  }
  0x29   :  { %s3934_s2 = smov [#allocation12]   ;;  %s3935_s26 = smov [#allocation15]  }
  0x2a   :  { %s120_s9 = sshll.u32 %s3934_s2, 4  ;;  %s145_s8 = sshll.u32 %s3935_s26, 4  ;;  %s121_s9 = int_to_ptr.vmem [resolvable:$true] %s120_s9  ;;  %s146_s8 = int_to_ptr.vmem [resolvable:$true] %s145_s8 }
  0x2b   :  { %123 = dma.hbm_to_vmem [thread:$0]  %s119_s24, 16, %s121_s9, [#allocation11]  }
  0x2c   :  { %s167_s28 = sshll.u32 %s4945_s16, 4  ;;  %s180_s14 = sshll.u32 %s4946_s17, 4  ;;  %s168_s28 = int_to_ptr.hbm [resolvable:$true] %s167_s28  ;;  %s181_s14 = int_to_ptr.hbm [resolvable:$true] %s180_s14 }
  0x2d   :  { %151 = dma.hbm_to_vmem [thread:$0]  %s144_s25, 512, %s146_s8, [#allocation14], %s3926_s22, %s3926_s22, %s3927_s23  }
  0x2e   :  { %s3936_s29 = smov [#allocation18]   ;;  %s3937_s4 = smov [#allocation19]  }
  0x2f   :  { %s169_s0 = sshll.u32 %s3936_s29, 4  ;;  %s182_s16 = sshll.u32 %s3937_s4, 4  ;;  %s170_s0 = int_to_ptr.vmem [resolvable:$true] %s169_s0  ;;  %s183_s16 = int_to_ptr.vmem [resolvable:$true] %s182_s16 }
  0x30   :  { %175 = dma.hbm_to_vmem [thread:$0]  %s168_s28, 512, %s170_s0, [#allocation17], %s3926_s22, %s3926_s22, %s3927_s23  }
  0x31   :  { %188 = dma.hbm_to_vmem [thread:$0]  %s181_s14, 512, %s183_s16, [#allocation20], %s3926_s22, %s3926_s22, %s3927_s23  }
  0x32   :  { %3910 = dma.done.wait [#allocation3], 16  }
  0x33   :  { %3911 = vsyncadd [#allocation3], 4294967280 }
  0x34   :  { %3912 = dma.done.wait [#allocation5], 32  }
  0x35   :  { %3913 = vsyncadd [#allocation5], 4294967264 }
  0x36   :  { %3914 = dma.done.wait [#allocation8], 528  }
  0x37   :  { %3915 = vsyncadd [#allocation8], 4294966768 }
  0x38   :  { %3916 = dma.done.wait [#allocation11], 528  }
  0x39   :  { %3917 = vsyncadd [#allocation11], 4294966768 }
  0x3a   :  { %3918 = dma.done.wait [#allocation14], 1024  }
  0x3b   :  { %3919 = vsyncadd [#allocation14], 4294966272 }
  0x3c   :  { %3920 = dma.done.wait [#allocation17], 528  }
  0x3d   :  { %3921 = vsyncadd [#allocation17], 4294966768 }
  0x3e   :  { %3922 = dma.done.wait [#allocation20], 512  }
  0x3f   :  { %3923 = vsyncadd [#allocation20], 4294966784  ;;  %vm289_vm0 = vcmask 1044480   ;;  %s4962_s30 = sld [smem:[#allocation31_spill]]  ;;  %vm264_vm1 = vcmask 39936   ;;  %v3938_v6 = vmov 0.0  }
  0x40   :  { %s4963_s1 = sld [smem:[#allocation30_spill]]  ;;  %v4163_v8 = vld [vmem:[#allocation4] ss:$0 sm:$0xff]  ;;  %s3939_s27 = smov 32   ;;  %vm334_vm6 = vcmask 261120  }
  0x41   :  { %s4964_s9 = sld [smem:[#allocation28_spill]]  ;;  %s3940_s15 = smov 64  }
  0x42   :  { %s4965_s23 = sld [smem:[#allocation33_spill]] }
  0x45   :  { %v4109_v0 = vld [vmem:[%s4962_s30 + $0x18] sm:$0xff]  ;;  %v4114_v1 = vld [vmem:[%s4962_s30 + $0x10] sm:$0xff]  ;;  %v4120_v2 = vld [vmem:[%s4962_s30 + $0x8] sm:$0xff] }
  0x46   :  { %350 = vmatpush.msra.mxu1 %v4109_v0  ;;  %v258_v3 = vld [vmem:[%s4963_s1] sm:$0x1f]  ;;  %417 = vmatpush.msra.mxu2 %v4109_v0 }
  0x47   :  { %v243_v4 = vld [vmem:[%s4964_s9] sm:$0xff]  ;;  %3136 = vmatpush.msk.msra.mxu0 %vm289_vm0, %v258_v3  ;;  %481 = vmatpush.msra.mxu3 %v4109_v0  ;;  %v3129_v34 = vld [vmem:[%s4964_s9 + $0x8] sm:$0xff]  ;;  %v3130_v62 = vld [vmem:[%s4964_s9 + $0x10] sm:$0xff] }
  0x48   :  { %351 = vmatpush.msra.mxu1 %v4114_v1  ;;  %3137 = vmatmul.msk.f32.vlgmr.msra.gmra.mxu0 %vm264_vm1, %v243_v4  ;;  %v4136_v5 = vld [vmem:[%s4962_s30] sm:$0xff] }
  0x49   :  { %418 = vmatpush.msra.mxu2 %v4114_v1  ;;  %482 = vmatpush.msra.mxu3 %v4114_v1 }
  0x4a   :  { %352 = vmatpush.msra.mxu1 %v4120_v2 }
  0x4b   :  { %419 = vmatpush.msra.mxu2 %v4120_v2  ;;  %483 = vmatpush.msra.mxu3 %v4120_v2 }
  0x4c   :  { %353 = vmatpush.msra.mxu1 %v4136_v5 }
  0x4d   :  { %354 = vmatmul.f32.vlgmr.msra.gmra.mxu1 %v3938_v6  ;;  %420 = vmatpush.msra.mxu2 %v4136_v5 }
  0x4e   :  { %484 = vmatpush.msra.mxu3 %v4136_v5  ;;  %545 = vmatpush.msrb.mxu1 %v4109_v0 }
  0x4f   :  { %609 = vmatpush.msrb.mxu2 %v4109_v0 }
  0x50   :  { %673 = vmatpush.msrb.mxu3 %v4109_v0  ;;  %546 = vmatpush.msrb.mxu1 %v4114_v1 }
  0x51   :  { %610 = vmatpush.msrb.mxu2 %v4114_v1  ;;  %3138 = vmatmul.msk.f32.gmra.mxu0 %vm264_vm1, %v3129_v34 }
  0x52   :  { %674 = vmatpush.msrb.mxu3 %v4114_v1  ;;  %547 = vmatpush.msrb.mxu1 %v4120_v2 }
  0x53   :  { %611 = vmatpush.msrb.mxu2 %v4120_v2 }
  0x54   :  { %675 = vmatpush.msrb.mxu3 %v4120_v2  ;;  %548 = vmatpush.msrb.mxu1 %v4136_v5 }
  0x55   :  { %612 = vmatpush.msrb.mxu2 %v4136_v5 }
  0x56   :  { %676 = vmatpush.msrb.mxu3 %v4136_v5  ;;  %737 = vmatpush.msra.mxu1 %v4109_v0 }
  0x58   :  { %738 = vmatpush.msra.mxu1 %v4114_v1 }
  0x59   :  { %3139 = vmatmul.msk.f32.gmra.mxu0 %vm264_vm1, %v3130_v62 }
  0x5a   :  { %739 = vmatpush.msra.mxu1 %v4120_v2 }
  0x5c   :  { %740 = vmatpush.msra.mxu1 %v4136_v5 }
  0xc5   :  { %v310_v7 = vpop.f32.mrf.mxu0 }
  0xca   :  { %v355_v9 = vpop.f32.mrf.mxu1 }
  0xcb   :  { %v358_v10 = vadd.f32 %v355_v9, %v310_v7 }
  0xcd   :  { %v362_v11 = vadd.f32 %v4163_v8, %v358_v10 }
  0xce   :  { %v313_v36 = vpop.f32.mrf.mxu0 }
  0xcf   :  { %3284 = vtanh.f32 %v362_v11  ;;  %v3145_v13 = vmul.f32 -1.442695, %v362_v11 }
  0xd1   :  { %3286 = vpow2.f32 %v3145_v13 }
  0xd5   :  { %v3285_v12 = vpop.eup %3284 }
  0xd6   :  { %385 = vrot.lane.b32.xlu0 %v3285_v12, %s3939_s27 }
  0xd7   :  { %v3287_v14 = vpop.eup %3286 }
  0xd8   :  { %v366_v15 = vadd.f32 1.0, %v3287_v14 }
  0xda   :  { %3288 = vrcp.f32 %v366_v15  ;;  %v378_v21 = vand.u32 2147483648, %v366_v15  ;;  %vm372_vm3 = vweird.f32 %v366_v15  ;;  %v376_v22 = vand.u32 2147483647, %v366_v15 }
  0xdc   :  { %v379_v24 = vor.u32 1.1754944e-38, %v378_v21  ;;  %vm377_vm5 = vcmp.eq.f32.partialorder %v376_v22, 8.507059e+37 }
  0xe0   :  { %v3289_v16 = vpop.eup %3288 }
  0xe1   :  { %v368_v17 = vmul.f32 %v3289_v16, %v366_v15  ;;  %vm373_vm2 = vweird.f32 %v3289_v16 }
  0xe2   :  { %vm374_vm4 = vmor %vm372_vm3, %vm373_vm2 }
  0xe3   :  { %v369_v18 = vsub.f32 1.0, %v368_v17 }
  0xe5   :  { %v370_v19 = vmul.f32 %v3289_v16, %v369_v18 }
  0xe7   :  { %v371_v20 = vadd.f32 %v3289_v16, %v370_v19 }
  0xe9   :  { %v375_v23 = vsel %vm374_vm4, %v3289_v16, %v371_v20 }
  0xea   :  { %v380_v26 = vsel %vm377_vm5, %v379_v24, %v375_v23 }
  0xeb   :  { %v383_v28 = vmul.f32 0.0, %v380_v26 }
 0x148   :  { %v386_v25 = vpop.permute.xlu0 %385 }
 0x149   :  { %v388_v27 = vmul.f32 %v386_v25, %v380_v26 }
 0x14b   :  { %390 = vrot.lane.b32.xlu0 %v388_v27, %s3939_s27 }
 0x1bd   :  { %v391_v29 = vpop.permute.xlu0 %390 }
 0x1be   :  { %v393_v30 = vadd.f32 %v391_v29, %v383_v28  ;;  %v3131_v28 = vld [vmem:[%s4964_s9 + $0x18] sm:$0xff] }
 0x1bf   :  { %3140 = vmatmul.msk.f32.gmra.mxu0 %vm264_vm1, %v3131_v28 }
 0x1c0   :  { %3290 = vtanh.f32 %v393_v30 }
 0x1c6   :  { %v3291_v31 = vpop.eup %3290 }
 0x1c7   :  { %396 = vrot.lane.b32.xlu1 %v3291_v31, %s3939_s27 }
 0x239   :  { %v397_v32 = vpop.permute.xlu1 %396 }
 0x23a   :  { %v399_v33 = vmul.f32 %v397_v32, %v380_v26 }
 0x23c   :  { %401 = vrot.lane.b32.xlu1 %v399_v33, %s3940_s15 }
 0x2ae   :  { %v4174_v35 = vpop.permute.xlu1 %401 }
 0x2af   :  { %3146 = vmatmul.msk.f32.vlgmr.msra.gmra.mxu2 %vm334_vm6, %v4174_v35 }
 0x2b0   :  { %801 = vmatpush.msra.mxu2 %v4109_v0  ;;  %v316_v0 = vpop.f32.mrf.mxu0 }
 0x2b2   :  { %802 = vmatpush.msra.mxu2 %v4114_v1 }
 0x2b4   :  { %803 = vmatpush.msra.mxu2 %v4120_v2 }
 0x2b6   :  { %804 = vmatpush.msra.mxu2 %v4136_v5 }
 0x332   :  { %v422_v37 = vpop.f32.mrf.mxu2 }
 0x333   :  { %v425_v38 = vadd.f32 %v422_v37, %v313_v36 }
 0x335   :  { %v426_v39 = vadd.f32 %v4163_v8, %v425_v38 }
 0x337   :  { %3292 = vtanh.f32 %v426_v39  ;;  %v3147_v41 = vmul.f32 -1.442695, %v426_v39 }
 0x339   :  { %3294 = vpow2.f32 %v3147_v41 }
 0x33d   :  { %v3293_v40 = vpop.eup %3292 }
 0x33e   :  { %449 = vrot.lane.b32.xlu2 %v3293_v40, %s3939_s27 }
 0x33f   :  { %v3295_v42 = vpop.eup %3294 }
 0x340   :  { %v430_v43 = vadd.f32 1.0, %v3295_v42 }
 0x342   :  { %3296 = vrcp.f32 %v430_v43  ;;  %v442_v49 = vand.u32 2147483648, %v430_v43  ;;  %vm436_vm8 = vweird.f32 %v430_v43  ;;  %v440_v50 = vand.u32 2147483647, %v430_v43 }
 0x344   :  { %v443_v52 = vor.u32 1.1754944e-38, %v442_v49  ;;  %vm441_vm10 = vcmp.eq.f32.partialorder %v440_v50, 8.507059e+37 }
 0x348   :  { %v3297_v44 = vpop.eup %3296 }
 0x349   :  { %v432_v45 = vmul.f32 %v3297_v44, %v430_v43  ;;  %vm437_vm7 = vweird.f32 %v3297_v44 }
 0x34a   :  { %vm438_vm9 = vmor %vm436_vm8, %vm437_vm7 }
 0x34b   :  { %v433_v46 = vsub.f32 1.0, %v432_v45 }
 0x34d   :  { %v434_v47 = vmul.f32 %v3297_v44, %v433_v46 }
 0x34f   :  { %v435_v48 = vadd.f32 %v3297_v44, %v434_v47 }
 0x351   :  { %v439_v51 = vsel %vm438_vm9, %v3297_v44, %v435_v48 }
 0x352   :  { %v444_v54 = vsel %vm441_vm10, %v443_v52, %v439_v51 }
 0x353   :  { %v447_v56 = vmul.f32 %v444_v54, %v393_v30  ;;  %v319_v30 = vpop.f32.mrf.mxu0 }
 0x398   :  { %v450_v53 = vpop.permute.xlu2 %449 }
 0x399   :  { %v452_v55 = vmul.f32 %v450_v53, %v444_v54 }
 0x39b   :  { %454 = vrot.lane.b32.xlu2 %v452_v55, %s3939_s27 }
 0x3f5   :  { %v455_v57 = vpop.permute.xlu2 %454 }
 0x3f6   :  { %v457_v58 = vadd.f32 %v455_v57, %v447_v56  ;;  %v3132_v57 = vld [vmem:[%s4964_s9 + $0x20] sm:$0xff] }
 0x3f7   :  { %3141 = vmatmul.msk.f32.gmra.mxu0 %vm264_vm1, %v3132_v57 }
 0x3f8   :  { %3298 = vtanh.f32 %v457_v58 }
 0x3fe   :  { %v3299_v59 = vpop.eup %3298 }
 0x3ff   :  { %460 = vrot.lane.b32.xlu0 %v3299_v59, %s3939_s27 }
 0x471   :  { %v461_v60 = vpop.permute.xlu0 %460 }
 0x472   :  { %v463_v61 = vmul.f32 %v461_v60, %v444_v54 }
 0x474   :  { %465 = vrot.lane.b32.xlu1 %v463_v61, %s3940_s15  ;;  %v322_v59 = vpop.f32.mrf.mxu0 }
 0x4e6   :  { %v4191_v63 = vpop.permute.xlu1 %465 }
 0x4e7   :  { %3148 = vmatmul.msk.f32.vlgmr.msra.gmra.mxu3 %vm334_vm6, %v4191_v63 }
 0x56a   :  { %v486_v1 = vpop.f32.mrf.mxu3 }
 0x56b   :  { %v489_v2 = vadd.f32 %v486_v1, %v316_v0 }
 0x56d   :  { %v490_v3 = vadd.f32 %v4163_v8, %v489_v2 }
 0x56f   :  { %3300 = vtanh.f32 %v490_v3  ;;  %v3149_v5 = vmul.f32 -1.442695, %v490_v3 }
 0x571   :  { %3302 = vpow2.f32 %v3149_v5 }
 0x575   :  { %v3301_v4 = vpop.eup %3300 }
 0x576   :  { %513 = vrot.lane.b32.xlu2 %v3301_v4, %s3939_s27 }
 0x577   :  { %v3303_v7 = vpop.eup %3302 }
 0x578   :  { %v494_v9 = vadd.f32 1.0, %v3303_v7 }
 0x57a   :  { %3304 = vrcp.f32 %v494_v9  ;;  %v506_v15 = vand.u32 2147483648, %v494_v9  ;;  %vm500_vm12 = vweird.f32 %v494_v9  ;;  %v504_v16 = vand.u32 2147483647, %v494_v9 }
 0x57c   :  { %v507_v18 = vor.u32 1.1754944e-38, %v506_v15  ;;  %vm505_vm14 = vcmp.eq.f32.partialorder %v504_v16, 8.507059e+37 }
 0x580   :  { %v3305_v10 = vpop.eup %3304 }
 0x581   :  { %v496_v11 = vmul.f32 %v3305_v10, %v494_v9  ;;  %vm501_vm11 = vweird.f32 %v3305_v10 }
 0x582   :  { %vm502_vm13 = vmor %vm500_vm12, %vm501_vm11 }
 0x583   :  { %v497_v12 = vsub.f32 1.0, %v496_v11 }
 0x585   :  { %v498_v13 = vmul.f32 %v3305_v10, %v497_v12 }
 0x587   :  { %v499_v14 = vadd.f32 %v3305_v10, %v498_v13 }
 0x589   :  { %v503_v17 = vsel %vm502_vm13, %v3305_v10, %v499_v14 }
 0x58a   :  { %v508_v20 = vsel %vm505_vm14, %v507_v18, %v503_v17 }
 0x58b   :  { %v511_v22 = vmul.f32 %v508_v20, %v457_v58 }
 0x5d0   :  { %v514_v19 = vpop.permute.xlu2 %513 }
 0x5d1   :  { %v516_v21 = vmul.f32 %v514_v19, %v508_v20 }
 0x5d3   :  { %518 = vrot.lane.b32.xlu0 %v516_v21, %s3939_s27 }
 0x645   :  { %v519_v23 = vpop.permute.xlu0 %518 }
 0x646   :  { %v521_v24 = vadd.f32 %v519_v23, %v511_v22 }
 0x648   :  { %3306 = vtanh.f32 %v521_v24 }
 0x64e   :  { %v3307_v25 = vpop.eup %3306 }
 0x64f   :  { %524 = vrot.lane.b32.xlu1 %v3307_v25, %s3939_s27 }
 0x6c1   :  { %v525_v26 = vpop.permute.xlu1 %524 }
 0x6c2   :  { %v527_v27 = vmul.f32 %v525_v26, %v508_v20 }
 0x6c4   :  { %529 = vrot.lane.b32.xlu2 %v527_v27, %s3940_s15 }
 0x71e   :  { %v4204_v29 = vpop.permute.xlu2 %529 }
 0x71f   :  { %3150 = vmatmul.msk.f32.vlgmr.msrb.gmra.mxu1 %vm334_vm6, %v4204_v29 }
 0x79c   :  { %v550_v31 = vpop.f32.mrf.mxu1 }
 0x79d   :  { %v553_v32 = vadd.f32 %v550_v31, %v319_v30 }
 0x79f   :  { %v554_v33 = vadd.f32 %v4163_v8, %v553_v32 }
 0x7a1   :  { %3308 = vtanh.f32 %v554_v33  ;;  %v3151_v36 = vmul.f32 -1.442695, %v554_v33 }
 0x7a3   :  { %3310 = vpow2.f32 %v3151_v36 }
 0x7a7   :  { %v3309_v34 = vpop.eup %3308 }
 0x7a8   :  { %577 = vrot.lane.b32.xlu0 %v3309_v34, %s3939_s27 }
 0x7a9   :  { %v3311_v37 = vpop.eup %3310 }
 0x7aa   :  { %v558_v38 = vadd.f32 1.0, %v3311_v37 }
 0x7ac   :  { %3312 = vrcp.f32 %v558_v38  ;;  %v570_v44 = vand.u32 2147483648, %v558_v38  ;;  %vm564_vm2 = vweird.f32 %v558_v38  ;;  %v568_v45 = vand.u32 2147483647, %v558_v38 }
 0x7ae   :  { %v571_v47 = vor.u32 1.1754944e-38, %v570_v44  ;;  %vm569_vm4 = vcmp.eq.f32.partialorder %v568_v45, 8.507059e+37 }
 0x7b2   :  { %v3313_v39 = vpop.eup %3312 }
 0x7b3   :  { %v560_v40 = vmul.f32 %v3313_v39, %v558_v38  ;;  %vm565_vm15 = vweird.f32 %v3313_v39 }
 0x7b4   :  { %vm566_vm3 = vmor %vm564_vm2, %vm565_vm15 }
 0x7b5   :  { %v561_v41 = vsub.f32 1.0, %v560_v40 }
 0x7b7   :  { %v562_v42 = vmul.f32 %v3313_v39, %v561_v41 }
 0x7b9   :  { %v563_v43 = vadd.f32 %v3313_v39, %v562_v42 }
 0x7bb   :  { %v567_v46 = vsel %vm566_vm3, %v3313_v39, %v563_v43 }
 0x7bc   :  { %v572_v49 = vsel %vm569_vm4, %v571_v47, %v567_v46 }
 0x7bd   :  { %v575_v51 = vmul.f32 %v572_v49, %v521_v24  ;;  %v3133_v24 = vld [vmem:[%s4964_s9 + $0x28] sm:$0xff] }
 0x7be   :  { %3142 = vmatmul.msk.f32.gmra.mxu0 %vm264_vm1, %v3133_v24 }
 0x81a   :  { %v578_v48 = vpop.permute.xlu0 %577 }
 0x81b   :  { %v580_v50 = vmul.f32 %v578_v48, %v572_v49 }
 0x81d   :  { %582 = vrot.lane.b32.xlu1 %v580_v50, %s3939_s27 }
 0x83b   :  { %v325_v26 = vpop.f32.mrf.mxu0 }
 0x88f   :  { %v583_v52 = vpop.permute.xlu1 %582 }
 0x890   :  { %v585_v53 = vadd.f32 %v583_v52, %v575_v51  ;;  %v851_v52 = vld [vmem:[%s4965_s23 + $0x18] sm:$0xff] }
 0x891   :  { %3251 = vmatpush.msra.mxu3 %v851_v52  ;;  %874 = vmatpush.msrb.mxu1 %v851_v52 }
 0x892   :  { %3314 = vtanh.f32 %v585_v53 }
 0x898   :  { %v3315_v54 = vpop.eup %3314 }
 0x899   :  { %588 = vrot.lane.b32.xlu2 %v3315_v54, %s3939_s27  ;;  %v849_v54 = vld [vmem:[%s4965_s23 + $0x8] sm:$0xff] }
 0x8f3   :  { %v589_v55 = vpop.permute.xlu2 %588 }
 0x8f4   :  { %v591_v56 = vmul.f32 %v589_v55, %v572_v49  ;;  %v848_v55 = vld [vmem:[%s4965_s23] sm:$0xff] }
 0x8f6   :  { %593 = vrot.lane.b32.xlu0 %v591_v56, %s3940_s15 }
 0x968   :  { %v4217_v58 = vpop.permute.xlu0 %593 }
 0x969   :  { %3152 = vmatmul.msk.f32.vlgmr.msrb.gmra.mxu2 %vm334_vm6, %v4217_v58 }
 0x96a   :  { %3250 = vmatpush.msrb.mxu2 %v851_v52 }
 0x9ec   :  { %v614_v60 = vpop.f32.mrf.mxu2 }
 0x9ed   :  { %v617_v61 = vadd.f32 %v614_v60, %v322_v59  ;;  %v4257_v59 = vld [vmem:[%s4964_s9 + $0x30] sm:$0xff]  ;;  %v4264_v60 = vld [vmem:[%s4935_s6 + $0x18] sm:$0xff] }
 0x9ee   :  { %3143 = vmatmul.msk.f32.gmra.mxu0 %vm264_vm1, %v4257_v59 }
 0x9ef   :  { %v618_v62 = vadd.f32 %v4163_v8, %v617_v61 }
 0x9f1   :  { %3316 = vtanh.f32 %v618_v62  ;;  %v3153_v1 = vmul.f32 -1.442695, %v618_v62  ;;  %v4271_v62 = vld [vmem:[%s4935_s6 + $0x10] sm:$0xff] }
 0x9f3   :  { %3318 = vpow2.f32 %v3153_v1  ;;  %v4283_v1 = vld [vmem:[%s4935_s6] sm:$0xff] }
 0x9f7   :  { %v3317_v0 = vpop.eup %3316 }
 0x9f8   :  { %641 = vrot.lane.b32.xlu1 %v3317_v0, %s3939_s27  ;;  %v4277_v0 = vld [vmem:[%s4935_s6 + $0x8] sm:$0xff] }
 0x9f9   :  { %v3319_v2 = vpop.eup %3318 }
 0x9fa   :  { %v622_v3 = vadd.f32 1.0, %v3319_v2 }
 0x9fc   :  { %3320 = vrcp.f32 %v622_v3  ;;  %v634_v11 = vand.u32 2147483648, %v622_v3  ;;  %vm628_vm7 = vweird.f32 %v622_v3  ;;  %v632_v12 = vand.u32 2147483647, %v622_v3 }
 0x9fe   :  { %v635_v14 = vor.u32 1.1754944e-38, %v634_v11  ;;  %vm633_vm9 = vcmp.eq.f32.partialorder %v632_v12, 8.507059e+37 }
 0xa02   :  { %v3321_v4 = vpop.eup %3320 }
 0xa03   :  { %v624_v5 = vmul.f32 %v3321_v4, %v622_v3  ;;  %vm629_vm5 = vweird.f32 %v3321_v4 }
 0xa04   :  { %vm630_vm8 = vmor %vm628_vm7, %vm629_vm5 }
 0xa05   :  { %v625_v7 = vsub.f32 1.0, %v624_v5 }
 0xa07   :  { %v626_v9 = vmul.f32 %v3321_v4, %v625_v7  ;;  %v4308_v7 = vld [vmem:[#allocation6] ss:$0 sm:$0xff] }
 0xa09   :  { %v627_v10 = vadd.f32 %v3321_v4, %v626_v9 }
 0xa0b   :  { %v631_v13 = vsel %vm630_vm8, %v3321_v4, %v627_v10 }
 0xa0c   :  { %v636_v16 = vsel %vm633_vm9, %v635_v14, %v631_v13 }
 0xa0d   :  { %v639_v18 = vmul.f32 %v636_v16, %v585_v53  ;;  %v850_v53 = vld [vmem:[%s4965_s23 + $0x10] sm:$0xff] }
 0xa0e   :  { %3253 = vmatpush.msra.mxu3 %v850_v53  ;;  %875 = vmatpush.msrb.mxu1 %v850_v53 }
 0xa0f   :  { %3252 = vmatpush.msrb.mxu2 %v850_v53 }
 0xa10   :  { %3255 = vmatpush.msra.mxu3 %v849_v54  ;;  %876 = vmatpush.msrb.mxu1 %v849_v54 }
 0xa11   :  { %3254 = vmatpush.msrb.mxu2 %v849_v54 }
 0xa12   :  { %3257 = vmatpush.msra.mxu3 %v848_v55  ;;  %877 = vmatpush.msrb.mxu1 %v848_v55 }
 0xa13   :  { %3256 = vmatpush.msrb.mxu2 %v848_v55 }
 0xa6a   :  { %v642_v15 = vpop.permute.xlu1 %641 }
 0xa6b   :  { %v644_v17 = vmul.f32 %v642_v15, %v636_v16 }
 0xa6d   :  { %646 = vrot.lane.b32.xlu2 %v644_v17, %s3939_s27 }
 0xac7   :  { %v647_v19 = vpop.permute.xlu2 %646 }
 0xac8   :  { %v649_v20 = vadd.f32 %v647_v19, %v639_v18 }
 0xaca   :  { %3322 = vtanh.f32 %v649_v20 }
 0xad0   :  { %v3323_v21 = vpop.eup %3322 }
 0xad1   :  { %652 = vrot.lane.b32.xlu0 %v3323_v21, %s3939_s27 }
 0xb43   :  { %v653_v22 = vpop.permute.xlu0 %652 }
 0xb44   :  { %v655_v23 = vmul.f32 %v653_v22, %v636_v16 }
 0xb46   :  { %657 = vrot.lane.b32.xlu1 %v655_v23, %s3940_s15 }
 0xbb8   :  { %v4230_v25 = vpop.permute.xlu1 %657 }
 0xbb9   :  { %3154 = vmatmul.msk.f32.vlgmr.msrb.gmra.mxu3 %vm334_vm6, %v4230_v25 }
 0xc3c   :  { %v678_v27 = vpop.f32.mrf.mxu3 }
 0xc3d   :  { %v681_v28 = vadd.f32 %v678_v27, %v325_v26 }
 0xc3f   :  { %v682_v30 = vadd.f32 %v4163_v8, %v681_v28 }
 0xc41   :  { %3324 = vtanh.f32 %v682_v30  ;;  %v3155_v32 = vmul.f32 -1.442695, %v682_v30 }
 0xc43   :  { %3326 = vpow2.f32 %v3155_v32 }
 0xc47   :  { %v3325_v31 = vpop.eup %3324 }
 0xc48   :  { %705 = vrot.lane.b32.xlu2 %v3325_v31, %s3939_s27 }
 0xc49   :  { %v3327_v33 = vpop.eup %3326 }
 0xc4a   :  { %v686_v34 = vadd.f32 1.0, %v3327_v33 }
 0xc4c   :  { %3328 = vrcp.f32 %v686_v34  ;;  %v698_v41 = vand.u32 2147483648, %v686_v34  ;;  %vm692_vm11 = vweird.f32 %v686_v34  ;;  %v696_v42 = vand.u32 2147483647, %v686_v34 }
 0xc4e   :  { %v699_v44 = vor.u32 1.1754944e-38, %v698_v41  ;;  %vm697_vm13 = vcmp.eq.f32.partialorder %v696_v42, 8.507059e+37 }
 0xc52   :  { %v3329_v36 = vpop.eup %3328 }
 0xc53   :  { %v688_v37 = vmul.f32 %v3329_v36, %v686_v34  ;;  %vm693_vm10 = vweird.f32 %v3329_v36 }
 0xc54   :  { %vm694_vm12 = vmor %vm692_vm11, %vm693_vm10 }
 0xc55   :  { %v689_v38 = vsub.f32 1.0, %v688_v37 }
 0xc57   :  { %v690_v39 = vmul.f32 %v3329_v36, %v689_v38 }
 0xc59   :  { %v691_v40 = vadd.f32 %v3329_v36, %v690_v39 }
 0xc5b   :  { %v695_v43 = vsel %vm694_vm12, %v3329_v36, %v691_v40 }
 0xc5c   :  { %v700_v46 = vsel %vm697_vm13, %v699_v44, %v695_v43 }
 0xc5d   :  { %v703_v48 = vmul.f32 %v700_v46, %v649_v20 }
 0xca2   :  { %v706_v45 = vpop.permute.xlu2 %705 }
 0xca3   :  { %v708_v47 = vmul.f32 %v706_v45, %v700_v46 }
 0xca5   :  { %710 = vrot.lane.b32.xlu0 %v708_v47, %s3939_s27 }
 0xd17   :  { %v711_v49 = vpop.permute.xlu0 %710 }
 0xd18   :  { %v4237_v50 = vadd.f32 %v711_v49, %v703_v48 }
 0xd1a   :  { %3330 = vtanh.f32 %v4237_v50 }
 0xd20   :  { %v3331_v51 = vpop.eup %3330 }
 0xd21   :  { %716 = vrot.lane.b32.xlu1 %v3331_v51, %s3939_s27 }
 0xd93   :  { %v717_v56 = vpop.permute.xlu1 %716 }
 0xd94   :  { %v719_v57 = vmul.f32 %v717_v56, %v700_v46 }
 0xd96   :  { %721 = vrot.lane.b32.xlu2 %v719_v57, %s3940_s15  ;;  %v4325_v57 = vld [vmem:[%s4964_s9 + $0x38] sm:$0xff] }
 0xd97   :  { %3144 = vmatmul.msk.f32.gmra.mxu0 %vm264_vm1, %v4325_v57 }
 0xdf0   :  { %v722_v61 = vpop.permute.xlu2 %721 }
 0xdf1   :  { %3156 = vmatmul.msk.f32.vlgmr.msra.gmra.mxu1 %vm334_vm6, %v722_v61  ;;  %3165 = vmatmul.msk.f32.vlgmr.msra.gmra.mxu3 %vm334_vm6, %v722_v61 }
 0xdf2   :  { %915 = vmatpush.msra.mxu1 %v4264_v60 }
 0xdf4   :  { %916 = vmatpush.msra.mxu1 %v4271_v62 }
 0xdf6   :  { %917 = vmatpush.msra.mxu1 %v4277_v0 }
 0xdf8   :  { %918 = vmatpush.msra.mxu1 %v4283_v1 }
 0xdf9   :  { %3160 = vmatmul.msk.f32.vlgmr.msrb.gmra.mxu1 %vm334_vm6, %v4174_v35  ;;  %v328_v35 = vpop.f32.mrf.mxu0 }
 0xdfa   :  { %1046 = vmatpush.msrb.mxu1 %v4264_v60 }
 0xdfc   :  { %1047 = vmatpush.msrb.mxu1 %v4271_v62 }
 0xdfe   :  { %1048 = vmatpush.msrb.mxu1 %v4277_v0 }
 0xe00   :  { %1049 = vmatpush.msrb.mxu1 %v4283_v1 }
 0xe01   :  { %3161 = vmatmul.msk.f32.gmra.mxu1 %vm334_vm6, %v4191_v63 }
 0xe09   :  { %3162 = vmatmul.msk.f32.gmra.mxu1 %vm334_vm6, %v4204_v29 }
 0xe11   :  { %919 = vmatmul.f32.vlgmr.msra.gmra.mxu1 %v3938_v6 }
 0xe12   :  { %1174 = vmatpush.msra.mxu1 %v4264_v60 }
 0xe14   :  { %1175 = vmatpush.msra.mxu1 %v4271_v62 }
 0xe16   :  { %1176 = vmatpush.msra.mxu1 %v4277_v0 }
 0xe18   :  { %1177 = vmatpush.msra.mxu1 %v4283_v1 }
 0xe6e   :  { %v742_v2 = vpop.f32.mrf.mxu1 }
 0xe6f   :  { %v745_v3 = vadd.f32 %v742_v2, %v328_v35 }
 0xe71   :  { %v746_v4 = vadd.f32 %v4163_v8, %v745_v3 }
 0xe73   :  { %3332 = vtanh.f32 %v746_v4  ;;  %v3157_v8 = vmul.f32 -1.442695, %v746_v4 }
 0xe76   :  { %v879_v63 = vpop.f32.mrf.mxu1 }
 0xe79   :  { %v3333_v5 = vpop.eup %3332 }
 0xe7a   :  { %769 = vrot.lane.b32.xlu0 %v3333_v5, %s3939_s27 }
 0xe7e   :  { %v4304_v29 = vpop.f32.mrf.mxu1 }
 0xe86   :  { %v4306_v6 = vpop.f32.mrf.mxu1 }
 0xe8e   :  { %v920_v9 = vpop.f32.mrf.mxu1 }
 0xe8f   :  { %v923_v10 = vadd.f32 %v920_v9, %v879_v63 }
 0xe91   :  { %v927_v11 = vadd.f32 %v4308_v7, %v923_v10 }
 0xe93   :  { %3334 = vtanh.f32 %v927_v11  ;;  %v3168_v18 = vmul.f32 -1.442695, %v927_v11 }
 0xe94   :  { %3336 = vpow2.f32 %v3157_v8 }
 0xe99   :  { %v3335_v12 = vpop.eup %3334 }
 0xe9a   :  { %950 = vrot.lane.b32.xlu1 %v3335_v12, %s3939_s27  ;;  %v3337_v13 = vpop.eup %3336 }
 0xe9b   :  { %v750_v14 = vadd.f32 1.0, %v3337_v13 }
 0xe9d   :  { %3338 = vrcp.f32 %v750_v14  ;;  %v762_v21 = vand.u32 2147483648, %v750_v14  ;;  %vm756_vm15 = vweird.f32 %v750_v14  ;;  %v760_v22 = vand.u32 2147483647, %v750_v14 }
 0xe9e   :  { %3340 = vpow2.f32 %v3168_v18 }
 0xe9f   :  { %v763_v26 = vor.u32 1.1754944e-38, %v762_v21  ;;  %vm761_vm3 = vcmp.eq.f32.partialorder %v760_v22, 8.507059e+37 }
 0xea3   :  { %v3339_v15 = vpop.eup %3338 }
 0xea4   :  { %v752_v16 = vmul.f32 %v3339_v15, %v750_v14  ;;  %vm757_vm14 = vweird.f32 %v3339_v15  ;;  %v3341_v23 = vpop.eup %3340 }
 0xea5   :  { %vm758_vm2 = vmor %vm756_vm15, %vm757_vm14  ;;  %v931_v27 = vadd.f32 1.0, %v3341_v23 }
 0xea6   :  { %v753_v17 = vsub.f32 1.0, %v752_v16 }
 0xea7   :  { %3342 = vrcp.f32 %v931_v27  ;;  %v943_v38 = vand.u32 2147483648, %v931_v27  ;;  %vm937_vm5 = vweird.f32 %v931_v27  ;;  %v941_v39 = vand.u32 2147483647, %v931_v27 }
 0xea8   :  { %v754_v19 = vmul.f32 %v3339_v15, %v753_v17 }
 0xea9   :  { %v944_v41 = vor.u32 1.1754944e-38, %v943_v38  ;;  %vm942_vm8 = vcmp.eq.f32.partialorder %v941_v39, 8.507059e+37 }
 0xeaa   :  { %v755_v20 = vadd.f32 %v3339_v15, %v754_v19 }
 0xeac   :  { %v759_v24 = vsel %vm758_vm2, %v3339_v15, %v755_v20 }
 0xead   :  { %v764_v30 = vsel %vm761_vm3, %v763_v26, %v759_v24  ;;  %v3343_v32 = vpop.eup %3342 }
 0xeae   :  { %v933_v33 = vmul.f32 %v3343_v32, %v931_v27  ;;  %vm938_vm4 = vweird.f32 %v3343_v32  ;;  %v767_v45 = vmul.f32 %v764_v30, %v4237_v50 }
 0xeaf   :  { %vm939_vm7 = vmor %vm937_vm5, %vm938_vm4 }
 0xeb0   :  { %v934_v34 = vsub.f32 1.0, %v933_v33 }
 0xeb2   :  { %v935_v36 = vmul.f32 %v3343_v32, %v934_v34 }
 0xeb4   :  { %v936_v37 = vadd.f32 %v3343_v32, %v935_v36 }
 0xeb6   :  { %v940_v40 = vsel %vm939_vm7, %v3343_v32, %v936_v37 }
 0xeb7   :  { %v945_v43 = vsel %vm942_vm8, %v944_v41, %v940_v40 }
 0xeb8   :  { %v948_v49 = vmul.f32 0.0, %v945_v43 }
 0xeec   :  { %v770_v28 = vpop.permute.xlu0 %769 }
 0xeed   :  { %v772_v31 = vmul.f32 %v770_v28, %v764_v30 }
 0xeef   :  { %774 = vrot.lane.b32.xlu2 %v772_v31, %s3939_s27 }
 0xf0c   :  { %v951_v42 = vpop.permute.xlu1 %950 }
 0xf0d   :  { %v953_v44 = vmul.f32 %v951_v42, %v945_v43 }
 0xf0f   :  { %955 = vrot.lane.b32.xlu0 %v953_v44, %s3939_s27 }
 0xf49   :  { %v775_v46 = vpop.permute.xlu2 %774 }
 0xf4a   :  { %v4315_v47 = vadd.f32 %v775_v46, %v767_v45 }
 0xf4c   :  { %3344 = vtanh.f32 %v4315_v47 }
 0xf52   :  { %v3345_v48 = vpop.eup %3344 }
 0xf53   :  { %780 = vrot.lane.b32.xlu1 %v3345_v48, %s3939_s27 }
 0xf81   :  { %v956_v51 = vpop.permute.xlu0 %955 }
 0xf82   :  { %v958_v52 = vadd.f32 %v956_v51, %v948_v49 }
 0xf84   :  { %3346 = vtanh.f32 %v958_v52 }
 0xf8a   :  { %v3347_v53 = vpop.eup %3346 }
 0xf8b   :  { %961 = vrot.lane.b32.xlu2 %v3347_v53, %s3939_s27 }
 0xfc5   :  { %v781_v54 = vpop.permute.xlu1 %780 }
 0xfc6   :  { %v783_v55 = vmul.f32 %v781_v54, %v764_v30 }
 0xfc8   :  { %785 = vrot.lane.b32.xlu0 %v783_v55, %s3940_s15 }
 0xfe5   :  { %v962_v50 = vpop.permute.xlu2 %961 }
 0xfe6   :  { %v964_v56 = vmul.f32 %v962_v50, %v945_v43 }
 0xfe8   :  { %966 = vrot.lane.b32.xlu1 %v964_v56, %s3940_s15 }
0x103a   :  { %v786_v61 = vpop.permute.xlu0 %785 }
0x103b   :  { %3158 = vmatmul.msk.f32.vlgmr.msra.gmra.mxu2 %vm334_vm6, %v786_v61  ;;  %3166 = vmatmul.msk.f32.gmra.mxu3 %vm334_vm6, %v786_v61 }
0x103c   :  { %982 = vmatpush.msra.mxu2 %v4264_v60 }
0x103e   :  { %983 = vmatpush.msra.mxu2 %v4271_v62 }
0x1040   :  { %984 = vmatpush.msra.mxu2 %v4277_v0 }
0x1042   :  { %985 = vmatpush.msra.mxu2 %v4283_v1 }
0x1043   :  { %3163 = vmatmul.msk.f32.vlgmr.msrb.gmra.mxu2 %vm334_vm6, %v4217_v58 }
0x1044   :  { %1110 = vmatpush.msrb.mxu2 %v4264_v60 }
0x1046   :  { %1111 = vmatpush.msrb.mxu2 %v4271_v62 }
0x1048   :  { %1112 = vmatpush.msrb.mxu2 %v4277_v0 }
0x104a   :  { %1113 = vmatpush.msrb.mxu2 %v4283_v1 }
0x104b   :  { %3164 = vmatmul.msk.f32.gmra.mxu2 %vm334_vm6, %v4230_v25 }
0x105a   :  { %v967_v35 = vpop.permute.xlu1 %966 }
0x105b   :  { %3169 = vmatmul.msk.f32.vlgmr.msra.gmra.mxu2 %vm334_vm6, %v967_v35 }
0x105c   :  { %1238 = vmatpush.msra.mxu2 %v4264_v60 }
0x105e   :  { %1239 = vmatpush.msra.mxu2 %v4271_v62 }
0x1060   :  { %1240 = vmatpush.msra.mxu2 %v4277_v0 }
0x1062   :  { %1241 = vmatpush.msra.mxu2 %v4283_v1 }
0x10be   :  { %v4348_v58 = vpop.f32.mrf.mxu2 }
0x10c6   :  { %v4350_v2 = vpop.f32.mrf.mxu2 }
0x10ce   :  { %v4352_v3 = vpop.f32.mrf.mxu2 }
0x10de   :  { %v987_v4 = vpop.f32.mrf.mxu2 }
0x10df   :  { %v990_v25 = vadd.f32 %v987_v4, %v4304_v29 }
0x10e1   :  { %v991_v63 = vadd.f32 %v4308_v7, %v990_v25 }
0x10e3   :  { %3348 = vtanh.f32 %v991_v63  ;;  %v3170_v9 = vmul.f32 -1.442695, %v991_v63 }
0x10e5   :  { %3350 = vpow2.f32 %v3170_v9 }
0x10e9   :  { %v3349_v5 = vpop.eup %3348 }
0x10ea   :  { %1014 = vrot.lane.b32.xlu2 %v3349_v5, %s3939_s27 }
0x10eb   :  { %v3351_v10 = vpop.eup %3350 }
0x10ec   :  { %v995_v11 = vadd.f32 1.0, %v3351_v10 }
0x10ee   :  { %3352 = vrcp.f32 %v995_v11  ;;  %v1007_v16 = vand.u32 2147483648, %v995_v11  ;;  %vm1001_vm10 = vweird.f32 %v995_v11  ;;  %v1005_v29 = vand.u32 2147483647, %v995_v11 }
0x10f0   :  { %v1008_v18 = vor.u32 1.1754944e-38, %v1007_v16  ;;  %vm1006_vm12 = vcmp.eq.f32.partialorder %v1005_v29, 8.507059e+37 }
0x10f4   :  { %v3353_v12 = vpop.eup %3352 }
0x10f5   :  { %v997_v8 = vmul.f32 %v3353_v12, %v995_v11  ;;  %vm1002_vm9 = vweird.f32 %v3353_v12 }
0x10f6   :  { %vm1003_vm11 = vmor %vm1001_vm10, %vm1002_vm9 }
0x10f7   :  { %v998_v13 = vsub.f32 1.0, %v997_v8 }
0x10f9   :  { %v999_v14 = vmul.f32 %v3353_v12, %v998_v13 }
0x10fb   :  { %v1000_v15 = vadd.f32 %v3353_v12, %v999_v14 }
0x10fd   :  { %v1004_v17 = vsel %vm1003_vm11, %v3353_v12, %v1000_v15 }
0x10fe   :  { %v1009_v20 = vsel %vm1006_vm12, %v1008_v18, %v1004_v17 }
0x10ff   :  { %v1012_v22 = vmul.f32 %v1009_v20, %v958_v52 }
0x1144   :  { %v1015_v19 = vpop.permute.xlu2 %1014 }
0x1145   :  { %v1017_v21 = vmul.f32 %v1015_v19, %v1009_v20 }
0x1147   :  { %1019 = vrot.lane.b32.xlu0 %v1017_v21, %s3939_s27 }
0x11b9   :  { %v1020_v23 = vpop.permute.xlu0 %1019 }
0x11ba   :  { %v1022_v24 = vadd.f32 %v1020_v23, %v1012_v22 }
0x11bc   :  { %3354 = vtanh.f32 %v1022_v24 }
0x11c2   :  { %v3355_v26 = vpop.eup %3354 }
0x11c3   :  { %1025 = vrot.lane.b32.xlu1 %v3355_v26, %s3939_s27 }
0x1235   :  { %v1026_v27 = vpop.permute.xlu1 %1025 }
0x1236   :  { %v1028_v28 = vmul.f32 %v1026_v27, %v1009_v20 }
0x1238   :  { %1030 = vrot.lane.b32.xlu2 %v1028_v28, %s3940_s15 }
0x1292   :  { %v1031_v30 = vpop.permute.xlu2 %1030 }
0x1293   :  { %3171 = vmatmul.msk.f32.vlgmr.msrb.gmra.mxu1 %vm334_vm6, %v1031_v30 }
0x1294   :  { %1302 = vmatpush.msrb.mxu1 %v4264_v60 }
0x1296   :  { %1303 = vmatpush.msrb.mxu1 %v4271_v62 }
0x1298   :  { %1304 = vmatpush.msrb.mxu1 %v4277_v0 }
0x129a   :  { %1305 = vmatpush.msrb.mxu1 %v4283_v1 }
0x1310   :  { %v1051_v31 = vpop.f32.mrf.mxu1 }
0x1311   :  { %v1054_v32 = vadd.f32 %v1051_v31, %v4306_v6 }
0x1313   :  { %v1055_v33 = vadd.f32 %v4308_v7, %v1054_v32 }
0x1315   :  { %3356 = vtanh.f32 %v1055_v33  ;;  %v3172_v36 = vmul.f32 -1.442695, %v1055_v33 }
0x1317   :  { %3358 = vpow2.f32 %v3172_v36 }
0x131b   :  { %v3357_v34 = vpop.eup %3356 }
0x131c   :  { %1078 = vrot.lane.b32.xlu0 %v3357_v34, %s3939_s27 }
0x131d   :  { %v3359_v37 = vpop.eup %3358 }
0x131e   :  { %v1059_v38 = vadd.f32 1.0, %v3359_v37 }
0x1320   :  { %3360 = vrcp.f32 %v1059_v38  ;;  %v1071_v44 = vand.u32 2147483648, %v1059_v38  ;;  %vm1065_vm14 = vweird.f32 %v1059_v38  ;;  %v1069_v6 = vand.u32 2147483647, %v1059_v38 }
0x1322   :  { %v1072_v46 = vor.u32 1.1754944e-38, %v1071_v44  ;;  %vm1070_vm2 = vcmp.eq.f32.partialorder %v1069_v6, 8.507059e+37 }
0x1326   :  { %v3361_v39 = vpop.eup %3360 }
0x1327   :  { %v1061_v40 = vmul.f32 %v3361_v39, %v1059_v38  ;;  %vm1066_vm13 = vweird.f32 %v3361_v39 }
0x1328   :  { %vm1067_vm15 = vmor %vm1065_vm14, %vm1066_vm13 }
0x1329   :  { %v1062_v41 = vsub.f32 1.0, %v1061_v40 }
0x132b   :  { %v1063_v42 = vmul.f32 %v3361_v39, %v1062_v41 }
0x132d   :  { %v1064_v43 = vadd.f32 %v3361_v39, %v1063_v42 }
0x132f   :  { %v1068_v45 = vsel %vm1067_vm15, %v3361_v39, %v1064_v43 }
0x1330   :  { %v1073_v49 = vsel %vm1070_vm2, %v1072_v46, %v1068_v45 }
0x1331   :  { %v1076_v52 = vmul.f32 %v1073_v49, %v1022_v24 }
0x138e   :  { %v1079_v48 = vpop.permute.xlu0 %1078 }
0x138f   :  { %v1081_v51 = vmul.f32 %v1079_v48, %v1073_v49 }
0x1391   :  { %1083 = vrot.lane.b32.xlu1 %v1081_v51, %s3939_s27 }
0x1403   :  { %v1084_v53 = vpop.permute.xlu1 %1083 }
0x1404   :  { %v1086_v54 = vadd.f32 %v1084_v53, %v1076_v52  ;;  %v894_v52 = vpop.f32.mrf.mxu3 }
0x1406   :  { %3362 = vtanh.f32 %v1086_v54 }
0x140c   :  { %v3363_v55 = vpop.eup %3362 }
0x140d   :  { %1089 = vrot.lane.b32.xlu2 %v3363_v55, %s3939_s27 }
0x1467   :  { %v1090_v50 = vpop.permute.xlu2 %1089 }
0x1468   :  { %v1092_v56 = vmul.f32 %v1090_v50, %v1073_v49 }
0x146a   :  { %1094 = vrot.lane.b32.xlu0 %v1092_v56, %s3940_s15 }
0x14dc   :  { %v1095_v61 = vpop.permute.xlu0 %1094 }
0x14dd   :  { %3173 = vmatmul.msk.f32.vlgmr.msrb.gmra.mxu2 %vm334_vm6, %v1095_v61 }
0x14de   :  { %1366 = vmatpush.msrb.mxu2 %v4264_v60 }
0x14e0   :  { %1367 = vmatpush.msrb.mxu2 %v4271_v62 }
0x14e2   :  { %1368 = vmatpush.msrb.mxu2 %v4277_v0 }
0x14e4   :  { %1369 = vmatpush.msrb.mxu2 %v4283_v1 }
0x1560   :  { %v1115_v35 = vpop.f32.mrf.mxu2 }
0x1561   :  { %v1118_v4 = vadd.f32 %v1115_v35, %v4350_v2 }
0x1563   :  { %v1119_v25 = vadd.f32 %v4308_v7, %v1118_v4 }
0x1565   :  { %3364 = vtanh.f32 %v1119_v25  ;;  %v3174_v5 = vmul.f32 -1.442695, %v1119_v25 }
0x1567   :  { %3366 = vpow2.f32 %v3174_v5 }
0x156b   :  { %v3365_v63 = vpop.eup %3364 }
0x156c   :  { %1142 = vrot.lane.b32.xlu1 %v3365_v63, %s3939_s27 }
0x156d   :  { %v3367_v9 = vpop.eup %3366 }
0x156e   :  { %v1123_v10 = vadd.f32 1.0, %v3367_v9  ;;  %v331_v9 = vpop.f32.mrf.mxu0 }
0x1570   :  { %3368 = vrcp.f32 %v1123_v10  ;;  %v1135_v1 = vand.u32 2147483648, %v1123_v10  ;;  %vm1129_vm4 = vweird.f32 %v1123_v10  ;;  %v1133_v2 = vand.u32 2147483647, %v1123_v10 }
0x1572   :  { %v1136_v13 = vor.u32 1.1754944e-38, %v1135_v1  ;;  %vm1134_vm7 = vcmp.eq.f32.partialorder %v1133_v2, 8.507059e+37  ;;  %v3614_v1 = vld [vmem:[#allocation4] ss:$0 sm:$0xff] }
0x1576   :  { %v3369_v60 = vpop.eup %3368 }
0x1577   :  { %v1125_v62 = vmul.f32 %v3369_v60, %v1123_v10  ;;  %vm1130_vm3 = vweird.f32 %v3369_v60 }
0x1578   :  { %vm1131_vm5 = vmor %vm1129_vm4, %vm1130_vm3 }
0x1579   :  { %v1126_v11 = vsub.f32 1.0, %v1125_v62 }
0x157b   :  { %v1127_v0 = vmul.f32 %v3369_v60, %v1126_v11  ;;  %v809_v11 = vadd.f32 %v4348_v58, %v331_v9 }
0x157d   :  { %v1128_v12 = vadd.f32 %v3369_v60, %v1127_v0  ;;  %v810_v2 = vadd.f32 %v3614_v1, %v809_v11 }
0x157f   :  { %v1132_v8 = vsel %vm1131_vm5, %v3369_v60, %v1128_v12 }
0x1580   :  { %v1137_v15 = vsel %vm1134_vm7, %v1136_v13, %v1132_v8 }
0x1581   :  { %v1140_v29 = vmul.f32 %v1137_v15, %v1086_v54 }
0x15de   :  { %v1143_v14 = vpop.permute.xlu1 %1142 }
0x15df   :  { %v1145_v16 = vmul.f32 %v1143_v14, %v1137_v15 }
0x15e1   :  { %1147 = vrot.lane.b32.xlu2 %v1145_v16, %s3939_s27 }
0x163b   :  { %v1148_v17 = vpop.permute.xlu2 %1147 }
0x163c   :  { %v1150_v18 = vadd.f32 %v1148_v17, %v1140_v29 }
0x163e   :  { %3370 = vtanh.f32 %v1150_v18 }
0x1644   :  { %v3371_v19 = vpop.eup %3370 }
0x1645   :  { %1153 = vrot.lane.b32.xlu0 %v3371_v19, %s3939_s27 }
0x16b7   :  { %v1154_v20 = vpop.permute.xlu0 %1153 }
0x16b8   :  { %v1156_v21 = vmul.f32 %v1154_v20, %v1137_v15 }
0x16ba   :  { %1158 = vrot.lane.b32.xlu1 %v1156_v21, %s3940_s15 }
0x172c   :  { %v1159_v22 = vpop.permute.xlu1 %1158 }
0x172d   :  { %3175 = vmatmul.msk.f32.vlgmr.msra.gmra.mxu1 %vm334_vm6, %v1159_v22 }
0x17aa   :  { %v1179_v23 = vpop.f32.mrf.mxu1 }
0x17ab   :  { %v1182_v24 = vadd.f32 %v1179_v23, %v4352_v3 }
0x17ad   :  { %v1183_v26 = vadd.f32 %v4308_v7, %v1182_v24 }
0x17af   :  { %3372 = vtanh.f32 %v1183_v26  ;;  %v3176_v28 = vmul.f32 -1.442695, %v1183_v26 }
0x17b1   :  { %3374 = vpow2.f32 %v3176_v28 }
0x17b5   :  { %v3373_v27 = vpop.eup %3372 }
0x17b6   :  { %1206 = vrot.lane.b32.xlu2 %v3373_v27, %s3939_s27 }
0x17b7   :  { %v3375_v30 = vpop.eup %3374 }
0x17b8   :  { %v1187_v31 = vadd.f32 1.0, %v3375_v30 }
0x17ba   :  { %3376 = vrcp.f32 %v1187_v31  ;;  %v1199_v38 = vand.u32 2147483648, %v1187_v31  ;;  %vm1193_vm9 = vweird.f32 %v1187_v31  ;;  %v1197_v3 = vand.u32 2147483647, %v1187_v31 }
0x17bc   :  { %v1200_v40 = vor.u32 1.1754944e-38, %v1199_v38  ;;  %vm1198_vm11 = vcmp.eq.f32.partialorder %v1197_v3, 8.507059e+37  ;;  %v897_v3 = vpop.f32.mrf.mxu3 }
0x17c0   :  { %v3377_v32 = vpop.eup %3376 }
0x17c1   :  { %v1189_v33 = vmul.f32 %v3377_v32, %v1187_v31  ;;  %vm1194_vm8 = vweird.f32 %v3377_v32 }
0x17c2   :  { %vm1195_vm10 = vmor %vm1193_vm9, %vm1194_vm8 }
0x17c3   :  { %v1190_v34 = vsub.f32 1.0, %v1189_v33 }
0x17c5   :  { %v1191_v36 = vmul.f32 %v3377_v32, %v1190_v34 }
0x17c7   :  { %v1192_v37 = vadd.f32 %v3377_v32, %v1191_v36 }
0x17c9   :  { %v1196_v39 = vsel %vm1195_vm10, %v3377_v32, %v1192_v37 }
0x17ca   :  { %v1201_v42 = vsel %vm1198_vm11, %v1200_v40, %v1196_v39 }
0x17cb   :  { %v1204_v44 = vmul.f32 %v1201_v42, %v1150_v18  ;;  %v3159_v18 = vmul.f32 -1.442695, %v810_v2 }
0x1810   :  { %v1207_v41 = vpop.permute.xlu2 %1206 }
0x1811   :  { %v1209_v43 = vmul.f32 %v1207_v41, %v1201_v42 }
0x1813   :  { %1211 = vrot.lane.b32.xlu0 %v1209_v43, %s3939_s27 }
0x1885   :  { %v1212_v6 = vpop.permute.xlu0 %1211 }
0x1886   :  { %v1214_v45 = vadd.f32 %v1212_v6, %v1204_v44 }
0x1888   :  { %3378 = vtanh.f32 %v1214_v45 }
0x188e   :  { %v3379_v46 = vpop.eup %3378 }
0x188f   :  { %1217 = vrot.lane.b32.xlu1 %v3379_v46, %s3939_s27 }
0x1901   :  { %v1218_v48 = vpop.permute.xlu1 %1217 }
0x1902   :  { %v1220_v49 = vmul.f32 %v1218_v48, %v1201_v42 }
0x1904   :  { %1222 = vrot.lane.b32.xlu2 %v1220_v49, %s3940_s15 }
0x195e   :  { %v1223_v51 = vpop.permute.xlu2 %1222 }
0x195f   :  { %3177 = vmatmul.msk.f32.vlgmr.msra.gmra.mxu2 %vm334_vm6, %v1223_v51 }
0x19e2   :  { %v1243_v53 = vpop.f32.mrf.mxu2 }
0x19e3   :  { %v1246_v54 = vadd.f32 %v1243_v53, %v894_v52 }
0x19e5   :  { %v1247_v55 = vadd.f32 %v4308_v7, %v1246_v54 }
0x19e7   :  { %3380 = vtanh.f32 %v1247_v55  ;;  %v3178_v56 = vmul.f32 -1.442695, %v1247_v55 }
0x19e9   :  { %3382 = vpow2.f32 %v3178_v56 }
0x19ed   :  { %v3381_v50 = vpop.eup %3380 }
0x19ee   :  { %1270 = vrot.lane.b32.xlu0 %v3381_v50, %s3939_s27 }
0x19ef   :  { %v3383_v61 = vpop.eup %3382 }
0x19f0   :  { %v1251_v35 = vadd.f32 1.0, %v3383_v61 }
0x19f2   :  { %3384 = vrcp.f32 %v1251_v35  ;;  %v1263_v60 = vand.u32 2147483648, %v1251_v35  ;;  %vm1257_vm13 = vweird.f32 %v1251_v35  ;;  %v1261_v62 = vand.u32 2147483647, %v1251_v35 }
0x19f3   :  { %3386 = vtanh.f32 %v810_v2 }
0x19f4   :  { %v1264_v12 = vor.u32 1.1754944e-38, %v1263_v60  ;;  %vm1262_vm15 = vcmp.eq.f32.partialorder %v1261_v62, 8.507059e+37 }
0x19f8   :  { %v3385_v4 = vpop.eup %3384 }
0x19f9   :  { %v1253_v25 = vmul.f32 %v3385_v4, %v1251_v35  ;;  %vm1258_vm12 = vweird.f32 %v3385_v4  ;;  %v3387_v15 = vpop.eup %3386 }
0x19fa   :  { %vm1259_vm14 = vmor %vm1257_vm13, %vm1258_vm12 }
0x19fb   :  { %v1254_v63 = vsub.f32 1.0, %v1253_v25 }
0x19fd   :  { %v1255_v5 = vmul.f32 %v3385_v4, %v1254_v63 }
0x19ff   :  { %v1256_v10 = vadd.f32 %v3385_v4, %v1255_v5 }
0x1a01   :  { %v1260_v0 = vsel %vm1259_vm14, %v3385_v4, %v1256_v10 }
0x1a02   :  { %v1265_v13 = vsel %vm1262_vm15, %v1264_v12, %v1260_v0 }
0x1a03   :  { %v1268_v16 = vmul.f32 %v1265_v13, %v1214_v45 }
0x1a60   :  { %v1271_v8 = vpop.permute.xlu0 %1270 }
0x1a61   :  { %v1273_v14 = vmul.f32 %v1271_v8, %v1265_v13 }
0x1a63   :  { %1275 = vrot.lane.b32.xlu1 %v1273_v14, %s3939_s27 }
0x1a6b   :  { %833 = vrot.lane.b32.xlu1 %v3387_v15, %s3939_s27 }
0x1ad5   :  { %v1276_v29 = vpop.permute.xlu1 %1275 }
0x1ad6   :  { %v4395_v17 = vadd.f32 %v1276_v29, %v1268_v16 }
0x1ad8   :  { %3388 = vtanh.f32 %v4395_v17 }
0x1ad9   :  { %3390 = vpow2.f32 %v3159_v18 }
0x1add   :  { %v834_v33 = vpop.permute.xlu1 %833 }
0x1ade   :  { %v3389_v58 = vpop.eup %3388 }
0x1adf   :  { %1281 = vrot.lane.b32.xlu2 %v3389_v58, %s3939_s27  ;;  %v3391_v19 = vpop.eup %3390 }
0x1ae0   :  { %v814_v20 = vadd.f32 1.0, %v3391_v19 }
0x1ae2   :  { %3392 = vrcp.f32 %v814_v20  ;;  %v826_v30 = vand.u32 2147483648, %v814_v20  ;;  %vm820_vm3 = vweird.f32 %v814_v20  ;;  %v824_v31 = vand.u32 2147483647, %v814_v20 }
0x1ae4   :  { %v827_v34 = vor.u32 1.1754944e-38, %v826_v30  ;;  %vm825_vm5 = vcmp.eq.f32.partialorder %v824_v31, 8.507059e+37 }
0x1ae8   :  { %v3393_v21 = vpop.eup %3392 }
0x1ae9   :  { %v816_v22 = vmul.f32 %v3393_v21, %v814_v20  ;;  %vm821_vm2 = vweird.f32 %v3393_v21 }
0x1aea   :  { %vm822_vm4 = vmor %vm820_vm3, %vm821_vm2 }
0x1aeb   :  { %v817_v23 = vsub.f32 1.0, %v816_v22 }
0x1aed   :  { %v818_v24 = vmul.f32 %v3393_v21, %v817_v23 }
0x1aef   :  { %v819_v27 = vadd.f32 %v3393_v21, %v818_v24 }
0x1af1   :  { %v823_v32 = vsel %vm822_vm4, %v3393_v21, %v819_v27 }
0x1af2   :  { %v828_v36 = vsel %vm825_vm5, %v827_v34, %v823_v32  ;;  %v1416_v34 = vld [vmem:[#allocation7 + $0x18] sm:$0xff] }
0x1af3   :  { %v836_v37 = vmul.f32 %v834_v33, %v828_v36  ;;  %v831_v43 = vmul.f32 %v828_v36, %v4315_v47  ;;  %1438 = vmatpush.msra.mxu1 %v1416_v34 }
0x1b39   :  { %v1282_v26 = vpop.permute.xlu2 %1281 }
0x1b3a   :  { %v1284_v28 = vmul.f32 %v1282_v26, %v1265_v13 }
0x1b3c   :  { %1286 = vrot.lane.b32.xlu0 %v1284_v28, %s3940_s15 }
0x1b44   :  { %838 = vrot.lane.b32.xlu0 %v836_v37, %s3939_s27  ;;  %v1414_v37 = vld [vmem:[#allocation7 + $0x8] sm:$0xff] }
0x1bae   :  { %v1287_v38 = vpop.permute.xlu0 %1286 }
0x1baf   :  { %3179 = vmatmul.msk.f32.vlgmr.msrb.gmra.mxu1 %vm334_vm6, %v1287_v38  ;;  %v1413_v38 = vld [vmem:[#allocation7] sm:$0xff] }
0x1bb6   :  { %v839_v42 = vpop.permute.xlu0 %838 }
0x1bb7   :  { %v841_v44 = vadd.f32 %v839_v42, %v831_v43  ;;  %v3278_v42 = vld [vmem:[#allocation2] ss:$0 sm:$0xff] }
0x1bb8   :  { %v3615_v43 = vld [vmem:[%s4964_s9] sm:$0xff] }
0x1c2c   :  { %v1307_v39 = vpop.f32.mrf.mxu1 }
0x1c2d   :  { %v1310_v40 = vadd.f32 %v1307_v39, %v897_v3 }
0x1c2f   :  { %v1311_v41 = vadd.f32 %v4308_v7, %v1310_v40  ;;  %v1506_v40 = vld [vmem:[%s4942_s13] sm:$0x1f] }
0x1c31   :  { %3394 = vtanh.f32 %v1311_v41  ;;  %v3180_v46 = vmul.f32 -1.442695, %v1311_v41 }
0x1c32   :  { %3396 = vtanh.f32 %v841_v44  ;;  %v3616_v44 = vld [vmem:[%s4964_s9 + $0x8] sm:$0xff] }
0x1c33   :  { %3398 = vpow2.f32 %v3180_v46  ;;  %v3619_v46 = vld [vmem:[%s4964_s9 + $0x20] sm:$0xff] }
0x1c37   :  { %v3395_v6 = vpop.eup %3394 }
0x1c38   :  { %1334 = vrot.lane.b32.xlu2 %v3395_v6, %s3939_s27  ;;  %v3397_v45 = vpop.eup %3396  ;;  %v3617_v6 = vld [vmem:[%s4964_s9 + $0x10] sm:$0xff] }
0x1c39   :  { %v3399_v48 = vpop.eup %3398 }
0x1c3a   :  { %v1315_v49 = vadd.f32 1.0, %v3399_v48  ;;  %v3620_v48 = vld [vmem:[%s4964_s9 + $0x28] sm:$0xff] }
0x1c3c   :  { %3400 = vrcp.f32 %v1315_v49  ;;  %v1327_v47 = vand.u32 2147483648, %v1315_v49  ;;  %vm1321_vm8 = vweird.f32 %v1315_v49  ;;  %v1325_v50 = vand.u32 2147483647, %v1315_v49 }
0x1c3e   :  { %v1328_v61 = vor.u32 1.1754944e-38, %v1327_v47  ;;  %vm1326_vm10 = vcmp.eq.f32.partialorder %v1325_v50, 8.507059e+37  ;;  %v1480_v47 = vld [vmem:[#allocation13 + $0x8] sm:$0xff]  ;;  %v1479_v50 = vld [vmem:[#allocation13] sm:$0xff] }
0x1c40   :  { %844 = vrot.lane.b32.xlu2 %v3397_v45, %s3939_s27  ;;  %v3618_v45 = vld [vmem:[%s4964_s9 + $0x18] sm:$0xff] }
0x1c42   :  { %v3401_v51 = vpop.eup %3400 }
0x1c43   :  { %v1317_v52 = vmul.f32 %v3401_v51, %v1315_v49  ;;  %vm1322_vm7 = vweird.f32 %v3401_v51  ;;  %v1450_v49 = vld [vmem:[#allocation10 + $0x18] sm:$0xff] }
0x1c44   :  { %vm1323_vm9 = vmor %vm1321_vm8, %vm1322_vm7  ;;  %1470 = vmatpush.msra.mxu2 %v1450_v49 }
0x1c45   :  { %v1318_v53 = vsub.f32 1.0, %v1317_v52  ;;  %v1448_v52 = vld [vmem:[#allocation10 + $0x8] sm:$0xff] }
0x1c47   :  { %v1319_v54 = vmul.f32 %v3401_v51, %v1318_v53  ;;  %v1447_v53 = vld [vmem:[#allocation10] sm:$0xff] }
0x1c49   :  { %v1320_v55 = vadd.f32 %v3401_v51, %v1319_v54  ;;  %v1482_v54 = vld [vmem:[#allocation13 + $0x18] sm:$0xff] }
0x1c4b   :  { %v1324_v56 = vsel %vm1323_vm9, %v3401_v51, %v1320_v55  ;;  %v1449_v51 = vld [vmem:[#allocation10 + $0x10] sm:$0xff] }
0x1c4c   :  { %v1329_v4 = vsel %vm1326_vm10, %v1328_v61, %v1324_v56  ;;  %1471 = vmatpush.msra.mxu2 %v1449_v51  ;;  %v1481_v55 = vld [vmem:[#allocation13 + $0x10] sm:$0xff] }
0x1c4d   :  { %v1332_v9 = vmul.f32 %v1329_v4, %v4395_v17 }
0x1c4e   :  { %1472 = vmatpush.msra.mxu2 %v1448_v52 }
0x1c50   :  { %1473 = vmatpush.msra.mxu2 %v1447_v53 }
0x1c92   :  { %v1335_v35 = vpop.permute.xlu2 %1334 }
0x1c93   :  { %v1337_v25 = vmul.f32 %v1335_v35, %v1329_v4  ;;  %v4454_v35 = vld [vmem:[#allocation15 + $0x18] sm:$0xff] }
0x1c94   :  { %1652 = vmatpush.msrb.mxu0 %v4454_v35  ;;  %1908 = vmatpush.msrb.mxu3 %v4454_v35 }
0x1c95   :  { %1339 = vrot.lane.b32.xlu1 %v1337_v25, %s3939_s27  ;;  %v4460_v25 = vld [vmem:[#allocation15 + $0x8] sm:$0xff] }
0x1c9a   :  { %v845_v63 = vpop.permute.xlu2 %844 }
0x1c9b   :  { %v847_v5 = vmul.f32 %v845_v63, %v828_v36  ;;  %v1415_v36 = vld [vmem:[#allocation7 + $0x10] sm:$0xff]  ;;  %v4468_v63 = vld [vmem:[#allocation15] sm:$0xff] }
0x1c9c   :  { %1439 = vmatpush.msra.mxu1 %v1415_v36 }
0x1c9d   :  { %858 = vrot.lane.b32.xlu1 %v847_v5, %s3940_s15  ;;  %v3280_v5 = vld [vmem:[#allocation12] ss:$0 sm:$0xff] }
0x1c9e   :  { %1440 = vmatpush.msra.mxu1 %v1414_v37 }
0x1ca0   :  { %1441 = vmatpush.msra.mxu1 %v1413_v38 }
0x1ca2   :  { %3186 = vmatpush.msk.msrb.mxu1 %vm289_vm0, %v1506_v40 }
0x1d07   :  { %v1340_v10 = vpop.permute.xlu1 %1339 }
0x1d08   :  { %v1342_v60 = vadd.f32 %v1340_v10, %v1332_v9 }
0x1d0a   :  { %3402 = vtanh.f32 %v1342_v60 }
0x1d0f   :  { %v859_v62 = vpop.permute.xlu1 %858 }
0x1d10   :  { %v3403_v11 = vpop.eup %3402  ;;  %3167 = vmatmul.msk.f32.gmra.mxu3 %vm334_vm6, %v859_v62 }
0x1d11   :  { %1345 = vrot.lane.b32.xlu0 %v3403_v11, %s3939_s27 }
0x1d83   :  { %v1346_v0 = vpop.permute.xlu0 %1345 }
0x1d84   :  { %v1348_v12 = vmul.f32 %v1346_v0, %v1329_v4  ;;  %v4457_v4 = vld [vmem:[#allocation15 + $0x10] sm:$0xff] }
0x1d85   :  { %1653 = vmatpush.msrb.mxu0 %v4457_v4  ;;  %1909 = vmatpush.msrb.mxu3 %v4457_v4 }
0x1d86   :  { %1350 = vrot.lane.b32.xlu2 %v1348_v12, %s3940_s15  ;;  %v4497_v12 = vld [vmem:[#allocation16] ss:$0 sm:$0xff] }
0x1d87   :  { %1654 = vmatpush.msrb.mxu0 %v4460_v25  ;;  %1910 = vmatpush.msrb.mxu3 %v4460_v25 }
0x1d89   :  { %1655 = vmatpush.msrb.mxu0 %v4468_v63  ;;  %1911 = vmatpush.msrb.mxu3 %v4468_v63 }
0x1d8b   :  { %1780 = vmatpush.msra.mxu0 %v4454_v35  ;;  %2100 = vmatpush.msra.mxu3 %v4454_v35 }
0x1d8d   :  { %1781 = vmatpush.msra.mxu0 %v4457_v4  ;;  %2101 = vmatpush.msra.mxu3 %v4457_v4 }
0x1d8f   :  { %1782 = vmatpush.msra.mxu0 %v4460_v25  ;;  %2102 = vmatpush.msra.mxu3 %v4460_v25 }
0x1d91   :  { %1783 = vmatpush.msra.mxu0 %v4468_v63  ;;  %2103 = vmatpush.msra.mxu3 %v4468_v63 }
0x1d93   :  { %v900_v2 = vpop.f32.mrf.mxu3 }
0x1de0   :  { %v1351_v1 = vpop.permute.xlu2 %1350 }
0x1de1   :  { %3181 = vmatmul.msk.f32.vlgmr.msrb.gmra.mxu2 %vm334_vm6, %v1351_v1 }
0x1de2   :  { %1495 = vmatpush.msrb.mxu2 %v1482_v54 }
0x1de4   :  { %1496 = vmatpush.msrb.mxu2 %v1481_v55 }
0x1de6   :  { %1497 = vmatpush.msrb.mxu2 %v1480_v47 }
0x1de8   :  { %1498 = vmatpush.msrb.mxu2 %v1479_v50 }
0x1e64   :  { %v1371_v8 = vpop.f32.mrf.mxu2 }
0x1e65   :  { %v1374_v13 = vadd.f32 %v1371_v8, %v900_v2 }
0x1e67   :  { %v1375_v14 = vadd.f32 %v4308_v7, %v1374_v13 }
0x1e69   :  { %3404 = vtanh.f32 %v1375_v14  ;;  %v3182_v16 = vmul.f32 -1.442695, %v1375_v14 }
0x1e6b   :  { %3406 = vpow2.f32 %v3182_v16 }
0x1e6f   :  { %v3405_v15 = vpop.eup %3404 }
0x1e70   :  { %1398 = vrot.lane.b32.xlu0 %v3405_v15, %s3939_s27 }
0x1e71   :  { %v3407_v29 = vpop.eup %3406 }
0x1e72   :  { %v1379_v17 = vadd.f32 1.0, %v3407_v29 }
0x1e74   :  { %3408 = vrcp.f32 %v1379_v17  ;;  %v1391_v22 = vand.u32 2147483648, %v1379_v17  ;;  %vm1385_vm12 = vweird.f32 %v1379_v17  ;;  %v1389_v23 = vand.u32 2147483647, %v1379_v17 }
0x1e76   :  { %v1392_v24 = vor.u32 1.1754944e-38, %v1391_v22  ;;  %vm1390_vm14 = vcmp.eq.f32.partialorder %v1389_v23, 8.507059e+37 }
0x1e7a   :  { %v3409_v58 = vpop.eup %3408 }
0x1e7b   :  { %v1381_v18 = vmul.f32 %v3409_v58, %v1379_v17  ;;  %vm1386_vm11 = vweird.f32 %v3409_v58 }
0x1e7c   :  { %vm1387_vm13 = vmor %vm1385_vm12, %vm1386_vm11 }
0x1e7d   :  { %v1382_v19 = vsub.f32 1.0, %v1381_v18 }
0x1e7f   :  { %v1383_v20 = vmul.f32 %v3409_v58, %v1382_v19 }
0x1e81   :  { %v1384_v21 = vadd.f32 %v3409_v58, %v1383_v20 }
0x1e83   :  { %v1388_v7 = vsel %vm1387_vm13, %v3409_v58, %v1384_v21 }
0x1e84   :  { %v1393_v27 = vsel %vm1390_vm14, %v1392_v24, %v1388_v7 }
0x1e85   :  { %v1396_v30 = vmul.f32 %v1393_v27, %v1342_v60 }
0x1ee2   :  { %v1399_v26 = vpop.permute.xlu0 %1398 }
0x1ee3   :  { %v1401_v28 = vmul.f32 %v1399_v26, %v1393_v27 }
0x1ee5   :  { %1403 = vrot.lane.b32.xlu1 %v1401_v28, %s3939_s27 }
0x1f57   :  { %v1404_v31 = vpop.permute.xlu1 %1403 }
0x1f58   :  { %v1406_v32 = vadd.f32 %v1404_v31, %v1396_v30 }
0x1f5a   :  { %3410 = vtanh.f32 %v1406_v32 }
0x1f60   :  { %v3411_v33 = vpop.eup %3410 }
0x1f61   :  { %1409 = vrot.lane.b32.xlu2 %v3411_v33, %s3939_s27 }
0x1fbb   :  { %v1410_v3 = vpop.permute.xlu2 %1409 }
0x1fbc   :  { %v1412_v39 = vmul.f32 %v1410_v3, %v1393_v27 }
0x1fbe   :  { %1422 = vrot.lane.b32.xlu0 %v1412_v39, %s3940_s15 }
0x2030   :  { %v1423_v41 = vpop.permute.xlu0 %1422 }
0x2031   :  { %3183 = vmatmul.msk.f32.vlgmr.msra.gmra.mxu1 %vm334_vm6, %v1423_v41 }
0x2039   :  { %3187 = vmatmul.msk.f32.vlgmr.msrb.gmra.mxu1 %vm264_vm1, %v3278_v42 }
0x2041   :  { %3188 = vmatmul.msk.f32.gmra.mxu1 %vm264_vm1, %v3615_v43 }
0x2049   :  { %3189 = vmatmul.msk.f32.gmra.mxu1 %vm264_vm1, %v3616_v44 }
0x2051   :  { %3190 = vmatmul.msk.f32.gmra.mxu1 %vm264_vm1, %v3617_v6 }
0x2059   :  { %3191 = vmatmul.msk.f32.gmra.mxu1 %vm264_vm1, %v3618_v45 }
0x2061   :  { %3192 = vmatmul.msk.f32.gmra.mxu1 %vm264_vm1, %v3619_v46 }
0x2069   :  { %3193 = vmatmul.msk.f32.gmra.mxu1 %vm264_vm1, %v3620_v48 }
0x2071   :  { %3194 = vmatmul.msk.f32.gmra.mxu1 %vm264_vm1, %v4257_v59  ;;  %v3279_v59 = vld [vmem:[#allocation9] ss:$0 sm:$0xff] }
0x2079   :  { %3195 = vmatmul.msk.f32.gmra.mxu1 %vm264_vm1, %v4325_v57 }
0x20ae   :  { %v1443_v56 = vpop.f32.mrf.mxu1 }
0x20af   :  { %v1444_v61 = vadd.f32 %v3279_v59, %v1443_v56 }
0x20b1   :  { %3412 = vtanh.f32 %v1444_v61 }
0x20b6   :  { %v1529_v11 = vpop.f32.mrf.mxu1 }
0x20b7   :  { %v3413_v57 = vpop.eup %3412 }
0x20b8   :  { %3184 = vmatmul.msk.f32.vlgmr.msra.gmra.mxu2 %vm334_vm6, %v3413_v57 }
0x20b9   :  { %1585 = vmatpush.msra.mxu2 %v4454_v35 }
0x20bb   :  { %1586 = vmatpush.msra.mxu2 %v4457_v4 }
0x20bd   :  { %1587 = vmatpush.msra.mxu2 %v4460_v25 }
0x20be   :  { %v1532_v36 = vpop.f32.mrf.mxu1 }
0x20bf   :  { %1588 = vmatpush.msra.mxu2 %v4468_v63 }
0x20c0   :  { %3185 = vmatmul.msk.f32.vlgmr.msrb.gmra.mxu2 %vm334_vm6, %v3413_v57 }
0x20c1   :  { %1716 = vmatpush.msrb.mxu2 %v4454_v35 }
0x20c3   :  { %1717 = vmatpush.msrb.mxu2 %v4457_v4 }
0x20c5   :  { %1718 = vmatpush.msrb.mxu2 %v4460_v25 }
0x20c7   :  { %1719 = vmatpush.msrb.mxu2 %v4468_v63 }
0x213b   :  { %v1475_v9 = vpop.f32.mrf.mxu2 }
0x213c   :  { %v1476_v10 = vadd.f32 %v3280_v5, %v1475_v9 }
0x213e   :  { %3414 = vtanh.f32 %v1476_v10  ;;  %v1535_v10 = vpop.f32.mrf.mxu1 }
0x2143   :  { %v4494_v62 = vpop.f32.mrf.mxu2 }
0x2144   :  { %v4486_v60 = vpop.eup %3414  ;;  %v1556_v0 = vadd.f32 %v1529_v11, %v4494_v62  ;;  %v1557_v37 = vadd.f32 %v1532_v36, %v4494_v62  ;;  %v1558_v11 = vadd.f32 %v1535_v10, %v4494_v62 }
0x2145   :  { %3196 = vmatmul.msk.f32.vlgmr.msra.gmra.mxu2 %vm334_vm6, %v4486_v60 }
0x2146   :  { %1844 = vmatpush.msra.mxu2 %v4454_v35 }
0x2148   :  { %1845 = vmatpush.msra.mxu2 %v4457_v4 }
0x214a   :  { %1846 = vmatpush.msra.mxu2 %v4460_v25 }
0x214c   :  { %1847 = vmatpush.msra.mxu2 %v4468_v63 }
0x21c8   :  { %v1590_v1 = vpop.f32.mrf.mxu2 }
0x21c9   :  { %v1593_v2 = vadd.f32 %v1590_v1, %v1556_v0 }
0x21cb   :  { %v1597_v8 = vadd.f32 %v4497_v12, %v1593_v2 }
0x21cd   :  { %3416 = vtanh.f32 %v1597_v8  ;;  %v3197_v14 = vmul.f32 -1.442695, %v1597_v8 }
0x21cf   :  { %3418 = vpow2.f32 %v3197_v14 }
0x21d3   :  { %v3417_v13 = vpop.eup %3416 }
0x21d4   :  { %1620 = vrot.lane.b32.xlu1 %v3417_v13, %s3939_s27 }
0x21d5   :  { %v3419_v15 = vpop.eup %3418 }
0x21d6   :  { %v1601_v16 = vadd.f32 1.0, %v3419_v15 }
0x21d8   :  { %3420 = vrcp.f32 %v1601_v16  ;;  %v1613_v20 = vand.u32 2147483648, %v1601_v16  ;;  %vm1607_vm15 = vweird.f32 %v1601_v16  ;;  %v1611_v21 = vand.u32 2147483647, %v1601_v16 }
0x21da   :  { %v1614_v23 = vor.u32 1.1754944e-38, %v1613_v20  ;;  %vm1612_vm3 = vcmp.eq.f32.partialorder %v1611_v21, 8.507059e+37 }
0x21de   :  { %v3421_v29 = vpop.eup %3420 }
0x21df   :  { %v1603_v17 = vmul.f32 %v3421_v29, %v1601_v16  ;;  %vm1608_vm0 = vweird.f32 %v3421_v29 }
0x21e0   :  { %vm1609_vm2 = vmor %vm1607_vm15, %vm1608_vm0 }
0x21e1   :  { %v1604_v58 = vsub.f32 1.0, %v1603_v17 }
0x21e3   :  { %v1605_v18 = vmul.f32 %v3421_v29, %v1604_v58 }
0x21e5   :  { %v1606_v19 = vadd.f32 %v3421_v29, %v1605_v18 }
0x21e7   :  { %v1610_v22 = vsel %vm1609_vm2, %v3421_v29, %v1606_v19 }
0x21e8   :  { %v1615_v24 = vsel %vm1612_vm3, %v1614_v23, %v1610_v22 }
0x21e9   :  { %v1618_v27 = vmul.f32 %v4486_v60, %v1615_v24 }
0x2246   :  { %v1621_v7 = vpop.permute.xlu1 %1620 }
0x2247   :  { %v1623_v26 = vmul.f32 %v1621_v7, %v1615_v24 }
0x2249   :  { %1625 = vrot.lane.b32.xlu2 %v1623_v26, %s3939_s27 }
0x22a3   :  { %v1626_v28 = vpop.permute.xlu2 %1625 }
0x22a4   :  { %v1628_v30 = vadd.f32 %v1626_v28, %v1618_v27 }
0x22a6   :  { %3422 = vtanh.f32 %v1628_v30 }
0x22ac   :  { %v3423_v31 = vpop.eup %3422 }
0x22ad   :  { %1631 = vrot.lane.b32.xlu0 %v3423_v31, %s3939_s27 }
0x231f   :  { %v1632_v32 = vpop.permute.xlu0 %1631 }
0x2320   :  { %v1634_v33 = vmul.f32 %v1632_v32, %v1615_v24 }
0x2322   :  { %1636 = vrot.lane.b32.xlu1 %v1634_v33, %s3940_s15 }
0x2394   :  { %v4505_v34 = vpop.permute.xlu1 %1636 }
0x2395   :  { %3198 = vmatmul.msk.f32.vlgmr.msrb.gmra.mxu0 %vm334_vm6, %v4505_v34 }
0x2396   :  { %1972 = vmatpush.msrb.mxu0 %v4454_v35 }
0x2398   :  { %1973 = vmatpush.msrb.mxu0 %v4457_v4 }
0x239a   :  { %1974 = vmatpush.msrb.mxu0 %v4460_v25 }
0x239c   :  { %1975 = vmatpush.msrb.mxu0 %v4468_v63 }
0x2412   :  { %v1657_v38 = vpop.f32.mrf.mxu0 }
0x2413   :  { %v1660_v3 = vadd.f32 %v1657_v38, %v1557_v37 }
0x2415   :  { %v1661_v39 = vadd.f32 %v4497_v12, %v1660_v3 }
0x2417   :  { %3424 = vtanh.f32 %v1661_v39  ;;  %v3199_v41 = vmul.f32 -1.442695, %v1661_v39 }
0x2419   :  { %3426 = vpow2.f32 %v3199_v41 }
0x241d   :  { %v3425_v40 = vpop.eup %3424 }
0x241e   :  { %1684 = vrot.lane.b32.xlu2 %v3425_v40, %s3939_s27 }
0x241f   :  { %v3427_v42 = vpop.eup %3426 }
0x2420   :  { %v1665_v43 = vadd.f32 1.0, %v3427_v42 }
0x2422   :  { %3428 = vrcp.f32 %v1665_v43  ;;  %v1677_v49 = vand.u32 2147483648, %v1665_v43  ;;  %vm1671_vm5 = vweird.f32 %v1665_v43  ;;  %v1675_v51 = vand.u32 2147483647, %v1665_v43 }
0x2424   :  { %v1678_v53 = vor.u32 1.1754944e-38, %v1677_v49  ;;  %vm1676_vm8 = vcmp.eq.f32.partialorder %v1675_v51, 8.507059e+37 }
0x2428   :  { %v3429_v44 = vpop.eup %3428 }
0x2429   :  { %v1667_v6 = vmul.f32 %v3429_v44, %v1665_v43  ;;  %vm1672_vm4 = vweird.f32 %v3429_v44 }
0x242a   :  { %vm1673_vm7 = vmor %vm1671_vm5, %vm1672_vm4 }
0x242b   :  { %v1668_v45 = vsub.f32 1.0, %v1667_v6 }
0x242d   :  { %v1669_v46 = vmul.f32 %v3429_v44, %v1668_v45 }
0x242f   :  { %v1670_v48 = vadd.f32 %v3429_v44, %v1669_v46 }
0x2431   :  { %v1674_v52 = vsel %vm1673_vm7, %v3429_v44, %v1670_v48 }
0x2432   :  { %v1679_v55 = vsel %vm1676_vm8, %v1678_v53, %v1674_v52 }
0x2433   :  { %v1682_v50 = vmul.f32 %v1679_v55, %v1628_v30  ;;  %v1538_v30 = vpop.f32.mrf.mxu1 }
0x2434   :  { %v1559_v31 = vadd.f32 %v1538_v30, %v4494_v62 }
0x2478   :  { %v1685_v54 = vpop.permute.xlu2 %1684 }
0x2479   :  { %v1687_v47 = vmul.f32 %v1685_v54, %v1679_v55 }
0x247b   :  { %1689 = vrot.lane.b32.xlu0 %v1687_v47, %s3939_s27 }
0x24ed   :  { %v1690_v59 = vpop.permute.xlu0 %1689 }
0x24ee   :  { %v1692_v56 = vadd.f32 %v1690_v59, %v1682_v50 }
0x24f0   :  { %3430 = vtanh.f32 %v1692_v56 }
0x24f6   :  { %v3431_v61 = vpop.eup %3430 }
0x24f7   :  { %1695 = vrot.lane.b32.xlu1 %v3431_v61, %s3939_s27  ;;  %v1541_v61 = vpop.f32.mrf.mxu1 }
0x2569   :  { %v1696_v57 = vpop.permute.xlu1 %1695 }
0x256a   :  { %v1698_v5 = vmul.f32 %v1696_v57, %v1679_v55  ;;  %v1560_v57 = vadd.f32 %v1541_v61, %v4494_v62  ;;  %v2148_v61 = vld [vmem:[#allocation18 + $0x8] sm:$0xff] }
0x256c   :  { %1700 = vrot.lane.b32.xlu2 %v1698_v5, %s3940_s15 }
0x25c6   :  { %v4519_v9 = vpop.permute.xlu2 %1700 }
0x25c7   :  { %3200 = vmatmul.msk.f32.vlgmr.msrb.gmra.mxu2 %vm334_vm6, %v4519_v9 }
0x25c8   :  { %2036 = vmatpush.msrb.mxu2 %v4454_v35 }
0x25ca   :  { %2037 = vmatpush.msrb.mxu2 %v4457_v4 }
0x25cc   :  { %2038 = vmatpush.msrb.mxu2 %v4460_v25 }
0x25ce   :  { %2039 = vmatpush.msrb.mxu2 %v4468_v63 }
0x264a   :  { %v1721_v0 = vpop.f32.mrf.mxu2 }
0x264b   :  { %v1724_v1 = vadd.f32 %v1721_v0, %v1558_v11 }
0x264d   :  { %v1725_v2 = vadd.f32 %v4497_v12, %v1724_v1 }
0x264f   :  { %3432 = vtanh.f32 %v1725_v2  ;;  %v3201_v13 = vmul.f32 -1.442695, %v1725_v2 }
0x2651   :  { %3434 = vpow2.f32 %v3201_v13 }
0x2655   :  { %v3433_v8 = vpop.eup %3432 }
0x2656   :  { %1748 = vrot.lane.b32.xlu0 %v3433_v8, %s3939_s27 }
0x2657   :  { %v3435_v35 = vpop.eup %3434 }
0x2658   :  { %v1729_v14 = vadd.f32 1.0, %v3435_v35 }
0x265a   :  { %3436 = vrcp.f32 %v1729_v14  ;;  %v1741_v29 = vand.u32 2147483648, %v1729_v14  ;;  %vm1735_vm10 = vweird.f32 %v1729_v14  ;;  %v1739_v17 = vand.u32 2147483647, %v1729_v14 }
0x265c   :  { %v1742_v18 = vor.u32 1.1754944e-38, %v1741_v29  ;;  %vm1740_vm12 = vcmp.eq.f32.partialorder %v1739_v17, 8.507059e+37 }
0x2660   :  { %v3437_v4 = vpop.eup %3436 }
0x2661   :  { %v1731_v25 = vmul.f32 %v3437_v4, %v1729_v14  ;;  %vm1736_vm9 = vweird.f32 %v3437_v4 }
0x2662   :  { %vm1737_vm11 = vmor %vm1735_vm10, %vm1736_vm9 }
0x2663   :  { %v1732_v15 = vsub.f32 1.0, %v1731_v25 }
0x2665   :  { %v1733_v63 = vmul.f32 %v3437_v4, %v1732_v15 }
0x2667   :  { %v1734_v16 = vadd.f32 %v3437_v4, %v1733_v63 }
0x2669   :  { %v1738_v58 = vsel %vm1737_vm11, %v3437_v4, %v1734_v16 }
0x266a   :  { %v1743_v20 = vsel %vm1740_vm12, %v1742_v18, %v1738_v58 }
0x266b   :  { %v1746_v22 = vmul.f32 %v1743_v20, %v1692_v56 }
0x26c8   :  { %v1749_v19 = vpop.permute.xlu0 %1748 }
0x26c9   :  { %v1751_v21 = vmul.f32 %v1749_v19, %v1743_v20 }
0x26cb   :  { %1753 = vrot.lane.b32.xlu1 %v1751_v21, %s3939_s27 }
0x273d   :  { %v1754_v23 = vpop.permute.xlu1 %1753 }
0x273e   :  { %v1756_v7 = vadd.f32 %v1754_v23, %v1746_v22 }
0x2740   :  { %3438 = vtanh.f32 %v1756_v7 }
0x2746   :  { %v3439_v24 = vpop.eup %3438 }
0x2747   :  { %1759 = vrot.lane.b32.xlu2 %v3439_v24, %s3939_s27 }
0x27a1   :  { %v1760_v26 = vpop.permute.xlu2 %1759 }
0x27a2   :  { %v1762_v27 = vmul.f32 %v1760_v26, %v1743_v20  ;;  %v1544_v26 = vpop.f32.mrf.mxu1 }
0x27a4   :  { %1764 = vrot.lane.b32.xlu0 %v1762_v27, %s3940_s15  ;;  %v1561_v27 = vadd.f32 %v1544_v26, %v4494_v62  ;;  %v4586_v26 = vld [vmem:[#allocation19 + $0x8] sm:$0xff] }
0x2816   :  { %v4533_v28 = vpop.permute.xlu0 %1764 }
0x2817   :  { %3202 = vmatmul.msk.f32.vlgmr.msra.gmra.mxu0 %vm334_vm6, %v4533_v28 }
0x2894   :  { %v1785_v32 = vpop.f32.mrf.mxu0 }
0x2895   :  { %v1788_v33 = vadd.f32 %v1785_v32, %v1559_v31 }
0x2897   :  { %v1789_v36 = vadd.f32 %v4497_v12, %v1788_v33 }
0x2899   :  { %3440 = vtanh.f32 %v1789_v36  ;;  %v3203_v38 = vmul.f32 -1.442695, %v1789_v36 }
0x289b   :  { %3442 = vpow2.f32 %v3203_v38 }
0x289f   :  { %v3441_v37 = vpop.eup %3440 }
0x28a0   :  { %1812 = vrot.lane.b32.xlu1 %v3441_v37, %s3939_s27 }
0x28a1   :  { %v3443_v3 = vpop.eup %3442 }
0x28a2   :  { %v1793_v39 = vadd.f32 1.0, %v3443_v3 }
0x28a4   :  { %3444 = vrcp.f32 %v1793_v39  ;;  %v1805_v6 = vand.u32 2147483648, %v1793_v39  ;;  %vm1799_vm14 = vweird.f32 %v1793_v39  ;;  %v1803_v45 = vand.u32 2147483647, %v1793_v39 }
0x28a6   :  { %v1806_v48 = vor.u32 1.1754944e-38, %v1805_v6  ;;  %vm1804_vm15 = vcmp.eq.f32.partialorder %v1803_v45, 8.507059e+37 }
0x28aa   :  { %v3445_v40 = vpop.eup %3444 }
0x28ab   :  { %v1795_v41 = vmul.f32 %v3445_v40, %v1793_v39  ;;  %vm1800_vm13 = vweird.f32 %v3445_v40 }
0x28ac   :  { %vm1801_vm0 = vmor %vm1799_vm14, %vm1800_vm13 }
0x28ad   :  { %v1796_v42 = vsub.f32 1.0, %v1795_v41 }
0x28af   :  { %v1797_v43 = vmul.f32 %v3445_v40, %v1796_v42 }
0x28b1   :  { %v1798_v44 = vadd.f32 %v3445_v40, %v1797_v43 }
0x28b3   :  { %v1802_v46 = vsel %vm1801_vm0, %v3445_v40, %v1798_v44 }
0x28b4   :  { %v1807_v51 = vsel %vm1804_vm15, %v1806_v48, %v1802_v46 }
0x28b5   :  { %v1810_v53 = vmul.f32 %v1807_v51, %v1756_v7 }
0x2912   :  { %v1813_v49 = vpop.permute.xlu1 %1812 }
0x2913   :  { %v1815_v52 = vmul.f32 %v1813_v49, %v1807_v51 }
0x2915   :  { %1817 = vrot.lane.b32.xlu2 %v1815_v52, %s3939_s27 }
0x296f   :  { %v1818_v54 = vpop.permute.xlu2 %1817 }
0x2970   :  { %v1820_v55 = vadd.f32 %v1818_v54, %v1810_v53 }
0x2972   :  { %3446 = vtanh.f32 %v1820_v55 }
0x2978   :  { %v3447_v47 = vpop.eup %3446 }
0x2979   :  { %1823 = vrot.lane.b32.xlu0 %v3447_v47, %s3939_s27 }
0x29eb   :  { %v1824_v50 = vpop.permute.xlu0 %1823 }
0x29ec   :  { %v1826_v59 = vmul.f32 %v1824_v50, %v1807_v51  ;;  %v2150_v50 = vld [vmem:[#allocation18 + $0x18] sm:$0xff] }
0x29ed   :  { %2173 = vmatpush.msra.mxu0 %v2150_v50 }
0x29ee   :  { %1828 = vrot.lane.b32.xlu1 %v1826_v59, %s3940_s15  ;;  %v2149_v59 = vld [vmem:[#allocation18 + $0x10] sm:$0xff] }
0x29ef   :  { %2174 = vmatpush.msra.mxu0 %v2149_v59 }
0x29f1   :  { %2175 = vmatpush.msra.mxu0 %v2148_v61 }
0x2a60   :  { %v4543_v56 = vpop.permute.xlu1 %1828 }
0x2a61   :  { %3204 = vmatmul.msk.f32.vlgmr.msra.gmra.mxu2 %vm334_vm6, %v4543_v56 }
0x2ae4   :  { %v1849_v5 = vpop.f32.mrf.mxu2 }
0x2ae5   :  { %v1852_v10 = vadd.f32 %v1849_v5, %v1560_v57  ;;  %v2147_v57 = vld [vmem:[#allocation18] sm:$0xff] }
0x2ae6   :  { %2176 = vmatpush.msra.mxu0 %v2147_v57 }
0x2ae7   :  { %v1853_v11 = vadd.f32 %v4497_v12, %v1852_v10  ;;  %v1547_v10 = vpop.f32.mrf.mxu1 }
0x2ae9   :  { %3448 = vtanh.f32 %v1853_v11  ;;  %v3205_v1 = vmul.f32 -1.442695, %v1853_v11  ;;  %v1562_v11 = vadd.f32 %v1547_v10, %v4494_v62 }
0x2aeb   :  { %3450 = vpow2.f32 %v3205_v1 }
0x2aef   :  { %v3449_v0 = vpop.eup %3448 }
0x2af0   :  { %1876 = vrot.lane.b32.xlu2 %v3449_v0, %s3939_s27 }
0x2af1   :  { %v3451_v2 = vpop.eup %3450 }
0x2af2   :  { %v1857_v8 = vadd.f32 1.0, %v3451_v2 }
0x2af4   :  { %3452 = vrcp.f32 %v1857_v8  ;;  %v1869_v15 = vand.u32 2147483648, %v1857_v8  ;;  %vm1863_vm3 = vweird.f32 %v1857_v8  ;;  %v1867_v63 = vand.u32 2147483647, %v1857_v8 }
0x2af6   :  { %v1870_v29 = vor.u32 1.1754944e-38, %v1869_v15  ;;  %vm1868_vm5 = vcmp.eq.f32.partialorder %v1867_v63, 8.507059e+37 }
0x2afa   :  { %v3453_v13 = vpop.eup %3452 }
0x2afb   :  { %v1859_v35 = vmul.f32 %v3453_v13, %v1857_v8  ;;  %vm1864_vm2 = vweird.f32 %v3453_v13 }
0x2afc   :  { %vm1865_vm4 = vmor %vm1863_vm3, %vm1864_vm2 }
0x2afd   :  { %v1860_v14 = vsub.f32 1.0, %v1859_v35 }
0x2aff   :  { %v1861_v4 = vmul.f32 %v3453_v13, %v1860_v14 }
0x2b01   :  { %v1862_v25 = vadd.f32 %v3453_v13, %v1861_v4 }
0x2b03   :  { %v1866_v16 = vsel %vm1865_vm4, %v3453_v13, %v1862_v25 }
0x2b04   :  { %v1871_v58 = vsel %vm1868_vm5, %v1870_v29, %v1866_v16 }
0x2b05   :  { %v1874_v19 = vmul.f32 %v1871_v58, %v1820_v55 }
0x2b4a   :  { %v1877_v17 = vpop.permute.xlu2 %1876 }
0x2b4b   :  { %v1879_v18 = vmul.f32 %v1877_v17, %v1871_v58 }
0x2b4d   :  { %1881 = vrot.lane.b32.xlu0 %v1879_v18, %s3939_s27 }
0x2bbf   :  { %v1882_v20 = vpop.permute.xlu0 %1881 }
0x2bc0   :  { %v1884_v21 = vadd.f32 %v1882_v20, %v1874_v19 }
0x2bc2   :  { %3454 = vtanh.f32 %v1884_v21 }
0x2bc8   :  { %v3455_v22 = vpop.eup %3454 }
0x2bc9   :  { %1887 = vrot.lane.b32.xlu1 %v3455_v22, %s3939_s27 }
0x2c3b   :  { %v1888_v23 = vpop.permute.xlu1 %1887 }
0x2c3c   :  { %v1890_v7 = vmul.f32 %v1888_v23, %v1871_v58 }
0x2c3e   :  { %1892 = vrot.lane.b32.xlu2 %v1890_v7, %s3940_s15  ;;  %v4580_v7 = vld [vmem:[#allocation19 + $0x18] sm:$0xff] }
0x2c3f   :  { %2217 = vmatpush.msra.mxu2 %v4580_v7 }
0x2c98   :  { %v1893_v24 = vpop.permute.xlu2 %1892 }
0x2c99   :  { %3206 = vmatmul.msk.f32.vlgmr.msrb.gmra.mxu3 %vm334_vm6, %v1893_v24 }
0x2c9a   :  { %2284 = vmatpush.msrb.mxu3 %v4580_v7 }
0x2d1c   :  { %v1913_v30 = vpop.f32.mrf.mxu3 }
0x2d1d   :  { %v1916_v31 = vadd.f32 %v1913_v30, %v1561_v27  ;;  %v4590_v27 = vld [vmem:[#allocation19] sm:$0xff] }
0x2d1f   :  { %v1917_v32 = vadd.f32 %v4497_v12, %v1916_v31  ;;  %v1550_v31 = vpop.f32.mrf.mxu1 }
0x2d21   :  { %3456 = vtanh.f32 %v1917_v32  ;;  %v3207_v36 = vmul.f32 -1.442695, %v1917_v32  ;;  %v1563_v32 = vadd.f32 %v1550_v31, %v4494_v62 }
0x2d23   :  { %3458 = vpow2.f32 %v3207_v36 }
0x2d27   :  { %v3457_v33 = vpop.eup %3456 }
0x2d28   :  { %1940 = vrot.lane.b32.xlu0 %v3457_v33, %s3939_s27 }
0x2d29   :  { %v3459_v37 = vpop.eup %3458 }
0x2d2a   :  { %v1921_v38 = vadd.f32 1.0, %v3459_v37 }
0x2d2c   :  { %3460 = vrcp.f32 %v1921_v38  ;;  %v1933_v43 = vand.u32 2147483648, %v1921_v38  ;;  %vm1927_vm8 = vweird.f32 %v1921_v38  ;;  %v1931_v44 = vand.u32 2147483647, %v1921_v38 }
0x2d2e   :  { %v1934_v45 = vor.u32 1.1754944e-38, %v1933_v43  ;;  %vm1932_vm10 = vcmp.eq.f32.partialorder %v1931_v44, 8.507059e+37 }
0x2d32   :  { %v3461_v3 = vpop.eup %3460 }
0x2d33   :  { %v1923_v39 = vmul.f32 %v3461_v3, %v1921_v38  ;;  %vm1928_vm7 = vweird.f32 %v3461_v3  ;;  %v4613_v38 = vld [vmem:[%s4947_s18] ss:$0 sm:$0xff] }
0x2d34   :  { %vm1929_vm9 = vmor %vm1927_vm8, %vm1928_vm7 }
0x2d35   :  { %v1924_v40 = vsub.f32 1.0, %v1923_v39 }
0x2d37   :  { %v1925_v41 = vmul.f32 %v3461_v3, %v1924_v40 }
0x2d39   :  { %v1926_v42 = vadd.f32 %v3461_v3, %v1925_v41 }
0x2d3b   :  { %v1930_v6 = vsel %vm1929_vm9, %v3461_v3, %v1926_v42 }
0x2d3c   :  { %v1935_v48 = vsel %vm1932_vm10, %v1934_v45, %v1930_v6 }
0x2d3d   :  { %v1938_v51 = vmul.f32 %v1935_v48, %v1884_v21 }
0x2d9a   :  { %v1941_v46 = vpop.permute.xlu0 %1940 }
0x2d9b   :  { %v1943_v49 = vmul.f32 %v1941_v46, %v1935_v48 }
0x2d9d   :  { %1945 = vrot.lane.b32.xlu1 %v1943_v49, %s3939_s27 }
0x2e0f   :  { %v1946_v52 = vpop.permute.xlu1 %1945 }
0x2e10   :  { %v1948_v53 = vadd.f32 %v1946_v52, %v1938_v51 }
0x2e12   :  { %3462 = vtanh.f32 %v1948_v53 }
0x2e18   :  { %v3463_v54 = vpop.eup %3462 }
0x2e19   :  { %1951 = vrot.lane.b32.xlu2 %v3463_v54, %s3939_s27 }
0x2e73   :  { %v1952_v55 = vpop.permute.xlu2 %1951 }
0x2e74   :  { %v1954_v47 = vmul.f32 %v1952_v55, %v1935_v48 }
0x2e76   :  { %1956 = vrot.lane.b32.xlu0 %v1954_v47, %s3940_s15 }
0x2ee8   :  { %v1957_v5 = vpop.permute.xlu0 %1956 }
0x2ee9   :  { %3208 = vmatmul.msk.f32.vlgmr.msrb.gmra.mxu0 %vm334_vm6, %v1957_v5 }
0x2ef1   :  { %3214 = vmatmul.msk.f32.vlgmr.msra.gmra.mxu0 %vm334_vm6, %v4505_v34 }
0x2ef9   :  { %3215 = vmatmul.msk.f32.gmra.mxu0 %vm334_vm6, %v4519_v9 }
0x2f01   :  { %3216 = vmatmul.msk.f32.gmra.mxu0 %vm334_vm6, %v4533_v28 }
0x2f09   :  { %3217 = vmatmul.msk.f32.gmra.mxu0 %vm334_vm6, %v4543_v56 }
0x2f11   :  { %3218 = vmatmul.msk.f32.gmra.mxu0 %vm334_vm6, %v1893_v24  ;;  %v4582_v24 = vld [vmem:[#allocation19 + $0x10] sm:$0xff] }
0x2f12   :  { %2218 = vmatpush.msra.mxu2 %v4582_v24  ;;  %2285 = vmatpush.msrb.mxu3 %v4582_v24 }
0x2f14   :  { %2219 = vmatpush.msra.mxu2 %v4586_v26  ;;  %2286 = vmatpush.msrb.mxu3 %v4586_v26 }
0x2f16   :  { %2220 = vmatpush.msra.mxu2 %v4590_v27  ;;  %2287 = vmatpush.msrb.mxu3 %v4590_v27 }
0x2f19   :  { %3219 = vmatmul.msk.f32.gmra.mxu0 %vm334_vm6, %v1957_v5 }
0x2f66   :  { %v1977_v0 = vpop.f32.mrf.mxu0 }
0x2f67   :  { %v1980_v1 = vadd.f32 %v1977_v0, %v1562_v11 }
0x2f69   :  { %v1981_v34 = vadd.f32 %v4497_v12, %v1980_v1 }
0x2f6b   :  { %3464 = vtanh.f32 %v1981_v34  ;;  %v3209_v9 = vmul.f32 -1.442695, %v1981_v34 }
0x2f6d   :  { %3466 = vpow2.f32 %v3209_v9 }
0x2f6e   :  { %v2178_v3 = vpop.f32.mrf.mxu0 }
0x2f71   :  { %v3465_v2 = vpop.eup %3464 }
0x2f72   :  { %2004 = vrot.lane.b32.xlu1 %v3465_v2, %s3939_s27 }
0x2f73   :  { %v3467_v28 = vpop.eup %3466 }
0x2f74   :  { %v1985_v8 = vadd.f32 1.0, %v3467_v28 }
0x2f76   :  { %3468 = vrcp.f32 %v1985_v8  ;;  %v1997_v25 = vand.u32 2147483648, %v1985_v8  ;;  %vm1991_vm12 = vweird.f32 %v1985_v8  ;;  %v1995_v15 = vand.u32 2147483647, %v1985_v8 }
0x2f78   :  { %v1998_v16 = vor.u32 1.1754944e-38, %v1997_v25  ;;  %vm1996_vm14 = vcmp.eq.f32.partialorder %v1995_v15, 8.507059e+37 }
0x2f7c   :  { %v3469_v56 = vpop.eup %3468 }
0x2f7d   :  { %v1987_v13 = vmul.f32 %v3469_v56, %v1985_v8  ;;  %vm1992_vm11 = vweird.f32 %v3469_v56 }
0x2f7e   :  { %vm1993_vm13 = vmor %vm1991_vm12, %vm1992_vm11 }
0x2f7f   :  { %v1988_v35 = vsub.f32 1.0, %v1987_v13 }
0x2f81   :  { %v1989_v14 = vmul.f32 %v3469_v56, %v1988_v35 }
0x2f83   :  { %v1990_v4 = vadd.f32 %v3469_v56, %v1989_v14 }
0x2f85   :  { %v1994_v63 = vsel %vm1993_vm13, %v3469_v56, %v1990_v4 }
0x2f86   :  { %v1999_v17 = vsel %vm1996_vm14, %v1998_v16, %v1994_v63 }
0x2f87   :  { %v2002_v18 = vmul.f32 %v1999_v17, %v1948_v53 }
0x2fe4   :  { %v2005_v29 = vpop.permute.xlu1 %2004 }
0x2fe5   :  { %v2007_v58 = vmul.f32 %v2005_v29, %v1999_v17 }
0x2fe7   :  { %2009 = vrot.lane.b32.xlu2 %v2007_v58, %s3939_s27 }
0x3041   :  { %v2010_v19 = vpop.permute.xlu2 %2009 }
0x3042   :  { %v4575_v20 = vadd.f32 %v2010_v19, %v2002_v18 }
0x3044   :  { %3470 = vtanh.f32 %v4575_v20 }
0x304a   :  { %v3471_v21 = vpop.eup %3470 }
0x304b   :  { %2015 = vrot.lane.b32.xlu0 %v3471_v21, %s3939_s27 }
0x30bd   :  { %v2016_v22 = vpop.permute.xlu0 %2015 }
0x30be   :  { %v2018_v23 = vmul.f32 %v2016_v22, %v1999_v17 }
0x30c0   :  { %2020 = vrot.lane.b32.xlu1 %v2018_v23, %s3940_s15  ;;  %v2181_v23 = vpop.f32.mrf.mxu0 }
0x3132   :  { %v2021_v30 = vpop.permute.xlu1 %2020 }
0x3133   :  { %3210 = vmatmul.msk.f32.vlgmr.msrb.gmra.mxu2 %vm334_vm6, %v2021_v30  ;;  %3220 = vmatmul.msk.f32.gmra.mxu0 %vm334_vm6, %v2021_v30 }
0x3134   :  { %2348 = vmatpush.msrb.mxu2 %v4580_v7 }
0x3136   :  { %2349 = vmatpush.msrb.mxu2 %v4582_v24 }
0x3138   :  { %2350 = vmatpush.msrb.mxu2 %v4586_v26 }
0x313a   :  { %2351 = vmatpush.msrb.mxu2 %v4590_v27 }
0x313b   :  { %3223 = vmatmul.msk.f32.vlgmr.msra.gmra.mxu2 %vm334_vm6, %v4486_v60 }
0x313c   :  { %2476 = vmatpush.msra.mxu2 %v4580_v7 }
0x313e   :  { %2477 = vmatpush.msra.mxu2 %v4582_v24 }
0x3140   :  { %2478 = vmatpush.msra.mxu2 %v4586_v26 }
0x3142   :  { %2479 = vmatpush.msra.mxu2 %v4590_v27 }
0x31b6   :  { %v2041_v33 = vpop.f32.mrf.mxu2 }
0x31b7   :  { %v2044_v36 = vadd.f32 %v2041_v33, %v1563_v32 }
0x31b9   :  { %v2045_v37 = vadd.f32 %v4497_v12, %v2044_v36 }
0x31bb   :  { %3472 = vtanh.f32 %v2045_v37  ;;  %v3211_v44 = vmul.f32 -1.442695, %v2045_v37 }
0x31be   :  { %v2222_v39 = vpop.f32.mrf.mxu2 }
0x31bf   :  { %v2225_v40 = vadd.f32 %v2222_v39, %v2178_v3 }
0x31c1   :  { %v3473_v41 = vpop.eup %3472  ;;  %v2229_v42 = vadd.f32 %v4613_v38, %v2225_v40 }
0x31c2   :  { %2068 = vrot.lane.b32.xlu2 %v3473_v41, %s3939_s27 }
0x31c3   :  { %3474 = vtanh.f32 %v2229_v42  ;;  %v3224_v49 = vmul.f32 -1.442695, %v2229_v42 }
0x31c4   :  { %3476 = vpow2.f32 %v3211_v44 }
0x31c9   :  { %v3475_v43 = vpop.eup %3474 }
0x31ca   :  { %2252 = vrot.lane.b32.xlu0 %v3475_v43, %s3939_s27  ;;  %v3477_v12 = vpop.eup %3476 }
0x31cb   :  { %v2049_v6 = vadd.f32 1.0, %v3477_v12 }
0x31cd   :  { %3478 = vrcp.f32 %v2049_v6  ;;  %v2061_v53 = vand.u32 2147483648, %v2049_v6  ;;  %vm2055_vm15 = vweird.f32 %v2049_v6  ;;  %v2059_v54 = vand.u32 2147483647, %v2049_v6 }
0x31ce   :  { %3480 = vpow2.f32 %v3224_v49 }
0x31cf   :  { %v2062_v50 = vor.u32 1.1754944e-38, %v2061_v53  ;;  %vm2060_vm3 = vcmp.eq.f32.partialorder %v2059_v54, 8.507059e+37 }
0x31d3   :  { %v3479_v45 = vpop.eup %3478 }
0x31d4   :  { %v2051_v46 = vmul.f32 %v3479_v45, %v2049_v6  ;;  %vm2056_vm0 = vweird.f32 %v3479_v45  ;;  %v3481_v55 = vpop.eup %3480 }
0x31d5   :  { %vm2057_vm2 = vmor %vm2055_vm15, %vm2056_vm0  ;;  %v2233_v59 = vadd.f32 1.0, %v3481_v55 }
0x31d6   :  { %v2052_v48 = vsub.f32 1.0, %v2051_v46 }
0x31d7   :  { %3482 = vrcp.f32 %v2233_v59  ;;  %v2245_v2 = vand.u32 2147483648, %v2233_v59  ;;  %vm2239_vm5 = vweird.f32 %v2233_v59  ;;  %v2243_v9 = vand.u32 2147483647, %v2233_v59 }
0x31d8   :  { %v2053_v51 = vmul.f32 %v3479_v45, %v2052_v48 }
0x31d9   :  { %v2246_v8 = vor.u32 1.1754944e-38, %v2245_v2  ;;  %vm2244_vm8 = vcmp.eq.f32.partialorder %v2243_v9, 8.507059e+37 }
0x31da   :  { %v2054_v52 = vadd.f32 %v3479_v45, %v2053_v51 }
0x31dc   :  { %v2058_v47 = vsel %vm2057_vm2, %v3479_v45, %v2054_v52 }
0x31dd   :  { %v2063_v57 = vsel %vm2060_vm3, %v2062_v50, %v2058_v47  ;;  %v3483_v10 = vpop.eup %3482 }
0x31de   :  { %v2235_v11 = vmul.f32 %v3483_v10, %v2233_v59  ;;  %vm2240_vm4 = vweird.f32 %v3483_v10  ;;  %v2066_v14 = vmul.f32 %v2063_v57, %v4575_v20  ;;  %v2184_v59 = vpop.f32.mrf.mxu0 }
0x31df   :  { %vm2241_vm7 = vmor %vm2239_vm5, %vm2240_vm4 }
0x31e0   :  { %v2236_v0 = vsub.f32 1.0, %v2235_v11 }
0x31e2   :  { %v2237_v1 = vmul.f32 %v3483_v10, %v2236_v0 }
0x31e4   :  { %v2238_v34 = vadd.f32 %v3483_v10, %v2237_v1 }
0x31e6   :  { %v2242_v28 = vsel %vm2241_vm7, %v3483_v10, %v2238_v34 }
0x31e7   :  { %v2247_v13 = vsel %vm2244_vm8, %v2246_v8, %v2242_v28 }
0x31e8   :  { %v2250_v15 = vmul.f32 %v4486_v60, %v2247_v13 }
0x321c   :  { %v2069_v61 = vpop.permute.xlu2 %2068 }
0x321d   :  { %v2071_v5 = vmul.f32 %v2069_v61, %v2063_v57 }
0x321f   :  { %2073 = vrot.lane.b32.xlu1 %v2071_v5, %s3939_s27 }
0x323c   :  { %v2253_v56 = vpop.permute.xlu0 %2252 }
0x323d   :  { %v2255_v35 = vmul.f32 %v2253_v56, %v2247_v13 }
0x323f   :  { %2257 = vrot.lane.b32.xlu2 %v2255_v35, %s3939_s27 }
0x3291   :  { %v2074_v4 = vpop.permute.xlu1 %2073 }
0x3292   :  { %v4621_v25 = vadd.f32 %v2074_v4, %v2066_v14 }
0x3294   :  { %3484 = vtanh.f32 %v4621_v25 }
0x3299   :  { %v2258_v63 = vpop.permute.xlu2 %2257 }
0x329a   :  { %v3485_v16 = vpop.eup %3484  ;;  %v2260_v29 = vadd.f32 %v2258_v63, %v2250_v15 }
0x329b   :  { %2079 = vrot.lane.b32.xlu0 %v3485_v16, %s3939_s27 }
0x329c   :  { %3486 = vtanh.f32 %v2260_v29 }
0x32a2   :  { %v3487_v17 = vpop.eup %3486 }
0x32a3   :  { %2263 = vrot.lane.b32.xlu1 %v3487_v17, %s3939_s27 }
0x330d   :  { %v2080_v58 = vpop.permute.xlu0 %2079 }
0x330e   :  { %v2082_v18 = vmul.f32 %v2080_v58, %v2063_v57 }
0x3310   :  { %2084 = vrot.lane.b32.xlu2 %v2082_v18, %s3940_s15 }
0x3315   :  { %v2264_v19 = vpop.permute.xlu1 %2263 }
0x3316   :  { %v2266_v20 = vmul.f32 %v2264_v19, %v2247_v13 }
0x3318   :  { %2268 = vrot.lane.b32.xlu0 %v2266_v20, %s3940_s15 }
0x336a   :  { %v2085_v21 = vpop.permute.xlu2 %2084 }
0x336b   :  { %3212 = vmatmul.msk.f32.vlgmr.msra.gmra.mxu3 %vm334_vm6, %v2085_v21  ;;  %3221 = vmatmul.msk.f32.gmra.mxu0 %vm334_vm6, %v2085_v21  ;;  %v2187_v21 = vpop.f32.mrf.mxu0 }
0x336c   :  { %2412 = vmatpush.msra.mxu3 %v4580_v7 }
0x336e   :  { %2413 = vmatpush.msra.mxu3 %v4582_v24 }
0x3370   :  { %2414 = vmatpush.msra.mxu3 %v4586_v26 }
0x3372   :  { %2415 = vmatpush.msra.mxu3 %v4590_v27 }
0x338a   :  { %v4635_v60 = vpop.permute.xlu0 %2268 }
0x338b   :  { %3225 = vmatmul.msk.f32.vlgmr.msrb.gmra.mxu3 %vm334_vm6, %v4635_v60 }
0x338c   :  { %2540 = vmatpush.msrb.mxu3 %v4580_v7 }
0x338e   :  { %2541 = vmatpush.msrb.mxu3 %v4582_v24 }
0x3390   :  { %2542 = vmatpush.msrb.mxu3 %v4586_v26 }
0x3392   :  { %2543 = vmatpush.msrb.mxu3 %v4590_v27 }
0x33ee   :  { %v4643_v22 = vpop.f32.mrf.mxu3 }
0x340e   :  { %v2289_v30 = vpop.f32.mrf.mxu3 }
0x340f   :  { %v2292_v31 = vadd.f32 %v2289_v30, %v2181_v23 }
0x3411   :  { %v2293_v32 = vadd.f32 %v4613_v38, %v2292_v31 }
0x3413   :  { %3488 = vtanh.f32 %v2293_v32  ;;  %v3226_v36 = vmul.f32 -1.442695, %v2293_v32 }
0x3415   :  { %3490 = vpow2.f32 %v3226_v36 }
0x3419   :  { %v3489_v33 = vpop.eup %3488 }
0x341a   :  { %2316 = vrot.lane.b32.xlu1 %v3489_v33, %s3939_s27 }
0x341b   :  { %v3491_v37 = vpop.eup %3490 }
0x341c   :  { %v2297_v3 = vadd.f32 1.0, %v3491_v37 }
0x341e   :  { %3492 = vrcp.f32 %v2297_v3  ;;  %v2309_v44 = vand.u32 2147483648, %v2297_v3  ;;  %vm2303_vm10 = vweird.f32 %v2297_v3  ;;  %v2307_v12 = vand.u32 2147483647, %v2297_v3 }
0x3420   :  { %v2310_v45 = vor.u32 1.1754944e-38, %v2309_v44  ;;  %vm2308_vm12 = vcmp.eq.f32.partialorder %v2307_v12, 8.507059e+37 }
0x3424   :  { %v3493_v39 = vpop.eup %3492 }
0x3425   :  { %v2299_v40 = vmul.f32 %v3493_v39, %v2297_v3  ;;  %vm2304_vm9 = vweird.f32 %v3493_v39 }
0x3426   :  { %vm2305_vm11 = vmor %vm2303_vm10, %vm2304_vm9 }
0x3427   :  { %v2300_v41 = vsub.f32 1.0, %v2299_v40 }
0x3429   :  { %v2301_v42 = vmul.f32 %v3493_v39, %v2300_v41 }
0x342b   :  { %v2302_v43 = vadd.f32 %v3493_v39, %v2301_v42 }
0x342d   :  { %v2306_v6 = vsel %vm2305_vm11, %v3493_v39, %v2302_v43 }
0x342e   :  { %v2311_v48 = vsel %vm2308_vm12, %v2310_v45, %v2306_v6 }
0x342f   :  { %v2314_v51 = vmul.f32 %v2311_v48, %v2260_v29 }
0x348c   :  { %v2317_v46 = vpop.permute.xlu1 %2316 }
0x348d   :  { %v2319_v49 = vmul.f32 %v2317_v46, %v2311_v48 }
0x348f   :  { %2321 = vrot.lane.b32.xlu2 %v2319_v49, %s3939_s27 }
0x34e9   :  { %v2322_v52 = vpop.permute.xlu2 %2321 }
0x34ea   :  { %v2324_v53 = vadd.f32 %v2322_v52, %v2314_v51 }
0x34ec   :  { %3494 = vtanh.f32 %v2324_v53 }
0x34f2   :  { %v3495_v54 = vpop.eup %3494 }
0x34f3   :  { %2327 = vrot.lane.b32.xlu0 %v3495_v54, %s3939_s27 }
0x3565   :  { %v2328_v55 = vpop.permute.xlu0 %2327 }
0x3566   :  { %v2330_v47 = vmul.f32 %v2328_v55, %v2311_v48 }
0x3568   :  { %2332 = vrot.lane.b32.xlu1 %v2330_v47, %s3940_s15 }
0x35da   :  { %v4650_v50 = vpop.permute.xlu1 %2332 }
0x35db   :  { %3227 = vmatmul.msk.f32.vlgmr.msrb.gmra.mxu2 %vm334_vm6, %v4650_v50 }
0x35dc   :  { %2604 = vmatpush.msrb.mxu2 %v4580_v7 }
0x35de   :  { %2605 = vmatpush.msrb.mxu2 %v4582_v24 }
0x35e0   :  { %2606 = vmatpush.msrb.mxu2 %v4586_v26 }
0x35e2   :  { %2607 = vmatpush.msrb.mxu2 %v4590_v27 }
0x365e   :  { %v2353_v61 = vpop.f32.mrf.mxu2 }
0x365f   :  { %v2356_v57 = vadd.f32 %v2353_v61, %v2184_v59  ;;  %v2190_v59 = vpop.f32.mrf.mxu0 }
0x3661   :  { %v2357_v5 = vadd.f32 %v4613_v38, %v2356_v57 }
0x3663   :  { %3496 = vtanh.f32 %v2357_v5  ;;  %v3228_v11 = vmul.f32 -1.442695, %v2357_v5 }
0x3665   :  { %3498 = vpow2.f32 %v3228_v11 }
0x3669   :  { %v3497_v10 = vpop.eup %3496 }
0x366a   :  { %2380 = vrot.lane.b32.xlu2 %v3497_v10, %s3939_s27 }
0x366b   :  { %v3499_v0 = vpop.eup %3498 }
0x366c   :  { %v2361_v1 = vadd.f32 1.0, %v3499_v0 }
0x366e   :  { %3500 = vrcp.f32 %v2361_v1  ;;  %v2373_v56 = vand.u32 2147483648, %v2361_v1  ;;  %vm2367_vm14 = vweird.f32 %v2361_v1  ;;  %v2371_v13 = vand.u32 2147483647, %v2361_v1 }
0x3670   :  { %v2374_v14 = vor.u32 1.1754944e-38, %v2373_v56  ;;  %vm2372_vm15 = vcmp.eq.f32.partialorder %v2371_v13, 8.507059e+37 }
0x3674   :  { %v3501_v34 = vpop.eup %3500 }
0x3675   :  { %v2363_v2 = vmul.f32 %v3501_v34, %v2361_v1  ;;  %vm2368_vm13 = vweird.f32 %v3501_v34 }
0x3676   :  { %vm2369_vm0 = vmor %vm2367_vm14, %vm2368_vm13 }
0x3677   :  { %v2364_v9 = vsub.f32 1.0, %v2363_v2 }
0x3679   :  { %v2365_v28 = vmul.f32 %v3501_v34, %v2364_v9 }
0x367b   :  { %v2366_v8 = vadd.f32 %v3501_v34, %v2365_v28 }
0x367d   :  { %v2370_v35 = vsel %vm2369_vm0, %v3501_v34, %v2366_v8 }
0x367e   :  { %v2375_v15 = vsel %vm2372_vm15, %v2374_v14, %v2370_v35 }
0x367f   :  { %v2378_v16 = vmul.f32 %v2375_v15, %v2324_v53 }
0x36c4   :  { %v2381_v4 = vpop.permute.xlu2 %2380 }
0x36c5   :  { %v2383_v63 = vmul.f32 %v2381_v4, %v2375_v15 }
0x36c7   :  { %2385 = vrot.lane.b32.xlu0 %v2383_v63, %s3939_s27 }
0x3739   :  { %v2386_v29 = vpop.permute.xlu0 %2385 }
0x373a   :  { %v2388_v17 = vadd.f32 %v2386_v29, %v2378_v16 }
0x373c   :  { %3502 = vtanh.f32 %v2388_v17 }
0x3742   :  { %v3503_v58 = vpop.eup %3502 }
0x3743   :  { %2391 = vrot.lane.b32.xlu1 %v3503_v58, %s3939_s27  ;;  %v2193_v58 = vpop.f32.mrf.mxu0 }
0x37b5   :  { %v2392_v18 = vpop.permute.xlu1 %2391 }
0x37b6   :  { %v2394_v19 = vmul.f32 %v2392_v18, %v2375_v15 }
0x37b8   :  { %2396 = vrot.lane.b32.xlu2 %v2394_v19, %s3940_s15 }
0x3812   :  { %v4663_v20 = vpop.permute.xlu2 %2396 }
0x3813   :  { %3229 = vmatmul.msk.f32.vlgmr.msra.gmra.mxu3 %vm334_vm6, %v4663_v20 }
0x3814   :  { %2668 = vmatpush.msra.mxu3 %v4580_v7 }
0x3816   :  { %2669 = vmatpush.msra.mxu3 %v4582_v24 }
0x3818   :  { %2670 = vmatpush.msra.mxu3 %v4586_v26 }
0x381a   :  { %2671 = vmatpush.msra.mxu3 %v4590_v27 }
0x3896   :  { %v2417_v23 = vpop.f32.mrf.mxu3 }
0x3897   :  { %v2420_v30 = vadd.f32 %v2417_v23, %v2187_v21 }
0x3899   :  { %v2421_v31 = vadd.f32 %v4613_v38, %v2420_v30 }
0x389b   :  { %3504 = vtanh.f32 %v2421_v31  ;;  %v3230_v33 = vmul.f32 -1.442695, %v2421_v31 }
0x389d   :  { %3506 = vpow2.f32 %v3230_v33 }
0x38a1   :  { %v3505_v32 = vpop.eup %3504 }
0x38a2   :  { %2444 = vrot.lane.b32.xlu0 %v3505_v32, %s3939_s27 }
0x38a3   :  { %v3507_v36 = vpop.eup %3506 }
0x38a4   :  { %v2425_v37 = vadd.f32 1.0, %v3507_v36 }
0x38a6   :  { %3508 = vrcp.f32 %v2425_v37  ;;  %v2437_v43 = vand.u32 2147483648, %v2425_v37  ;;  %vm2431_vm3 = vweird.f32 %v2425_v37  ;;  %v2435_v44 = vand.u32 2147483647, %v2425_v37 }
0x38a8   :  { %v2438_v6 = vor.u32 1.1754944e-38, %v2437_v43  ;;  %vm2436_vm5 = vcmp.eq.f32.partialorder %v2435_v44, 8.507059e+37 }
0x38ac   :  { %v3509_v3 = vpop.eup %3508 }
0x38ad   :  { %v2427_v39 = vmul.f32 %v3509_v3, %v2425_v37  ;;  %vm2432_vm2 = vweird.f32 %v3509_v3 }
0x38ae   :  { %vm2433_vm4 = vmor %vm2431_vm3, %vm2432_vm2 }
0x38af   :  { %v2428_v40 = vsub.f32 1.0, %v2427_v39 }
0x38b1   :  { %v2429_v41 = vmul.f32 %v3509_v3, %v2428_v40 }
0x38b3   :  { %v2430_v42 = vadd.f32 %v3509_v3, %v2429_v41 }
0x38b5   :  { %v2434_v12 = vsel %vm2433_vm4, %v3509_v3, %v2430_v42 }
0x38b6   :  { %v2439_v46 = vsel %vm2436_vm5, %v2438_v6, %v2434_v12 }
0x38b7   :  { %v2442_v49 = vmul.f32 %v2439_v46, %v2388_v17 }
0x3914   :  { %v2445_v45 = vpop.permute.xlu0 %2444 }
0x3915   :  { %v2447_v48 = vmul.f32 %v2445_v45, %v2439_v46 }
0x3917   :  { %2449 = vrot.lane.b32.xlu1 %v2447_v48, %s3939_s27 }
0x3989   :  { %v2450_v51 = vpop.permute.xlu1 %2449 }
0x398a   :  { %v2452_v52 = vadd.f32 %v2450_v51, %v2442_v49 }
0x398c   :  { %3510 = vtanh.f32 %v2452_v52 }
0x3992   :  { %v3511_v53 = vpop.eup %3510 }
0x3993   :  { %2455 = vrot.lane.b32.xlu2 %v3511_v53, %s3939_s27 }
0x39ed   :  { %v2456_v54 = vpop.permute.xlu2 %2455 }
0x39ee   :  { %v2458_v55 = vmul.f32 %v2456_v54, %v2439_v46  ;;  %v2196_v54 = vpop.f32.mrf.mxu0 }
0x39f0   :  { %2460 = vrot.lane.b32.xlu0 %v2458_v55, %s3940_s15 }
0x3a62   :  { %v4676_v47 = vpop.permute.xlu0 %2460 }
0x3a63   :  { %3231 = vmatmul.msk.f32.vlgmr.msra.gmra.mxu2 %vm334_vm6, %v4676_v47 }
0x3a64   :  { %2732 = vmatpush.msra.mxu2 %v4580_v7 }
0x3a66   :  { %2733 = vmatpush.msra.mxu2 %v4582_v24 }
0x3a68   :  { %2734 = vmatpush.msra.mxu2 %v4586_v26 }
0x3a6a   :  { %2735 = vmatpush.msra.mxu2 %v4590_v27 }
0x3ae6   :  { %v2481_v61 = vpop.f32.mrf.mxu2 }
0x3ae7   :  { %v2484_v57 = vadd.f32 %v2481_v61, %v2190_v59 }
0x3ae9   :  { %v2485_v5 = vadd.f32 %v4613_v38, %v2484_v57 }
0x3aeb   :  { %3512 = vtanh.f32 %v2485_v5  ;;  %v3232_v11 = vmul.f32 -1.442695, %v2485_v5 }
0x3aed   :  { %3514 = vpow2.f32 %v3232_v11 }
0x3af1   :  { %v3513_v10 = vpop.eup %3512 }
0x3af2   :  { %2508 = vrot.lane.b32.xlu1 %v3513_v10, %s3939_s27 }
0x3af3   :  { %v3515_v0 = vpop.eup %3514 }
0x3af4   :  { %v2489_v1 = vadd.f32 1.0, %v3515_v0 }
0x3af6   :  { %3516 = vrcp.f32 %v2489_v1  ;;  %v2501_v27 = vand.u32 2147483648, %v2489_v1  ;;  %vm2495_vm8 = vweird.f32 %v2489_v1  ;;  %v2499_v9 = vand.u32 2147483647, %v2489_v1 }
0x3af8   :  { %v2502_v8 = vor.u32 1.1754944e-38, %v2501_v27  ;;  %vm2500_vm10 = vcmp.eq.f32.partialorder %v2499_v9, 8.507059e+37 }
0x3afc   :  { %v3517_v7 = vpop.eup %3516 }
0x3afd   :  { %v2491_v24 = vmul.f32 %v3517_v7, %v2489_v1  ;;  %vm2496_vm7 = vweird.f32 %v3517_v7 }
0x3afe   :  { %vm2497_vm9 = vmor %vm2495_vm8, %vm2496_vm7 }
0x3aff   :  { %v2492_v34 = vsub.f32 1.0, %v2491_v24 }
0x3b01   :  { %v2493_v26 = vmul.f32 %v3517_v7, %v2492_v34 }
0x3b03   :  { %v2494_v2 = vadd.f32 %v3517_v7, %v2493_v26 }
0x3b05   :  { %v2498_v28 = vsel %vm2497_vm9, %v3517_v7, %v2494_v2 }
0x3b06   :  { %v2503_v13 = vsel %vm2500_vm10, %v2502_v8, %v2498_v28 }
0x3b07   :  { %v2506_v14 = vmul.f32 %v2503_v13, %v2452_v52 }
0x3b64   :  { %v2509_v56 = vpop.permute.xlu1 %2508 }
0x3b65   :  { %v2511_v35 = vmul.f32 %v2509_v56, %v2503_v13 }
0x3b67   :  { %2513 = vrot.lane.b32.xlu2 %v2511_v35, %s3939_s27 }
0x3bc1   :  { %v2514_v4 = vpop.permute.xlu2 %2513 }
0x3bc2   :  { %v2516_v15 = vadd.f32 %v2514_v4, %v2506_v14 }
0x3bc4   :  { %3518 = vtanh.f32 %v2516_v15 }
0x3bca   :  { %v3519_v63 = vpop.eup %3518 }
0x3bcb   :  { %2519 = vrot.lane.b32.xlu0 %v3519_v63, %s3939_s27 }
0x3c3d   :  { %v2520_v16 = vpop.permute.xlu0 %2519 }
0x3c3e   :  { %v2522_v29 = vmul.f32 %v2520_v16, %v2503_v13  ;;  %v1553_v13 = vpop.f32.mrf.mxu1  ;;  %v3621_v16 = vld [vmem:[#allocation16] ss:$0 sm:$0xff] }
0x3c3f   :  { %v1564_v4 = vadd.f32 %v1553_v13, %v4494_v62  ;;  %v2782_v62 = vld [vmem:[%s4948_s19 + $0x18] sm:$0xff] }
0x3c40   :  { %2524 = vrot.lane.b32.xlu1 %v2522_v29, %s3940_s15 }
0x3c41   :  { %v2108_v63 = vadd.f32 %v4643_v22, %v1564_v4  ;;  %v2781_v22 = vld [vmem:[%s4948_s19 + $0x10] sm:$0xff] }
0x3c43   :  { %v2109_v29 = vadd.f32 %v3621_v16, %v2108_v63 }
0x3cb2   :  { %v4689_v17 = vpop.permute.xlu1 %2524 }
0x3cb3   :  { %3233 = vmatmul.msk.f32.vlgmr.msrb.gmra.mxu3 %vm334_vm6, %v4689_v17 }
0x3cb4   :  { %2804 = vmatpush.msrb.mxu3 %v2782_v62 }
0x3cb6   :  { %2805 = vmatpush.msrb.mxu3 %v2781_v22 }
0x3d36   :  { %v2545_v18 = vpop.f32.mrf.mxu3 }
0x3d37   :  { %v2548_v19 = vadd.f32 %v2545_v18, %v2193_v58 }
0x3d39   :  { %v2549_v21 = vadd.f32 %v4613_v38, %v2548_v19 }
0x3d3b   :  { %3520 = vtanh.f32 %v2549_v21  ;;  %v3234_v30 = vmul.f32 -1.442695, %v2549_v21 }
0x3d3d   :  { %3522 = vpow2.f32 %v3234_v30  ;;  %v2779_v30 = vld [vmem:[%s4948_s19] sm:$0xff] }
0x3d41   :  { %v3521_v23 = vpop.eup %3520 }
0x3d42   :  { %2572 = vrot.lane.b32.xlu2 %v3521_v23, %s3939_s27  ;;  %v2780_v23 = vld [vmem:[%s4948_s19 + $0x8] sm:$0xff] }
0x3d43   :  { %v3523_v31 = vpop.eup %3522  ;;  %2806 = vmatpush.msrb.mxu3 %v2780_v23 }
0x3d44   :  { %v2553_v32 = vadd.f32 1.0, %v3523_v31 }
0x3d45   :  { %2807 = vmatpush.msrb.mxu3 %v2779_v30 }
0x3d46   :  { %3524 = vrcp.f32 %v2553_v32  ;;  %v2565_v40 = vand.u32 2147483648, %v2553_v32  ;;  %vm2559_vm12 = vweird.f32 %v2553_v32  ;;  %v2563_v41 = vand.u32 2147483647, %v2553_v32 }
0x3d48   :  { %v2566_v43 = vor.u32 1.1754944e-38, %v2565_v40  ;;  %vm2564_vm14 = vcmp.eq.f32.partialorder %v2563_v41, 8.507059e+37 }
0x3d4c   :  { %v3525_v33 = vpop.eup %3524 }
0x3d4d   :  { %v2555_v36 = vmul.f32 %v3525_v33, %v2553_v32  ;;  %vm2560_vm11 = vweird.f32 %v3525_v33  ;;  %v3213_v32 = vmul.f32 -1.442695, %v2109_v29 }
0x3d4e   :  { %vm2561_vm13 = vmor %vm2559_vm12, %vm2560_vm11 }
0x3d4f   :  { %v2556_v37 = vsub.f32 1.0, %v2555_v36 }
0x3d51   :  { %v2557_v3 = vmul.f32 %v3525_v33, %v2556_v37  ;;  %v2199_v37 = vpop.f32.mrf.mxu0 }
0x3d53   :  { %v2558_v39 = vadd.f32 %v3525_v33, %v2557_v3 }
0x3d55   :  { %v2562_v42 = vsel %vm2561_vm13, %v3525_v33, %v2558_v39 }
0x3d56   :  { %v2567_v12 = vsel %vm2564_vm14, %v2566_v43, %v2562_v42 }
0x3d57   :  { %v2570_v45 = vmul.f32 %v2567_v12, %v2516_v15 }
0x3d9c   :  { %v2573_v44 = vpop.permute.xlu2 %2572 }
0x3d9d   :  { %v2575_v6 = vmul.f32 %v2573_v44, %v2567_v12 }
0x3d9f   :  { %2577 = vrot.lane.b32.xlu0 %v2575_v6, %s3939_s27 }
0x3e11   :  { %v2578_v46 = vpop.permute.xlu0 %2577 }
0x3e12   :  { %v2580_v48 = vadd.f32 %v2578_v46, %v2570_v45 }
0x3e14   :  { %3526 = vtanh.f32 %v2580_v48 }
0x3e1a   :  { %v3527_v49 = vpop.eup %3526 }
0x3e1b   :  { %2583 = vrot.lane.b32.xlu1 %v3527_v49, %s3939_s27 }
0x3e8d   :  { %v2584_v51 = vpop.permute.xlu1 %2583 }
0x3e8e   :  { %v2586_v52 = vmul.f32 %v2584_v51, %v2567_v12 }
0x3e90   :  { %2588 = vrot.lane.b32.xlu2 %v2586_v52, %s3940_s15 }
0x3eea   :  { %v4698_v53 = vpop.permute.xlu2 %2588 }
0x3eeb   :  { %3235 = vmatmul.msk.f32.vlgmr.msrb.gmra.mxu2 %vm334_vm6, %v4698_v53 }
0x3f6e   :  { %v2609_v55 = vpop.f32.mrf.mxu2 }
0x3f6f   :  { %v2612_v59 = vadd.f32 %v2609_v55, %v2196_v54 }
0x3f71   :  { %v2613_v61 = vadd.f32 %v4613_v38, %v2612_v59 }
0x3f73   :  { %3528 = vtanh.f32 %v2613_v61  ;;  %v3236_v5 = vmul.f32 -1.442695, %v2613_v61 }
0x3f75   :  { %3530 = vpow2.f32 %v3236_v5 }
0x3f79   :  { %v3529_v57 = vpop.eup %3528 }
0x3f7a   :  { %2636 = vrot.lane.b32.xlu0 %v3529_v57, %s3939_s27 }
0x3f7b   :  { %v3531_v10 = vpop.eup %3530 }
0x3f7c   :  { %v2617_v11 = vadd.f32 1.0, %v3531_v10 }
0x3f7e   :  { %3532 = vrcp.f32 %v2617_v11  ;;  %v2629_v26 = vand.u32 2147483648, %v2617_v11  ;;  %vm2623_vm15 = vweird.f32 %v2617_v11  ;;  %v2627_v2 = vand.u32 2147483647, %v2617_v11 }
0x3f80   :  { %v2630_v9 = vor.u32 1.1754944e-38, %v2629_v26  ;;  %vm2628_vm3 = vcmp.eq.f32.partialorder %v2627_v2, 8.507059e+37 }
0x3f84   :  { %v3533_v0 = vpop.eup %3532 }
0x3f85   :  { %v2619_v1 = vmul.f32 %v3533_v0, %v2617_v11  ;;  %vm2624_vm0 = vweird.f32 %v3533_v0 }
0x3f86   :  { %vm2625_vm2 = vmor %vm2623_vm15, %vm2624_vm0 }
0x3f87   :  { %v2620_v7 = vsub.f32 1.0, %v2619_v1 }
0x3f89   :  { %v2621_v24 = vmul.f32 %v3533_v0, %v2620_v7 }
0x3f8b   :  { %v2622_v34 = vadd.f32 %v3533_v0, %v2621_v24 }
0x3f8d   :  { %v2626_v27 = vsel %vm2625_vm2, %v3533_v0, %v2622_v34  ;;  %vm2845_vm2 = vcmask 39952  }
0x3f8e   :  { %v2631_v8 = vsel %vm2628_vm3, %v2630_v9, %v2626_v27  ;;  %vm2936_vm3 = vcmask 23552  }
0x3f8f   :  { %v2634_v35 = vmul.f32 %v2631_v8, %v2580_v48 }
0x3fec   :  { %v2637_v28 = vpop.permute.xlu0 %2636 }
0x3fed   :  { %v2639_v56 = vmul.f32 %v2637_v28, %v2631_v8 }
0x3fef   :  { %2641 = vrot.lane.b32.xlu1 %v2639_v56, %s3939_s27 }
0x4061   :  { %v2642_v14 = vpop.permute.xlu1 %2641 }
0x4062   :  { %v4706_v15 = vadd.f32 %v2642_v14, %v2634_v35 }
0x4064   :  { %3534 = vtanh.f32 %v4706_v15 }
0x4065   :  { %3536 = vtanh.f32 %v2109_v29 }
0x4066   :  { %3538 = vpow2.f32 %v3213_v32 }
0x406a   :  { %v3535_v58 = vpop.eup %3534 }
0x406b   :  { %2647 = vrot.lane.b32.xlu2 %v3535_v58, %s3939_s27  ;;  %v3537_v18 = vpop.eup %3536 }
0x4073   :  { %2132 = vrot.lane.b32.xlu2 %v3537_v18, %s3939_s27 }
0x40c5   :  { %v2648_v19 = vpop.permute.xlu2 %2647 }
0x40c6   :  { %v2650_v21 = vmul.f32 %v2648_v19, %v2631_v8 }
0x40c8   :  { %2652 = vrot.lane.b32.xlu0 %v2650_v21, %s3940_s15 }
0x40cd   :  { %v2133_v6 = vpop.permute.xlu2 %2132 }
0x413a   :  { %v2653_v31 = vpop.permute.xlu0 %2652 }
0x413b   :  { %3237 = vmatmul.msk.f32.vlgmr.msra.gmra.mxu3 %vm334_vm6, %v2653_v31 }
0x4143   :  { %3241 = vmatmul.msk.f32.vlgmr.msrb.gmra.mxu3 %vm334_vm6, %v4635_v60  ;;  %v3539_v60 = vpop.eup %3538 }
0x4144   :  { %v2113_v33 = vadd.f32 1.0, %v3539_v60 }
0x4146   :  { %3540 = vrcp.f32 %v2113_v33  ;;  %v2125_v42 = vand.u32 2147483648, %v2113_v33  ;;  %vm2119_vm5 = vweird.f32 %v2113_v33  ;;  %v2123_v43 = vand.u32 2147483647, %v2113_v33 }
0x4148   :  { %v2126_v12 = vor.u32 1.1754944e-38, %v2125_v42  ;;  %vm2124_vm8 = vcmp.eq.f32.partialorder %v2123_v43, 8.507059e+37 }
0x414b   :  { %3242 = vmatmul.msk.f32.gmra.mxu3 %vm334_vm6, %v4650_v50 }
0x414c   :  { %v3541_v50 = vpop.eup %3540 }
0x414d   :  { %v2115_v36 = vmul.f32 %v3541_v50, %v2113_v33  ;;  %vm2120_vm4 = vweird.f32 %v3541_v50 }
0x414e   :  { %vm2121_vm7 = vmor %vm2119_vm5, %vm2120_vm4 }
0x414f   :  { %v2116_v39 = vsub.f32 1.0, %v2115_v36 }
0x4153   :  { %3243 = vmatmul.msk.f32.gmra.mxu3 %vm334_vm6, %v4663_v20 }
0x415b   :  { %3244 = vmatmul.msk.f32.gmra.mxu3 %vm334_vm6, %v4676_v47 }
0x4163   :  { %3245 = vmatmul.msk.f32.gmra.mxu3 %vm334_vm6, %v4689_v17  ;;  %v2117_v17 = vmul.f32 %v3541_v50, %v2116_v39 }
0x4165   :  { %v2118_v40 = vadd.f32 %v3541_v50, %v2117_v17 }
0x4167   :  { %v2122_v44 = vsel %vm2121_vm7, %v3541_v50, %v2118_v40  ;;  %v4761_v40 = vld [vmem:[%s4949_s20] ss:$0 sm:$0xff]  ;;  %s3941_s20 = smov 126  }
0x4168   :  { %v2127_v45 = vsel %vm2124_vm8, %v2126_v12, %v2122_v44  ;;  %vm3099_vm8 = vcmask 15360  }
0x4169   :  { %v2135_v46 = vmul.f32 %v2133_v6, %v2127_v45  ;;  %v2130_v7 = vmul.f32 %v2127_v45, %v4621_v25 }
0x416b   :  { %3246 = vmatmul.msk.f32.gmra.mxu3 %vm334_vm6, %v4698_v53 }
0x4173   :  { %3247 = vmatmul.msk.f32.gmra.mxu3 %vm334_vm6, %v2653_v31 }
0x41be   :  { %v2673_v20 = vpop.f32.mrf.mxu3 }
0x41bf   :  { %v2676_v3 = vadd.f32 %v2673_v20, %v2199_v37 }
0x41c1   :  { %v2677_v47 = vadd.f32 %v4613_v38, %v2676_v3 }
0x41c3   :  { %3542 = vtanh.f32 %v2677_v47  ;;  %v3238_v48 = vmul.f32 -1.442695, %v2677_v47 }
0x41c5   :  { %3544 = vpow2.f32 %v3238_v48 }
0x41c6   :  { %v2809_v22 = vpop.f32.mrf.mxu3 }
0x41c9   :  { %v3543_v41 = vpop.eup %3542 }
0x41ca   :  { %2700 = vrot.lane.b32.xlu1 %v3543_v41, %s3939_s27  ;;  %v4764_v41 = vadd.f32 %v4761_v40, %v2809_v22 }
0x41cb   :  { %v3545_v49 = vpop.eup %3544 }
0x41cc   :  { %v2681_v51 = vadd.f32 1.0, %v3545_v49  ;;  %v2846_v42 = vsel %vm2845_vm2, %v4764_v41, -inf }
0x41ce   :  { %3546 = vrcp.f32 %v2681_v51  ;;  %v2693_v61 = vand.u32 2147483648, %v2681_v51  ;;  %vm2687_vm10 = vweird.f32 %v2681_v51  ;;  %v2691_v57 = vand.u32 2147483647, %v2681_v51  ;;  %v2812_v60 = vpop.f32.mrf.mxu3 }
0x41d0   :  { %v2694_v10 = vor.u32 1.1754944e-38, %v2693_v61  ;;  %vm2692_vm12 = vcmp.eq.f32.partialorder %v2691_v57, 8.507059e+37 }
0x41d2   :  { %2137 = vrot.lane.b32.xlu1 %v2135_v46, %s3939_s27 }
0x41d4   :  { %v3547_v52 = vpop.eup %3546 }
0x41d5   :  { %v2683_v53 = vmul.f32 %v3547_v52, %v2681_v51  ;;  %vm2688_vm9 = vweird.f32 %v3547_v52 }
0x41d6   :  { %vm2689_vm11 = vmor %vm2687_vm10, %vm2688_vm9  ;;  %v2815_v3 = vpop.f32.mrf.mxu3 }
0x41d7   :  { %v2684_v54 = vsub.f32 1.0, %v2683_v53  ;;  %v4781_v53 = vadd.f32 %v4761_v40, %v2812_v60 }
0x41d9   :  { %v2685_v55 = vmul.f32 %v3547_v52, %v2684_v54  ;;  %v2849_v54 = vsel %vm2845_vm2, %v4781_v53, -inf }
0x41db   :  { %v2686_v59 = vadd.f32 %v3547_v52, %v2685_v55 }
0x41dd   :  { %v2690_v5 = vsel %vm2689_vm11, %v3547_v52, %v2686_v59 }
0x41de   :  { %v2695_v0 = vsel %vm2692_vm12, %v2694_v10, %v2690_v5  ;;  %v2818_v39 = vpop.f32.mrf.mxu3 }
0x41df   :  { %v2698_v2 = vmul.f32 %v2695_v0, %v4706_v15  ;;  %v4786_v55 = vadd.f32 %v4761_v40, %v2818_v39 }
0x41e1   :  { %v2855_v59 = vsel %vm2845_vm2, %v4786_v55, -inf }
0x41e6   :  { %v2821_v47 = vpop.f32.mrf.mxu3 }
0x41e7   :  { %v4769_v44 = vadd.f32 %v4761_v40, %v2821_v47 }
0x41e9   :  { %v2858_v12 = vsel %vm2845_vm2, %v4769_v44, -inf }
0x41ee   :  { %v2824_v17 = vpop.f32.mrf.mxu3 }
0x41ef   :  { %v4791_v61 = vadd.f32 %v4761_v40, %v2824_v17 }
0x41f1   :  { %v2861_v57 = vsel %vm2845_vm2, %v4791_v61, -inf }
0x41f6   :  { %v2827_v43 = vpop.f32.mrf.mxu3 }
0x423c   :  { %v2701_v11 = vpop.permute.xlu1 %2700 }
0x423d   :  { %v2703_v1 = vmul.f32 %v2701_v11, %v2695_v0  ;;  %v4797_v11 = vadd.f32 %v4761_v40, %v2815_v3 }
0x423f   :  { %2705 = vrot.lane.b32.xlu0 %v2703_v1, %s3939_s27  ;;  %v4802_v1 = vadd.f32 %v4761_v40, %v2827_v43 }
0x4244   :  { %v2138_v24 = vpop.permute.xlu1 %2137 }
0x4245   :  { %v2140_v34 = vadd.f32 %v2138_v24, %v2130_v7  ;;  %v2864_v7 = vsel %vm2845_vm2, %v4802_v1, -inf }
0x4247   :  { %3548 = vtanh.f32 %v2140_v34 }
0x424d   :  { %v3549_v26 = vpop.eup %3548 }
0x424e   :  { %2143 = vrot.lane.b32.xlu0 %v3549_v26, %s3939_s27 }
0x42b1   :  { %v2706_v27 = vpop.permute.xlu0 %2705 }
0x42b2   :  { %v4746_v9 = vadd.f32 %v2706_v27, %v2698_v2 }
0x42b4   :  { %3550 = vtanh.f32 %v4746_v9 }
0x42ba   :  { %v3551_v28 = vpop.eup %3550 }
0x42bb   :  { %2711 = vrot.lane.b32.xlu2 %v3551_v28, %s3939_s27 }
0x42c0   :  { %v2144_v8 = vpop.permute.xlu0 %2143 }
0x42c1   :  { %v2146_v56 = vmul.f32 %v2144_v8, %v2127_v45 }
0x42c3   :  { %2157 = vrot.lane.b32.xlu2 %v2146_v56, %s3940_s15 }
0x4315   :  { %v2712_v25 = vpop.permute.xlu2 %2711 }
0x4316   :  { %v2714_v13 = vmul.f32 %v2712_v25, %v2695_v0  ;;  %v2852_v0 = vsel %vm2845_vm2, %v4797_v11, -inf }
0x4318   :  { %2716 = vrot.lane.b32.xlu1 %v2714_v13, %s3940_s15 }
0x431d   :  { %v2158_v35 = vpop.permute.xlu2 %2157 }
0x431e   :  { %3222 = vmatmul.msk.f32.gmra.mxu0 %vm334_vm6, %v2158_v35 }
0x438a   :  { %v2717_v14 = vpop.permute.xlu1 %2716 }
0x438b   :  { %3239 = vmatmul.msk.f32.vlgmr.msra.gmra.mxu2 %vm334_vm6, %v2717_v14  ;;  %3248 = vmatmul.msk.f32.gmra.mxu3 %vm334_vm6, %v2717_v14 }
0x439b   :  { %v2202_v4 = vpop.f32.mrf.mxu0 }
0x440e   :  { %v2737_v15 = vpop.f32.mrf.mxu2  ;;  %v2830_v6 = vpop.f32.mrf.mxu3 }
0x440f   :  { %v2740_v63 = vadd.f32 %v2737_v15, %v2202_v4  ;;  %v4774_v45 = vadd.f32 %v4761_v40, %v2830_v6 }
0x4411   :  { %v2741_v16 = vadd.f32 %v4613_v38, %v2740_v63  ;;  %v2867_v46 = vsel %vm2845_vm2, %v4774_v45, -inf }
0x4413   :  { %3552 = vtanh.f32 %v2741_v16  ;;  %v3240_v58 = vmul.f32 -1.442695, %v2741_v16 }
0x4415   :  { %3554 = vpow2.f32 %v3240_v58 }
0x4419   :  { %v3553_v29 = vpop.eup %3552 }
0x441a   :  { %2764 = vrot.lane.b32.xlu0 %v3553_v29, %s3939_s27 }
0x441b   :  { %v3555_v18 = vpop.eup %3554 }
0x441c   :  { %v2745_v19 = vadd.f32 1.0, %v3555_v18 }
0x441e   :  { %3556 = vrcp.f32 %v2745_v19  ;;  %v2757_v32 = vand.u32 2147483648, %v2745_v19  ;;  %vm2751_vm14 = vweird.f32 %v2745_v19  ;;  %v2755_v38 = vand.u32 2147483647, %v2745_v19 }
0x4420   :  { %v2758_v50 = vor.u32 1.1754944e-38, %v2757_v32  ;;  %vm2756_vm15 = vcmp.eq.f32.partialorder %v2755_v38, 8.507059e+37 }
0x4424   :  { %v3557_v21 = vpop.eup %3556 }
0x4425   :  { %v2747_v62 = vmul.f32 %v3557_v21, %v2745_v19  ;;  %vm2752_vm13 = vweird.f32 %v3557_v21 }
0x4426   :  { %vm2753_vm0 = vmor %vm2751_vm14, %vm2752_vm13 }
0x4427   :  { %v2748_v23 = vsub.f32 1.0, %v2747_v62 }
0x4429   :  { %v2749_v30 = vmul.f32 %v3557_v21, %v2748_v23 }
0x442b   :  { %v2750_v31 = vadd.f32 %v3557_v21, %v2749_v30 }
0x442d   :  { %v2754_v33 = vsel %vm2753_vm0, %v3557_v21, %v2750_v31 }
0x442e   :  { %v2759_v37 = vsel %vm2756_vm15, %v2758_v50, %v2754_v33 }
0x442f   :  { %v2762_v48 = vmul.f32 %v2759_v37, %v4746_v9 }
0x448c   :  { %v2765_v36 = vpop.permute.xlu0 %2764 }
0x448d   :  { %v2767_v20 = vmul.f32 %v2765_v36, %v2759_v37 }
0x448f   :  { %2769 = vrot.lane.b32.xlu1 %v2767_v20, %s3939_s27 }
0x44b9   :  { %2847 = vmax.xlane.f32.xlu1 %v2846_v42 }
0x44c1   :  { %2859 = vmax.xlane.f32.xlu1 %v2858_v12 }
0x44c9   :  { %2868 = vmax.xlane.f32.xlu1 %v2867_v46 }
0x4501   :  { %v2770_v49 = vpop.permute.xlu1 %2769 }
0x4502   :  { %v2772_v51 = vadd.f32 %v2770_v49, %v2762_v48 }
0x4504   :  { %3558 = vtanh.f32 %v2772_v51 }
0x450a   :  { %v3559_v52 = vpop.eup %3558 }
0x450b   :  { %2775 = vrot.lane.b32.xlu2 %v3559_v52, %s3939_s27 }
0x452c   :  { %v2848_v24 = vpop.xlane.xlu1 %2847 }
0x452d   :  { %v2873_v34 = vsub.f32 %v4764_v41, %v2848_v24 }
0x452f   :  { %v2882_v26 = vmul.f32 1.442695, %v2873_v34 }
0x4531   :  { %3560 = vpow2.f32 %v2882_v26 }
0x4534   :  { %2850 = vmax.xlane.f32.xlu2 %v2849_v54  ;;  %v2860_v2 = vpop.xlane.xlu1 %2859 }
0x4535   :  { %v2877_v8 = vsub.f32 %v4769_v44, %v2860_v2 }
0x4537   :  { %v4809_v56 = vpop.eup %3560  ;;  %v2890_v25 = vmul.f32 1.442695, %v2877_v8 }
0x453c   :  { %2856 = vmax.xlane.f32.xlu2 %v2855_v59  ;;  %v2869_v35 = vpop.xlane.xlu1 %2868 }
0x453d   :  { %v2880_v63 = vsub.f32 %v4774_v45, %v2869_v35 }
0x453f   :  { %v2896_v16 = vmul.f32 1.442695, %v2880_v63 }
0x4544   :  { %2862 = vmax.xlane.f32.xlu2 %v2861_v57 }
0x4565   :  { %v2776_v5 = vpop.permute.xlu2 %2775 }
0x4566   :  { %v2778_v10 = vmul.f32 %v2776_v5, %v2759_v37 }
0x4568   :  { %2788 = vrot.lane.b32.xlu0 %v2778_v10, %s3940_s15 }
0x4592   :  { %2853 = vmax.xlane.f32.xlu0 %v2852_v0 }
0x459a   :  { %2865 = vmax.xlane.f32.xlu0 %v2864_v7 }
0x45a7   :  { %v2851_v27 = vpop.xlane.xlu2 %2850 }
0x45a8   :  { %v2874_v9 = vsub.f32 %v4781_v53, %v2851_v27 }
0x45aa   :  { %v2884_v28 = vmul.f32 1.442695, %v2874_v9 }
0x45ac   :  { %3562 = vpow2.f32 %v2884_v28 }
0x45ad   :  { %3564 = vpow2.f32 %v2890_v25 }
0x45ae   :  { %2909 = vrot.lane.b32.xlu0 %v4809_v56, %s3941_s20 }
0x45af   :  { %v2857_v13 = vpop.xlane.xlu2 %2856 }
0x45b0   :  { %v2876_v14 = vsub.f32 %v4786_v55, %v2857_v13 }
0x45b2   :  { %v4814_v4 = vpop.eup %3562  ;;  %v2888_v15 = vmul.f32 1.442695, %v2876_v14 }
0x45b3   :  { %2911 = vrot.lane.b32.xlu1 %v4814_v4, %s3941_s20  ;;  %v4820_v18 = vpop.eup %3564 }
0x45b4   :  { %3566 = vpow2.f32 %v2888_v15 }
0x45b5   :  { %3568 = vpow2.f32 %v2896_v16 }
0x45b7   :  { %v2863_v29 = vpop.xlane.xlu2 %2862 }
0x45b8   :  { %v2878_v58 = vsub.f32 %v4791_v61, %v2863_v29 }
0x45ba   :  { %v4822_v19 = vpop.eup %3566  ;;  %v2892_v21 = vmul.f32 1.442695, %v2878_v58 }
0x45bb   :  { %2917 = vrot.lane.b32.xlu1 %v4820_v18, %s3941_s20  ;;  %2915 = vrot.lane.b32.xlu0 %v4822_v19, %s3941_s20  ;;  %v4828_v62 = vpop.eup %3568 }
0x45bc   :  { %3570 = vpow2.f32 %v2892_v21 }
0x45c2   :  { %v4830_v22 = vpop.eup %3570 }
0x45c3   :  { %2923 = vrot.lane.b32.xlu1 %v4828_v62, %s3941_s20  ;;  %2919 = vrot.lane.b32.xlu0 %v4830_v22, %s3941_s20 }
0x45da   :  { %v2789_v23 = vpop.permute.xlu0 %2788 }
0x45db   :  { %3249 = vmatmul.msk.f32.gmra.mxu3 %vm334_vm6, %v2789_v23 }
0x4605   :  { %v2854_v20 = vpop.xlane.xlu0 %2853 }
0x4606   :  { %v2875_v3 = vsub.f32 %v4797_v11, %v2854_v20 }
0x4608   :  { %v2886_v39 = vmul.f32 1.442695, %v2875_v3 }
0x460a   :  { %3572 = vpow2.f32 %v2886_v39 }
0x460d   :  { %v2866_v47 = vpop.xlane.xlu0 %2865 }
0x460e   :  { %v2879_v17 = vsub.f32 %v4802_v1, %v2866_v47 }
0x4610   :  { %v2894_v42 = vmul.f32 1.442695, %v2879_v17  ;;  %v4847_v43 = vpop.eup %3572 }
0x4612   :  { %3574 = vpow2.f32 %v2894_v42 }
0x4620   :  { %v2910_v59 = vpop.permute.xlu0 %2909 }
0x4621   :  { %v2937_v0 = vsel %vm2936_vm3, %v2910_v59, 0.0 }
0x4625   :  { %v2912_v30 = vpop.permute.xlu1 %2911 }
0x4626   :  { %v2940_v31 = vsel %vm2936_vm3, %v2912_v30, 0.0 }
0x4627   :  { %2941 = vadd.xlane.f32.xlu1 %v2940_v31 }
0x462d   :  { %v2918_v32 = vpop.permute.xlu1 %2917  ;;  %v2916_v13 = vpop.permute.xlu0 %2915 }
0x462e   :  { %v2949_v60 = vsel %vm2936_vm3, %v2918_v32, 0.0  ;;  %v2946_v15 = vsel %vm2936_vm3, %v2916_v13, 0.0 }
0x462f   :  { %2950 = vadd.xlane.f32.xlu1 %v2949_v60 }
0x4635   :  { %v2924_v38 = vpop.permute.xlu1 %2923 }
0x4636   :  { %v2958_v33 = vsel %vm2936_vm3, %v2924_v38, 0.0 }
0x4637   :  { %2959 = vadd.xlane.f32.xlu1 %v2958_v33 }
0x465e   :  { %v2833_v50 = vpop.f32.mrf.mxu3 }
0x465f   :  { %v4841_v36 = vadd.f32 %v4761_v40, %v2833_v50  ;;  %v4851_v40 = vpop.eup %3574 }
0x4661   :  { %v2870_v37 = vsel %vm2845_vm2, %v4841_v36, -inf }
0x4662   :  { %2871 = vmax.xlane.f32.xlu2 %v2870_v37 }
0x467a   :  { %2913 = vrot.lane.b32.xlu2 %v4847_v43, %s3941_s20 }
0x4682   :  { %2921 = vrot.lane.b32.xlu2 %v4851_v40, %s3941_s20 }
0x469a   :  { %v2942_v12 = vpop.xlane.xlu1 %2941 }
0x469b   :  { %3576 = vrcp.f32 %v2942_v12  ;;  %v2989_v51 = vand.u32 2147483648, %v2942_v12  ;;  %v2987_v54 = vand.u32 2147483647, %v2942_v12  ;;  %vm2983_vm4 = vweird.f32 %v2942_v12 }
0x469d   :  { %v2990_v10 = vor.u32 1.1754944e-38, %v2989_v51  ;;  %vm2988_vm7 = vcmp.eq.f32.partialorder %v2987_v54, 8.507059e+37 }
0x46a1   :  { %v3577_v6 = vpop.eup %3576 }
0x46a2   :  { %v2979_v46 = vmul.f32 %v3577_v6, %v2942_v12  ;;  %v2951_v48 = vpop.xlane.xlu1 %2950  ;;  %vm2984_vm6 = vweird.f32 %v3577_v6 }
0x46a3   :  { %3578 = vrcp.f32 %v2951_v48  ;;  %vm2985_vm5 = vmor %vm2983_vm4, %vm2984_vm6  ;;  %v3031_v9 = vand.u32 2147483648, %v2951_v48  ;;  %v3029_v25 = vand.u32 2147483647, %v2951_v48  ;;  %vm3025_vm10 = vweird.f32 %v2951_v48 }
0x46a4   :  { %v2980_v49 = vsub.f32 1.0, %v2979_v46  ;;  %3580 = vtanh.f32 %v4781_v53 }
0x46a5   :  { %vm3030_vm12 = vcmp.eq.f32.partialorder %v3029_v25, 8.507059e+37 }
0x46a6   :  { %v2981_v52 = vmul.f32 %v3577_v6, %v2980_v49 }
0x46a8   :  { %v2982_v57 = vadd.f32 %v3577_v6, %v2981_v52 }
0x46a9   :  { %v3579_v5 = vpop.eup %3578 }
0x46aa   :  { %v2986_v7 = vsel %vm2985_vm5, %v3577_v6, %v2982_v57  ;;  %v3021_v24 = vmul.f32 %v3579_v5, %v2951_v48  ;;  %v2960_v34 = vpop.xlane.xlu1 %2959  ;;  %v3581_v53 = vpop.eup %3580  ;;  %vm3026_vm9 = vweird.f32 %v3579_v5 }
0x46ab   :  { %v2991_v26 = vsel %vm2988_vm7, %v2990_v10, %v2986_v7  ;;  %3582 = vrcp.f32 %v2960_v34  ;;  %2938 = vadd.xlane.f32.xlu2 %v2937_v0  ;;  %vm3027_vm11 = vmor %vm3025_vm10, %vm3026_vm9  ;;  %v3073_v23 = vand.u32 2147483648, %v2960_v34  ;;  %v3071_v32 = vand.u32 2147483647, %v2960_v34  ;;  %v2920_v6 = vpop.permute.xlu0 %2919 }
0x46ac   :  { %v3091_v2 = vmul.f32 %v4814_v4, %v2991_v26  ;;  %v3022_v27 = vsub.f32 1.0, %v3021_v24  ;;  %3584 = vtanh.f32 %v4769_v44  ;;  %v3032_v4 = vor.u32 1.1754944e-38, %v3031_v9 }
0x46ad   :  { %3586 = vtanh.f32 %v4774_v45  ;;  %vm3067_vm14 = vweird.f32 %v2960_v34  ;;  %v3074_v38 = vor.u32 1.1754944e-38, %v3073_v23  ;;  %vm3072_vm15 = vcmp.eq.f32.partialorder %v3071_v32, 8.507059e+37 }
0x46ae   :  { %v3101_v28 = vsel %vm3099_vm8, %v3581_v53, %v3091_v2  ;;  %v3023_v8 = vmul.f32 %v3579_v5, %v3022_v27  ;;  %v2952_v46 = vsel %vm2936_vm3, %v2920_v6, 0.0 }
0x46af   :  { %3110 = vst.msk [vmem:[%s4950_s21 + $0x8] sm:$0xff] %vm264_vm1, %v3101_v28 }
0x46b0   :  { %v3024_v35 = vadd.f32 %v3579_v5, %v3023_v8 }
0x46b1   :  { %v3583_v14 = vpop.eup %3582 }
0x46b2   :  { %v3028_v63 = vsel %vm3027_vm11, %v3579_v5, %v3024_v35  ;;  %v3063_v16 = vmul.f32 %v3583_v14, %v2960_v34  ;;  %v3585_v21 = vpop.eup %3584  ;;  %vm3068_vm13 = vweird.f32 %v3583_v14 }
0x46b3   :  { %v3033_v29 = vsel %vm3030_vm12, %v3032_v4, %v3028_v63  ;;  %2947 = vadd.xlane.f32.xlu2 %v2946_v15  ;;  %vm3069_vm0 = vmor %vm3067_vm14, %vm3068_vm13  ;;  %v3587_v37 = vpop.eup %3586 }
0x46b4   :  { %v3094_v44 = vmul.f32 %v4820_v18, %v3033_v29  ;;  %v3064_v58 = vsub.f32 1.0, %v3063_v16 }
0x46b6   :  { %v3104_v30 = vsel %vm3099_vm8, %v3585_v21, %v3094_v44  ;;  %v3065_v31 = vmul.f32 %v3583_v14, %v3064_v58 }
0x46b7   :  { %3113 = vst.msk [vmem:[%s4950_s21 + $0x20] sm:$0xff] %vm264_vm1, %v3104_v30 }
0x46b8   :  { %v3066_v60 = vadd.f32 %v3583_v14, %v3065_v31 }
0x46ba   :  { %v3070_v18 = vsel %vm3069_vm0, %v3583_v14, %v3066_v60 }
0x46bb   :  { %v3075_v33 = vsel %vm3072_vm15, %v3074_v38, %v3070_v18 }
0x46bc   :  { %v3097_v50 = vmul.f32 %v4828_v62, %v3075_v33 }
0x46be   :  { %v3107_v20 = vsel %vm3099_vm8, %v3587_v37, %v3097_v50 }
0x46bf   :  { %3116 = vst.msk [vmem:[%s4950_s21 + $0x38] sm:$0xff] %vm264_vm1, %v3107_v20 }
0x46d5   :  { %v2872_v45 = vpop.xlane.xlu2 %2871 }
0x46d6   :  { %v2881_v3 = vsub.f32 %v4841_v36, %v2872_v45 }
0x46d8   :  { %v2898_v39 = vmul.f32 1.442695, %v2881_v3 }
0x46da   :  { %3588 = vpow2.f32 %v2898_v39 }
0x46dd   :  { %v2914_v47 = vpop.permute.xlu2 %2913 }
0x46de   :  { %v2943_v12 = vsel %vm2936_vm3, %v2914_v47, 0.0 }
0x46e0   :  { %v4879_v17 = vpop.eup %3588 }
0x46e1   :  { %2925 = vrot.lane.b32.xlu0 %v4879_v17, %s3941_s20 }
0x46e5   :  { %v2922_v62 = vpop.permute.xlu2 %2921 }
0x46e6   :  { %v2955_v42 = vsel %vm2936_vm3, %v2922_v62, 0.0 }
0x46e7   :  { %2956 = vadd.xlane.f32.xlu2 %v2955_v42 }
0x470b   :  { %2944 = vadd.xlane.f32.xlu0 %v2943_v12 }
0x4713   :  { %2953 = vadd.xlane.f32.xlu0 %v2952_v46 }
0x471e   :  { %v2939_v48 = vpop.xlane.xlu2 %2938 }
0x471f   :  { %3590 = vrcp.f32 %v2939_v48  ;;  %v2975_v59 = vand.u32 2147483648, %v2939_v48  ;;  %v2973_v5 = vand.u32 2147483647, %v2939_v48  ;;  %vm2969_vm6 = vweird.f32 %v2939_v48 }
0x4721   :  { %v2976_v7 = vor.u32 1.1754944e-38, %v2975_v59  ;;  %vm2974_vm5 = vcmp.eq.f32.partialorder %v2973_v5, 8.507059e+37 }
0x4725   :  { %v3591_v49 = vpop.eup %3590 }
0x4726   :  { %v2965_v51 = vmul.f32 %v3591_v49, %v2939_v48  ;;  %v2948_v52 = vpop.xlane.xlu2 %2947  ;;  %vm2970_vm2 = vweird.f32 %v3591_v49 }
0x4727   :  { %3592 = vrcp.f32 %v2948_v52  ;;  %vm2971_vm4 = vmor %vm2969_vm6, %vm2970_vm2  ;;  %v3017_v9 = vand.u32 2147483648, %v2948_v52  ;;  %v3015_v25 = vand.u32 2147483647, %v2948_v52  ;;  %vm3011_vm9 = vweird.f32 %v2948_v52 }
0x4728   :  { %v2966_v54 = vsub.f32 1.0, %v2965_v51  ;;  %3594 = vtanh.f32 %v4764_v41 }
0x4729   :  { %3596 = vtanh.f32 %v4786_v55  ;;  %v3018_v13 = vor.u32 1.1754944e-38, %v3017_v9  ;;  %vm3016_vm11 = vcmp.eq.f32.partialorder %v3015_v25, 8.507059e+37 }
0x472a   :  { %v2967_v57 = vmul.f32 %v3591_v49, %v2966_v54 }
0x472c   :  { %v2968_v10 = vadd.f32 %v3591_v49, %v2967_v57 }
0x472d   :  { %v3593_v0 = vpop.eup %3592 }
0x472e   :  { %v2972_v24 = vsel %vm2971_vm4, %v3591_v49, %v2968_v10  ;;  %v3007_v34 = vmul.f32 %v3593_v0, %v2948_v52  ;;  %v3595_v53 = vpop.eup %3594  ;;  %vm3012_vm7 = vweird.f32 %v3593_v0 }
0x472f   :  { %v2977_v26 = vsel %vm2974_vm5, %v2976_v7, %v2972_v24  ;;  %vm3013_vm10 = vmor %vm3011_vm9, %vm3012_vm7  ;;  %v3597_v4 = vpop.eup %3596 }
0x4730   :  { %v3090_v2 = vmul.f32 %v4809_v56, %v2977_v26  ;;  %v3008_v27 = vsub.f32 1.0, %v3007_v34 }
0x4732   :  { %v3100_v28 = vsel %vm3099_vm8, %v3595_v53, %v3090_v2  ;;  %v3009_v8 = vmul.f32 %v3593_v0, %v3008_v27 }
0x4733   :  { %3109 = vst.msk [vmem:[%s4950_s21] sm:$0xff] %vm264_vm1, %v3100_v28 }
0x4734   :  { %v3010_v41 = vadd.f32 %v3593_v0, %v3009_v8 }
0x4736   :  { %v3014_v56 = vsel %vm3013_vm10, %v3593_v0, %v3010_v41 }
0x4737   :  { %v3019_v35 = vsel %vm3016_vm11, %v3018_v13, %v3014_v56 }
0x4738   :  { %v3093_v14 = vmul.f32 %v4822_v19, %v3019_v35 }
0x473a   :  { %v3103_v15 = vsel %vm3099_vm8, %v3597_v4, %v3093_v14 }
0x473b   :  { %3112 = vst.msk [vmem:[%s4950_s21 + $0x18] sm:$0xff] %vm264_vm1, %v3103_v15 }
0x4753   :  { %v2926_v55 = vpop.permute.xlu0 %2925 }
0x4754   :  { %v2961_v63 = vsel %vm2936_vm3, %v2926_v55, 0.0 }
0x4755   :  { %2962 = vadd.xlane.f32.xlu0 %v2961_v63 }
0x475a   :  { %v2957_v16 = vpop.xlane.xlu2 %2956 }
0x475b   :  { %3598 = vrcp.f32 %v2957_v16  ;;  %v3059_v21 = vand.u32 2147483648, %v2957_v16  ;;  %v3057_v19 = vand.u32 2147483647, %v2957_v16  ;;  %vm3053_vm13 = vweird.f32 %v2957_v16 }
0x475c   :  { %3600 = vtanh.f32 %v4802_v1 }
0x475d   :  { %v3060_v31 = vor.u32 1.1754944e-38, %v3059_v21  ;;  %vm3058_vm0 = vcmp.eq.f32.partialorder %v3057_v19, 8.507059e+37 }
0x4761   :  { %v3599_v29 = vpop.eup %3598 }
0x4762   :  { %v3049_v44 = vmul.f32 %v3599_v29, %v2957_v16  ;;  %vm3054_vm12 = vweird.f32 %v3599_v29  ;;  %v3601_v18 = vpop.eup %3600 }
0x4763   :  { %vm3055_vm14 = vmor %vm3053_vm13, %vm3054_vm12 }
0x4764   :  { %v3050_v58 = vsub.f32 1.0, %v3049_v44 }
0x4766   :  { %v3051_v23 = vmul.f32 %v3599_v29, %v3050_v58 }
0x4768   :  { %v3052_v30 = vadd.f32 %v3599_v29, %v3051_v23 }
0x476a   :  { %v3056_v32 = vsel %vm3055_vm14, %v3599_v29, %v3052_v30 }
0x476b   :  { %v3061_v60 = vsel %vm3058_vm0, %v3060_v31, %v3056_v32 }
0x476c   :  { %v3096_v38 = vmul.f32 %v4851_v40, %v3061_v60 }
0x476e   :  { %v3106_v33 = vsel %vm3099_vm8, %v3601_v18, %v3096_v38 }
0x476f   :  { %3115 = vst.msk [vmem:[%s4950_s21 + $0x30] sm:$0xff] %vm264_vm1, %v3106_v33 }
0x477e   :  { %v2945_v50 = vpop.xlane.xlu0 %2944 }
0x477f   :  { %3602 = vrcp.f32 %v2945_v50  ;;  %v3003_v3 = vand.u32 2147483648, %v2945_v50  ;;  %v3001_v47 = vand.u32 2147483647, %v2945_v50  ;;  %vm2997_vm15 = vweird.f32 %v2945_v50 }
0x4781   :  { %v3004_v42 = vor.u32 1.1754944e-38, %v3003_v3  ;;  %vm3002_vm6 = vcmp.eq.f32.partialorder %v3001_v47, 8.507059e+37 }
0x4785   :  { %v3603_v1 = vpop.eup %3602 }
0x4786   :  { %v2993_v37 = vmul.f32 %v3603_v1, %v2945_v50  ;;  %v2954_v20 = vpop.xlane.xlu0 %2953  ;;  %vm2998_vm3 = vweird.f32 %v3603_v1 }
0x4787   :  { %3604 = vrcp.f32 %v2954_v20  ;;  %vm2999_vm2 = vmor %vm2997_vm15, %vm2998_vm3  ;;  %v3045_v52 = vand.u32 2147483648, %v2954_v20  ;;  %v3043_v57 = vand.u32 2147483647, %v2954_v20  ;;  %vm3039_vm5 = vweird.f32 %v2954_v20 }
0x4788   :  { %v2994_v45 = vsub.f32 1.0, %v2993_v37  ;;  %3606 = vtanh.f32 %v4797_v11 }
0x4789   :  { %3608 = vtanh.f32 %v4791_v61  ;;  %v3046_v5 = vor.u32 1.1754944e-38, %v3045_v52  ;;  %vm3044_vm9 = vcmp.eq.f32.partialorder %v3043_v57, 8.507059e+37 }
0x478a   :  { %v2995_v39 = vmul.f32 %v3603_v1, %v2994_v45 }
0x478c   :  { %v2996_v40 = vadd.f32 %v3603_v1, %v2995_v39 }
0x478d   :  { %v3605_v62 = vpop.eup %3604 }
0x478e   :  { %v3000_v12 = vsel %vm2999_vm2, %v3603_v1, %v2996_v40  ;;  %v3035_v6 = vmul.f32 %v3605_v62, %v2954_v20  ;;  %v3607_v51 = vpop.eup %3606  ;;  %vm3040_vm4 = vweird.f32 %v3605_v62 }
0x478f   :  { %v3005_v46 = vsel %vm3002_vm6, %v3004_v42, %v3000_v12  ;;  %vm3041_vm7 = vmor %vm3039_vm5, %vm3040_vm4  ;;  %v3609_v7 = vpop.eup %3608 }
0x4790   :  { %v3092_v48 = vmul.f32 %v4847_v43, %v3005_v46  ;;  %v3036_v49 = vsub.f32 1.0, %v3035_v6 }
0x4792   :  { %v3102_v54 = vsel %vm3099_vm8, %v3607_v51, %v3092_v48  ;;  %v3037_v59 = vmul.f32 %v3605_v62, %v3036_v49 }
0x4793   :  { %3111 = vst.msk [vmem:[%s4950_s21 + $0x10] sm:$0xff] %vm264_vm1, %v3102_v54 }
0x4794   :  { %v3038_v11 = vadd.f32 %v3605_v62, %v3037_v59 }
0x4796   :  { %v3042_v43 = vsel %vm3041_vm7, %v3605_v62, %v3038_v11 }
0x4797   :  { %v3047_v10 = vsel %vm3044_vm9, %v3046_v5, %v3042_v43 }
0x4798   :  { %v3095_v0 = vmul.f32 %v4830_v22, %v3047_v10 }
0x479a   :  { %v3105_v24 = vsel %vm3099_vm8, %v3609_v7, %v3095_v0 }
0x479b   :  { %3114 = vst.msk [vmem:[%s4950_s21 + $0x28] sm:$0xff] %vm264_vm1, %v3105_v24 }
0x47c8   :  { %v2963_v61 = vpop.xlane.xlu0 %2962 }
0x47c9   :  { %3610 = vrcp.f32 %v2963_v61  ;;  %v3087_v27 = vand.u32 2147483648, %v2963_v61  ;;  %v3085_v9 = vand.u32 2147483647, %v2963_v61  ;;  %vm3081_vm11 = vweird.f32 %v2963_v61 }
0x47ca   :  { %3612 = vtanh.f32 %v4841_v36 }
0x47cb   :  { %v3088_v28 = vor.u32 1.1754944e-38, %v3087_v27  ;;  %vm3086_vm13 = vcmp.eq.f32.partialorder %v3085_v9, 8.507059e+37 }
0x47cf   :  { %v3611_v34 = vpop.eup %3610 }
0x47d0   :  { %v3077_v26 = vmul.f32 %v3611_v34, %v2963_v61  ;;  %vm3082_vm10 = vweird.f32 %v3611_v34  ;;  %v3613_v13 = vpop.eup %3612 }
0x47d1   :  { %vm3083_vm12 = vmor %vm3081_vm11, %vm3082_vm10 }
0x47d2   :  { %v3078_v2 = vsub.f32 1.0, %v3077_v26 }
0x47d4   :  { %v3079_v53 = vmul.f32 %v3611_v34, %v3078_v2 }
0x47d6   :  { %v3080_v22 = vadd.f32 %v3611_v34, %v3079_v53 }
0x47d8   :  { %v3084_v8 = vsel %vm3083_vm12, %v3611_v34, %v3080_v22 }
0x47d9   :  { %v3089_v25 = vsel %vm3086_vm13, %v3088_v28, %v3084_v8 }
0x47da   :  { %v3098_v41 = vmul.f32 %v4879_v17, %v3089_v25 }
0x47dc   :  { %v3108_v56 = vsel %vm3099_vm8, %v3613_v13, %v3098_v41 }
0x47dd   :  { %3117 = vst.msk [vmem:[%s4950_s21 + $0x40] sm:$0xff] %vm264_vm1, %v3108_v56 }
0x47de   :  { %3122 = vsyncpa [#allocation3], 1 }
0x47df   :  { %3123 = vsyncpa [#allocation5], 1 }
0x47e0   :  { %3124 = vsyncpa [#allocation8], 1 }
0x47e1   :  { %3125 = vsyncpa [#allocation11], 1 }
0x47e2   :  { %3126 = vsyncpa [#allocation14], 1 }
0x47e3   :  { %3127 = vsyncpa [#allocation17], 1 }
0x47e4   :  { %3128 = vsyncpa [#allocation20], 1 }

</bundles_post_ra>
